<compile_context>
chip_gen: v7x
topology: tpu7x:2x2x1
jax: 0.10.0
libtpu: 0.0.40
codegen_flags: <defaults>
</compile_context>

<pallas_src>
import math

import jax
import jax.numpy as jnp
from jax import lax
from jax.experimental import pallas as pl
from jax.experimental.pallas import tpu as pltpu


def _layernorm(x, gamma, beta, eps=1e-5):
    # Two-pass LN (exact f32). rsqrt goes to the EUP (its own bundle slot).
    mu = jnp.mean(x, axis=-1, keepdims=True)
    var = jnp.mean((x - mu) * (x - mu), axis=-1, keepdims=True)
    return (x - mu) * lax.rsqrt(var + eps) * gamma + beta


def mf_kernel(u_ref, m_ref, a_ref,                      # (tile_b, F) gathered factor rows
              ubias_ref, mbias_ref,                     # (1, tile_b) lane-dense row biases
              ug_ref, ubeta_ref, mg_ref, mbeta_ref, ag_ref, abeta_ref,  # LN affine (1, F)
              gb_ref,                                   # global bias (SMEM, (1, 1))
              out_ref):                                 # (1, tile_b) lane-dense output
    F = u_ref.shape[1]

    # relu (the double relu on users collapses); dropout(p=0.2) is identity in
    # eval mode.
    u = jnp.maximum(u_ref[...], 0.0)
    m = jnp.maximum(m_ref[...], 0.0)
    a = jnp.maximum(a_ref[...], 0.0)

    u = _layernorm(u, ug_ref[...], ubeta_ref[...])
    m = _layernorm(m, mg_ref[...], mbeta_ref[...])
    a = _layernorm(a, ag_ref[...], abeta_ref[...])

    combined = u * (m * a)                              # (tile_b, F)

    # Reduce over the factor axis on the otherwise-idle MXU: contracting with a
    # constant row directly yields a lane-dense (1, tile_b) result, avoiding
    # both an XLU reduction and a (tile_b,1)->(1,tile_b) relayout before the
    # store.  The 1/sqrt(F) prediction scale is folded into the row.
    scale_row = jnp.full((1, F), 1.0 / math.sqrt(F), dtype=jnp.float32)
    dot = lax.dot_general(scale_row, combined, (((1,), (1,)), ((), ())),
                          precision=lax.Precision.HIGHEST,
                          preferred_element_type=jnp.float32)   # (1, tile_b)

    pred = dot + ubias_ref[...] + mbias_ref[...] + gb_ref[0, 0]
    out_ref[...] = jnp.clip(pred, -0.1, 1.1)


def _choose_tile_b(B, F):
    """Pick a lane-dense batch tile (multiple of 128) under a VMEM budget.

    Per grid step the pipeline holds ~3 tables x 2 buffers x tile_b x F x 4
    bytes of input blocks; keep that under ~6 MiB so it fits every
    generation's default scoped VMEM (v5e 16 MiB / v6e 32 MiB / v7x 32 MiB)
    with headroom.  Among candidates, minimize padding waste, prefer >= 2
    grid steps (so the auto-pipeline overlaps DMA with compute), then prefer
    the larger tile (amortizes the ~0.35 us per-step overhead).
    """
    budget = 6 * 1024 * 1024
    cap = max(128, min(2048, (budget // (6 * F * 4)) // 128 * 128))
    candidates = []
    t = cap
    while t >= 128:
        n = -(-B // t)
        candidates.append((n * t, 0 if n >= 2 else 1, -t, t))
        t //= 2
    candidates.sort()
    return candidates[0][3]


def matrix_fact_forward(params, user_ids, movie_ids, age_bucket_ids, *, tile_b=None):
    uf = params["user_factors"]
    mf = params["movie_factors"]
    af = params["age_factors"]
    B = user_ids.shape[0]
    F = uf.shape[1]

    if tile_b is None:
        tile_b = _choose_tile_b(B, F)

    num_tiles = -(-B // tile_b)
    B_pad = num_tiles * tile_b
    pad = B_pad - B

    uid = jnp.pad(user_ids.astype(jnp.int32), (0, pad))
    mid = jnp.pad(movie_ids.astype(jnp.int32), (0, pad))
    aid = jnp.pad(age_bucket_ids.astype(jnp.int32), (0, pad))

    # Embedding gathers: one fused XLA gather per table in the wrapper; the
    # kernel then streams dense (tile_b, F) slabs via BlockSpec auto-pipelining
    # (one DMA per tile per table — removes the per-row descriptor-issue
    # bottleneck the review identified).
    u_rows = uf[uid]                                    # (B_pad, F)
    m_rows = mf[mid]                                    # (B_pad, F)
    a_rows = af[aid]                                    # (B_pad, F)

    # Per-row biases, laid out lane-dense.
    ubias = params["user_bias"][uid, 0].reshape(1, B_pad)
    mbias = params["movie_bias"][mid, 0].reshape(1, B_pad)

    row_spec = pl.BlockSpec((tile_b, F), lambda i: (i, 0))
    lane_spec = pl.BlockSpec((1, tile_b), lambda i: (0, i))
    affine_spec = pl.BlockSpec((1, F), lambda i: (0, 0))   # constant -> fetched once
    smem_spec = pl.BlockSpec(memory_space=pltpu.MemorySpace.SMEM)

    out = pl.pallas_call(
        mf_kernel,
        out_shape=jax.ShapeDtypeStruct((1, B_pad), jnp.float32),
        grid_spec=pltpu.PrefetchScalarGridSpec(
            num_scalar_prefetch=0,
            grid=(num_tiles,),
            in_specs=[
                row_spec, row_spec, row_spec,           # user/movie/age factor rows
                lane_spec, lane_spec,                   # user_bias, movie_bias rows
                affine_spec, affine_spec,               # user_norm gamma/beta
                affine_spec, affine_spec,               # movie_norm gamma/beta
                affine_spec, affine_spec,               # age_norm gamma/beta
                smem_spec,                              # global_bias
            ],
            out_specs=lane_spec,
        ),
        compiler_params=pltpu.CompilerParams(
            dimension_semantics=("parallel",)),
    )(u_rows, m_rows, a_rows,
      ubias, mbias,
      params["user_norm_g"], params["user_norm_b"],
      params["movie_norm_g"], params["movie_norm_b"],
      params["age_norm_g"], params["age_norm_b"],
      params["global_bias"])

    return out.reshape(B_pad)[:B]


def reference_forward(params, user_ids, movie_ids, age_bucket_ids):
    """Pure-JAX reference of the PyTorch forward (eval mode)."""
    def ln(x, g, b, eps=1e-5):
        mu = jnp.mean(x, -1, keepdims=True)
        var = jnp.mean((x - mu) ** 2, -1, keepdims=True)
        return (x - mu) / jnp.sqrt(var + eps) * g + b

    F = params["user_factors"].shape[1]
    u = jnp.maximum(params["user_factors"][user_ids], 0.0)
    m = jnp.maximum(params["movie_factors"][movie_ids], 0.0)
    a = jnp.maximum(params["age_factors"][age_bucket_ids], 0.0)
    u = ln(u, params["user_norm_g"], params["user_norm_b"])
    m = ln(m, params["movie_norm_g"], params["movie_norm_b"])
    a = ln(a, params["age_norm_g"], params["age_norm_b"])
    dot = jnp.sum(u * (m * a), axis=-1) / jnp.sqrt(jnp.float32(F))
    pred = (dot + params["user_bias"][user_ids, 0]
            + params["movie_bias"][movie_ids, 0] + params["global_bias"][0, 0])
    return jnp.clip(pred, -0.1, 1.1)


def init_params(key, n_users, n_movies, n_age_buckets, n_factors):
    """Deterministic synthetic parameter init mirroring the PyTorch module."""
    ks = jax.random.split(key, 5)

    def xavier_normal(k, fan_out, fan_in):
        std = math.sqrt(2.0 / (fan_in + fan_out))
        return std * jax.random.normal(k, (fan_out, fan_in), dtype=jnp.float32)

    return {
        "user_factors": xavier_normal(ks[0], n_users, n_factors),
        "movie_factors": xavier_normal(ks[1], n_movies, n_factors),
        "age_factors": xavier_normal(ks[2], n_age_buckets, n_factors),
        # nn.Embedding default init: N(0, 1)
        "user_bias": jax.random.normal(ks[3], (n_users, 1), dtype=jnp.float32),
        "movie_bias": jax.random.normal(ks[4], (n_movies, 1), dtype=jnp.float32),
        "global_bias": jnp.zeros((1, 1), dtype=jnp.float32),
        # LayerNorm affine params (gamma=1, beta=0)
        "user_norm_g": jnp.ones((1, n_factors), dtype=jnp.float32),
        "user_norm_b": jnp.zeros((1, n_factors), dtype=jnp.float32),
        "movie_norm_g": jnp.ones((1, n_factors), dtype=jnp.float32),
        "movie_norm_b": jnp.zeros((1, n_factors), dtype=jnp.float32),
        "age_norm_g": jnp.ones((1, n_factors), dtype=jnp.float32),
        "age_norm_b": jnp.zeros((1, n_factors), dtype=jnp.float32),
    }


if __name__ == "__main__":
    # Small deterministic problem. batch=500 is deliberately not a multiple of
    # the tile size (exercises the ragged-tail padding path and gives >=2 grid
    # steps); F=128 keeps factor rows lane-aligned.
    n_users, n_movies, n_age_buckets, n_factors = 600, 800, 16, 128
    batch = 500

    key = jax.random.PRNGKey(0)
    pkey, ukey, mkey, akey = jax.random.split(key, 4)
    params = init_params(pkey, n_users, n_movies, n_age_buckets, n_factors)

    user_ids = jax.random.randint(ukey, (batch,), 0, n_users, dtype=jnp.int32)
    movie_ids = jax.random.randint(mkey, (batch,), 0, n_movies, dtype=jnp.int32)
    age_bucket_ids = jax.random.randint(akey, (batch,), 0, n_age_buckets, dtype=jnp.int32)

    preds = matrix_fact_forward(params, user_ids, movie_ids, age_bucket_ids)
    preds = jax.block_until_ready(preds)

    ref = jax.block_until_ready(
        reference_forward(params, user_ids, movie_ids, age_bucket_ids))
    max_err = float(jnp.max(jnp.abs(preds - ref)))

    assert preds.shape == (batch,)
    assert bool(jnp.all(preds >= -0.1)) and bool(jnp.all(preds <= 1.1))
    # Loose-but-meaningful tolerance: only difference vs reference is the MXU
    # (HIGHEST precision) reduction and rsqrt vs sqrt in the LayerNorm.
    assert max_err < 1e-3, f"kernel/reference mismatch: max_err={max_err}"
    print("KERNEL_OK")
</pallas_src>

<mosaic_0001>
module attributes {stable_mosaic.version = 11 : i64} {
  func.func @mf_kernel(%arg0: i32, %arg1: memref<256x128xf32, #tpu.memory_space<vmem>>, %arg2: memref<256x128xf32, #tpu.memory_space<vmem>>, %arg3: memref<256x128xf32, #tpu.memory_space<vmem>>, %arg4: memref<1x256xf32, #tpu.memory_space<vmem>>, %arg5: memref<1x256xf32, #tpu.memory_space<vmem>>, %arg6: memref<1x128xf32, #tpu.memory_space<vmem>>, %arg7: memref<1x128xf32, #tpu.memory_space<vmem>>, %arg8: memref<1x128xf32, #tpu.memory_space<vmem>>, %arg9: memref<1x128xf32, #tpu.memory_space<vmem>>, %arg10: memref<1x128xf32, #tpu.memory_space<vmem>>, %arg11: memref<1x128xf32, #tpu.memory_space<vmem>>, %arg12: memref<1x1xf32, #tpu.memory_space<smem>>, %arg13: memref<1x256xf32, #tpu.memory_space<vmem>>) attributes {dimension_semantics = [#tpu.dimension_semantics<parallel>], iteration_bounds = array<i64: 2>, scalar_prefetch = 0 : i64, scratch_operands = 0 : i64, tpu.core_type = #tpu.core_type<tc>, window_params = [{transform_indices = @transform_0, window_bounds = array<i64: 256, 128>}, {transform_indices = @transform_1, window_bounds = array<i64: 256, 128>}, {transform_indices = @transform_2, window_bounds = array<i64: 256, 128>}, {transform_indices = @transform_3, window_bounds = array<i64: 1, 256>}, {transform_indices = @transform_4, window_bounds = array<i64: 1, 256>}, {pipeline_mode = #tpu.pipeline_mode<synchronous>, transform_indices = @transform_5, window_bounds = array<i64: 1, 128>}, {pipeline_mode = #tpu.pipeline_mode<synchronous>, transform_indices = @transform_6, window_bounds = array<i64: 1, 128>}, {pipeline_mode = #tpu.pipeline_mode<synchronous>, transform_indices = @transform_7, window_bounds = array<i64: 1, 128>}, {pipeline_mode = #tpu.pipeline_mode<synchronous>, transform_indices = @transform_8, window_bounds = array<i64: 1, 128>}, {pipeline_mode = #tpu.pipeline_mode<synchronous>, transform_indices = @transform_9, window_bounds = array<i64: 1, 128>}, {pipeline_mode = #tpu.pipeline_mode<synchronous>, transform_indices = @transform_10, window_bounds = array<i64: 1, 128>}, {transform_indices = @transform_11, window_bounds = array<i64: 1, 1>}, {transform_indices = @transform_12, window_bounds = array<i64: 1, 256>}]} {
    %c0 = arith.constant 0 : index
    %c0_0 = arith.constant 0 : index
    %0 = vector.load %arg1[%c0, %c0_0] : memref<256x128xf32, #tpu.memory_space<vmem>>, vector<256x128xf32>
    %cst = arith.constant 0.000000e+00 : f32
    %1 = vector.broadcast %cst : f32 to vector<256x128xf32>
    %2 = arith.maximumf %0, %1 : vector<256x128xf32>
    %c0_1 = arith.constant 0 : index
    %c0_2 = arith.constant 0 : index
    %3 = vector.load %arg2[%c0_1, %c0_2] : memref<256x128xf32, #tpu.memory_space<vmem>>, vector<256x128xf32>
    %cst_3 = arith.constant 0.000000e+00 : f32
    %4 = vector.broadcast %cst_3 : f32 to vector<256x128xf32>
    %5 = arith.maximumf %3, %4 : vector<256x128xf32>
    %c0_4 = arith.constant 0 : index
    %c0_5 = arith.constant 0 : index
    %6 = vector.load %arg3[%c0_4, %c0_5] : memref<256x128xf32, #tpu.memory_space<vmem>>, vector<256x128xf32>
    %cst_6 = arith.constant 0.000000e+00 : f32
    %7 = vector.broadcast %cst_6 : f32 to vector<256x128xf32>
    %8 = arith.maximumf %6, %7 : vector<256x128xf32>
    %c0_7 = arith.constant 0 : index
    %c0_8 = arith.constant 0 : index
    %9 = vector.load %arg6[%c0_7, %c0_8] : memref<1x128xf32, #tpu.memory_space<vmem>>, vector<1x128xf32>
    %c0_9 = arith.constant 0 : index
    %c0_10 = arith.constant 0 : index
    %10 = vector.load %arg7[%c0_9, %c0_10] : memref<1x128xf32, #tpu.memory_space<vmem>>, vector<1x128xf32>
    %cst_11 = arith.constant dense<0.000000e+00> : vector<256xf32>
    %11 = vector.multi_reduction <add>, %2, %cst_11 [1] : vector<256x128xf32> to vector<256xf32>
    %12 = vector.shape_cast %11 : vector<256xf32> to vector<256x1xf32>
    %cst_12 = arith.constant 1.280000e+02 : f32
    %13 = vector.broadcast %cst_12 : f32 to vector<256x1xf32>
    %14 = arith.divf %12, %13 : vector<256x1xf32>
    %15 = vector.broadcast %14 : vector<256x1xf32> to vector<256x128xf32>
    %16 = arith.subf %2, %15 : vector<256x128xf32>
    %17 = vector.broadcast %14 : vector<256x1xf32> to vector<256x128xf32>
    %18 = arith.subf %2, %17 : vector<256x128xf32>
    %19 = arith.mulf %16, %18 : vector<256x128xf32>
    %cst_13 = arith.constant dense<0.000000e+00> : vector<256xf32>
    %20 = vector.multi_reduction <add>, %19, %cst_13 [1] : vector<256x128xf32> to vector<256xf32>
    %21 = vector.shape_cast %20 : vector<256xf32> to vector<256x1xf32>
    %cst_14 = arith.constant 1.280000e+02 : f32
    %22 = vector.broadcast %cst_14 : f32 to vector<256x1xf32>
    %23 = arith.divf %21, %22 : vector<256x1xf32>
    %24 = vector.broadcast %14 : vector<256x1xf32> to vector<256x128xf32>
    %25 = arith.subf %2, %24 : vector<256x128xf32>
    %cst_15 = arith.constant 9.99999974E-6 : f32
    %26 = vector.broadcast %cst_15 : f32 to vector<256x1xf32>
    %27 = arith.addf %23, %26 : vector<256x1xf32>
    %28 = math.rsqrt %27 : vector<256x1xf32>
    %29 = vector.broadcast %28 : vector<256x1xf32> to vector<256x128xf32>
    %30 = arith.mulf %25, %29 : vector<256x128xf32>
    %31 = vector.broadcast %9 : vector<1x128xf32> to vector<256x128xf32>
    %32 = arith.mulf %30, %31 : vector<256x128xf32>
    %33 = vector.broadcast %10 : vector<1x128xf32> to vector<256x128xf32>
    %34 = arith.addf %32, %33 : vector<256x128xf32>
    %c0_16 = arith.constant 0 : index
    %c0_17 = arith.constant 0 : index
    %35 = vector.load %arg8[%c0_16, %c0_17] : memref<1x128xf32, #tpu.memory_space<vmem>>, vector<1x128xf32>
    %c0_18 = arith.constant 0 : index
    %c0_19 = arith.constant 0 : index
    %36 = vector.load %arg9[%c0_18, %c0_19] : memref<1x128xf32, #tpu.memory_space<vmem>>, vector<1x128xf32>
    %cst_20 = arith.constant dense<0.000000e+00> : vector<256xf32>
    %37 = vector.multi_reduction <add>, %5, %cst_20 [1] : vector<256x128xf32> to vector<256xf32>
    %38 = vector.shape_cast %37 : vector<256xf32> to vector<256x1xf32>
    %cst_21 = arith.constant 1.280000e+02 : f32
    %39 = vector.broadcast %cst_21 : f32 to vector<256x1xf32>
    %40 = arith.divf %38, %39 : vector<256x1xf32>
    %41 = vector.broadcast %40 : vector<256x1xf32> to vector<256x128xf32>
    %42 = arith.subf %5, %41 : vector<256x128xf32>
    %43 = vector.broadcast %40 : vector<256x1xf32> to vector<256x128xf32>
    %44 = arith.subf %5, %43 : vector<256x128xf32>
    %45 = arith.mulf %42, %44 : vector<256x128xf32>
    %cst_22 = arith.constant dense<0.000000e+00> : vector<256xf32>
    %46 = vector.multi_reduction <add>, %45, %cst_22 [1] : vector<256x128xf32> to vector<256xf32>
    %47 = vector.shape_cast %46 : vector<256xf32> to vector<256x1xf32>
    %cst_23 = arith.constant 1.280000e+02 : f32
    %48 = vector.broadcast %cst_23 : f32 to vector<256x1xf32>
    %49 = arith.divf %47, %48 : vector<256x1xf32>
    %50 = vector.broadcast %40 : vector<256x1xf32> to vector<256x128xf32>
    %51 = arith.subf %5, %50 : vector<256x128xf32>
    %cst_24 = arith.constant 9.99999974E-6 : f32
    %52 = vector.broadcast %cst_24 : f32 to vector<256x1xf32>
    %53 = arith.addf %49, %52 : vector<256x1xf32>
    %54 = math.rsqrt %53 : vector<256x1xf32>
    %55 = vector.broadcast %54 : vector<256x1xf32> to vector<256x128xf32>
    %56 = arith.mulf %51, %55 : vector<256x128xf32>
    %57 = vector.broadcast %35 : vector<1x128xf32> to vector<256x128xf32>
    %58 = arith.mulf %56, %57 : vector<256x128xf32>
    %59 = vector.broadcast %36 : vector<1x128xf32> to vector<256x128xf32>
    %60 = arith.addf %58, %59 : vector<256x128xf32>
    %c0_25 = arith.constant 0 : index
    %c0_26 = arith.constant 0 : index
    %61 = vector.load %arg10[%c0_25, %c0_26] : memref<1x128xf32, #tpu.memory_space<vmem>>, vector<1x128xf32>
    %c0_27 = arith.constant 0 : index
    %c0_28 = arith.constant 0 : index
    %62 = vector.load %arg11[%c0_27, %c0_28] : memref<1x128xf32, #tpu.memory_space<vmem>>, vector<1x128xf32>
    %cst_29 = arith.constant dense<0.000000e+00> : vector<256xf32>
    %63 = vector.multi_reduction <add>, %8, %cst_29 [1] : vector<256x128xf32> to vector<256xf32>
    %64 = vector.shape_cast %63 : vector<256xf32> to vector<256x1xf32>
    %cst_30 = arith.constant 1.280000e+02 : f32
    %65 = vector.broadcast %cst_30 : f32 to vector<256x1xf32>
    %66 = arith.divf %64, %65 : vector<256x1xf32>
    %67 = vector.broadcast %66 : vector<256x1xf32> to vector<256x128xf32>
    %68 = arith.subf %8, %67 : vector<256x128xf32>
    %69 = vector.broadcast %66 : vector<256x1xf32> to vector<256x128xf32>
    %70 = arith.subf %8, %69 : vector<256x128xf32>
    %71 = arith.mulf %68, %70 : vector<256x128xf32>
    %cst_31 = arith.constant dense<0.000000e+00> : vector<256xf32>
    %72 = vector.multi_reduction <add>, %71, %cst_31 [1] : vector<256x128xf32> to vector<256xf32>
    %73 = vector.shape_cast %72 : vector<256xf32> to vector<256x1xf32>
    %cst_32 = arith.constant 1.280000e+02 : f32
    %74 = vector.broadcast %cst_32 : f32 to vector<256x1xf32>
    %75 = arith.divf %73, %74 : vector<256x1xf32>
    %76 = vector.broadcast %66 : vector<256x1xf32> to vector<256x128xf32>
    %77 = arith.subf %8, %76 : vector<256x128xf32>
    %cst_33 = arith.constant 9.99999974E-6 : f32
    %78 = vector.broadcast %cst_33 : f32 to vector<256x1xf32>
    %79 = arith.addf %75, %78 : vector<256x1xf32>
    %80 = math.rsqrt %79 : vector<256x1xf32>
    %81 = vector.broadcast %80 : vector<256x1xf32> to vector<256x128xf32>
    %82 = arith.mulf %77, %81 : vector<256x128xf32>
    %83 = vector.broadcast %61 : vector<1x128xf32> to vector<256x128xf32>
    %84 = arith.mulf %82, %83 : vector<256x128xf32>
    %85 = vector.broadcast %62 : vector<1x128xf32> to vector<256x128xf32>
    %86 = arith.addf %84, %85 : vector<256x128xf32>
    %87 = arith.mulf %60, %86 : vector<256x128xf32>
    %88 = arith.mulf %34, %87 : vector<256x128xf32>
    %cst_34 = arith.constant 0.0883883461 : f32
    %89 = vector.broadcast %cst_34 : f32 to vector<1x128xf32>
    %cst_35 = arith.constant dense<0.000000e+00> : vector<1x256xf32>
    %90 = tpu.matmul %89, %88, %cst_35 {dimension_numbers = #tpu.dot_dimension_numbers<[1], [1], [0], [0], [0, 0, 1, 0], [], []>, precision = #tpu.contract_precision<fp32>} : vector<1x128xf32>, vector<256x128xf32>, vector<1x256xf32> -> vector<1x256xf32>
    %c0_36 = arith.constant 0 : index
    %c0_37 = arith.constant 0 : index
    %91 = vector.load %arg4[%c0_36, %c0_37] : memref<1x256xf32, #tpu.memory_space<vmem>>, vector<1x256xf32>
    %92 = arith.addf %90, %91 : vector<1x256xf32>
    %c0_38 = arith.constant 0 : index
    %c0_39 = arith.constant 0 : index
    %93 = vector.load %arg5[%c0_38, %c0_39] : memref<1x256xf32, #tpu.memory_space<vmem>>, vector<1x256xf32>
    %94 = arith.addf %92, %93 : vector<1x256xf32>
    %c0_40 = arith.constant 0 : index
    %c0_41 = arith.constant 0 : index
    %95 = memref.load %arg12[%c0_40, %c0_41] : memref<1x1xf32, #tpu.memory_space<smem>>
    %96 = vector.broadcast %95 : f32 to vector<1x256xf32>
    %97 = arith.addf %94, %96 : vector<1x256xf32>
    %cst_42 = arith.constant -1.000000e-01 : f32
    %cst_43 = arith.constant 1.100000e+00 : f32
    %98 = vector.broadcast %cst_42 : f32 to vector<1x256xf32>
    %99 = arith.maximumf %98, %97 : vector<1x256xf32>
    %100 = vector.broadcast %cst_43 : f32 to vector<1x256xf32>
    %101 = arith.minimumf %100, %99 : vector<1x256xf32>
    %c0_44 = arith.constant 0 : index
    %c0_45 = arith.constant 0 : index
    %102 = vector.load %arg13[%c0_44, %c0_45] : memref<1x256xf32, #tpu.memory_space<vmem>>, vector<1x256xf32>
    tpu.vector_store %arg13[%c0_44, %c0_45], %101 {strides = array<i32>} : memref<1x256xf32, #tpu.memory_space<vmem>>, vector<1x256xf32>,
    return
  }
  func.func @transform_0(%arg0: i32) -> (i32, i32) {
    %c0_i32 = arith.constant 0 : i32
    %c0_i32_0 = arith.constant 0 : i32
    return %arg0, %c0_i32 : i32, i32
  }
  func.func @transform_1(%arg0: i32) -> (i32, i32) {
    %c0_i32 = arith.constant 0 : i32
    %c0_i32_0 = arith.constant 0 : i32
    return %arg0, %c0_i32 : i32, i32
  }
  func.func @transform_2(%arg0: i32) -> (i32, i32) {
    %c0_i32 = arith.constant 0 : i32
    %c0_i32_0 = arith.constant 0 : i32
    return %arg0, %c0_i32 : i32, i32
  }
  func.func @transform_3(%arg0: i32) -> (i32, i32) {
    %c0_i32 = arith.constant 0 : i32
    %c0_i32_0 = arith.constant 0 : i32
    return %c0_i32, %arg0 : i32, i32
  }
  func.func @transform_4(%arg0: i32) -> (i32, i32) {
    %c0_i32 = arith.constant 0 : i32
    %c0_i32_0 = arith.constant 0 : i32
    return %c0_i32, %arg0 : i32, i32
  }
  func.func @transform_5(%arg0: i32) -> (i32, i32) {
    %c0_i32 = arith.constant 0 : i32
    %c0_i32_0 = arith.constant 0 : i32
    %c0_i32_1 = arith.constant 0 : i32
    return %c0_i32, %c0_i32_0 : i32, i32
  }
  func.func @transform_6(%arg0: i32) -> (i32, i32) {
    %c0_i32 = arith.constant 0 : i32
    %c0_i32_0 = arith.constant 0 : i32
    %c0_i32_1 = arith.constant 0 : i32
    return %c0_i32, %c0_i32_0 : i32, i32
  }
  func.func @transform_7(%arg0: i32) -> (i32, i32) {
    %c0_i32 = arith.constant 0 : i32
    %c0_i32_0 = arith.constant 0 : i32
    %c0_i32_1 = arith.constant 0 : i32
    return %c0_i32, %c0_i32_0 : i32, i32
  }
  func.func @transform_8(%arg0: i32) -> (i32, i32) {
    %c0_i32 = arith.constant 0 : i32
    %c0_i32_0 = arith.constant 0 : i32
    %c0_i32_1 = arith.constant 0 : i32
    return %c0_i32, %c0_i32_0 : i32, i32
  }
  func.func @transform_9(%arg0: i32) -> (i32, i32) {
    %c0_i32 = arith.constant 0 : i32
    %c0_i32_0 = arith.constant 0 : i32
    %c0_i32_1 = arith.constant 0 : i32
    return %c0_i32, %c0_i32_0 : i32, i32
  }
  func.func @transform_10(%arg0: i32) -> (i32, i32) {
    %c0_i32 = arith.constant 0 : i32
    %c0_i32_0 = arith.constant 0 : i32
    %c0_i32_1 = arith.constant 0 : i32
    return %c0_i32, %c0_i32_0 : i32, i32
  }
  func.func @transform_11(%arg0: i32) -> (i32, i32) {
    %c0_i32 = arith.constant 0 : i32
    %c0_i32_0 = arith.constant 0 : i32
    %c0_i32_1 = arith.constant 0 : i32
    return %c0_i32, %c0_i32_0 : i32, i32
  }
  func.func @transform_12(%arg0: i32) -> (i32, i32) {
    %c0_i32 = arith.constant 0 : i32
    %c0_i32_0 = arith.constant 0 : i32
    return %c0_i32, %arg0 : i32, i32
  }
}

</mosaic_0001>

<bundles_post_ra>
// kernel: tpu_custom_call.1
= control target key start
LH: loop header
LB: loop body
LE: loop exit
PB: predicated region body
PF: predicated region fallthrough
CT: control target
= control target key end

     0   :  { %s6612_s0 = inlined_call_operand.hbm [shape: f32[512,128], index: 0, kind: input, shape index: {}]   ;;  %s6613_s1 = inlined_call_operand.hbm [shape: f32[512,128], index: 1, kind: input, shape index: {}]   ;;  %s6614_s2 = inlined_call_operand.hbm [shape: f32[512,128], index: 2, kind: input, shape index: {}]   ;;  %s6615_s3 = inlined_call_operand.vmem [shape: f32[1,512], index: 3, kind: input, shape index: {}]   ;;  %s6616_s4 = inlined_call_operand.vmem [shape: f32[1,512], index: 4, kind: input, shape index: {}]   ;;  %s6617_s5 = inlined_call_operand.vmem [shape: f32[1,128], index: 5, kind: input, shape index: {}]   ;;  %s6618_s6 = inlined_call_operand.vmem [shape: f32[1,128], index: 6, kind: input, shape index: {}]   ;;  %s6619_s7 = inlined_call_operand.vmem [shape: f32[1,128], index: 7, kind: input, shape index: {}]   ;;  %s6620_s8 = inlined_call_operand.vmem [shape: f32[1,128], index: 8, kind: input, shape index: {}]   ;;  %s6621_s9 = inlined_call_operand.vmem [shape: f32[1,128], index: 9, kind: input, shape index: {}]   ;;  %s6622_s10 = inlined_call_operand.vmem [shape: f32[1,128], index: 10, kind: input, shape index: {}]   ;;  %s6623_s11 = inlined_call_operand.<no memory space> [shape: f32[1,1], index: 11, kind: input, shape index: {}]   ;;  %s6624_s12 = inlined_call_operand.hbm [shape: f32[1,512], index: 12, kind: output, shape index: {}]  }
   0x1   :  { %6899 = sst [smem:[#allocation91_spill]] %s6612_s0 }
   0x2   :  { %6900 = sst [smem:[#allocation92_spill]] %s6613_s1 }
   0x3   :  { %6901 = sst [smem:[#allocation93_spill]] %s6624_s12 }
   0x4   :  { %17 = sst [smem:[#allocation2]] %s6623_s11 }
   0x5   :  { %18 = vsyncpa [#allocation4], 0 }
   0x6   :  { %20 = vsyncpa [#allocation4 + $0x1], 0 }
   0x7   :  { %21 = vsyncpa [#allocation7], 0 }
   0x8   :  { %23 = vsyncpa [#allocation7 + $0x1], 0 }
   0x9   :  { %24 = vsyncpa [#allocation5], 0 }
   0xa   :  { %26 = vsyncpa [#allocation5 + $0x1], 0  ;;  %s4088_s23 = smov 0   ;;  %s4090_s24 = smov 0  }
   0xb   :  { %s4092_s25 = smov 0   ;;  %s4094_s26 = smov 0  }
   0xc LB: > { %6902 = sst [smem:[#allocation13_spill]] %s3995_s23  ;;  %s4109_s11 = sadd.s32 4294967295, %s4007_s26   ;;  %s4007_s26 = sphi %s4094_s26, %s7369_s26   ;;  %s4003_s25 = sphi %s4092_s25, %s7373_s25   ;;  %s3999_s24 = sphi %s4090_s24, %s7372_s24   ;;  %s3995_s23 = sphi %s4088_s23, %s7371_s23  }
   0xd   : > { %6903 = sst [smem:[#allocation14_spill]] %s4007_s26  ;;  %s3144_s27 = sadd.s32 4294967294, %s4007_s26  }
   0xe   : > { %s4113_s28 = sadd.s32 1, %s4007_s26   ;;  %s39_s29 = sadd.s32 1, %s4003_s25 }
   0xf   : > { %6904 = sst [smem:[#allocation15_spill]] %s4113_s28  ;;  %s36_s30 = ssub.s32 %s4007_s26, %s4113_s28 }
  0x10   : > { %p46_p0 = scmp.ne.s32.totalorder %s4003_s25, %s3999_s24  ;;  %p37_p1 = scmp.eq.s32.totalorder %s36_s30, 0 }
  0x11   : > { %p47_p2 = scmp.eq.s32.totalorder %s4007_s26, 0  ;;  %p52_p3 = scmp.ne.s32.totalorder %s3999_s24, %s3995_s23 }
  0x12   : > { %p53_p4 = scmp.eq.s32.totalorder %s4109_s11, 0  ;;  %p327_p7 = scmp.eq.s32.totalorder %s4109_s11, 1 }
  0x13   : > { %s4125_s13 = scalar_select %p37_p1, %s4003_s25, %s39_s29  }
  0x14   : > { %p48_p5 = por %p47_p2, %p46_p0  ;;  %p4127_p6 = por %p53_p4, %p52_p3 }
  0x15   : > { %6905 = sst [smem:[#allocation16_spill]] %s4125_s13  ;;  %p333_p8 = scmp.eq.s32.totalorder %s3144_s27, 1 }
  0x16   : > { %s6906_s14 = scalar_select %p4127_p6, 1, 0 }
  0x17   : > { %p3608_p10 = scmp.lt.s32.totalorder %s4007_s26, 2  ;;  %p4134_p11 = por %p327_p7, %p46_p0 }
  0x18   : > { %p4138_p12 = por %p333_p8, %p52_p3  ;;  %s6625_s17 = sand.u32 1, %s4003_s25  }
  0x19   : > { %s6907_s15 = scalar_select %p4134_p11, 1, 0 }
  0x1a   : > { %s6909_s16 = scalar_select %p4138_p12, 1, 0 }
  0x1b   : > { %6908 = sst [smem:[#allocation17_spill]] %s6907_s15  ;;  %s4144_s18 = sshll.u32 %s4007_s26, 12 }
  0x1c   : > { %6910 = sst [smem:[#allocation18_spill]] %s6909_s16  ;;  %s4148_s19 = sshll.u32 %s6625_s17, 8 }
  0x1d   : > { %p4150_p13 = pnand %p3608_p10, %p48_p5  ;;  %s395_s21 = sand.u32 1, %s4007_s26  }
  0x1e   : > { %s6912_s1 = sld [smem:[#allocation92_spill]]  ;;  %s399_s30 = scalar_lea.vmem [#allocation6], %s4148_s19 }
  0x1f   : > { %s406_s13 = sshll.u32 %s399_s30, 4  ;;  %s4165_s17 = scalar_lea.sflag [#allocation7], %s395_s21  ;;  %s4162_s13 = int_to_ptr.vmem [resolvable:$true] %s406_s13 }
  0x20   : > { %p4171_p2 = pneg %p4150_p13 }
  0x24   : > { %s4159_s29 = scalar_lea.hbm %s6912_s1, %s4144_s18  ;;  %s3852_s30 = scalar_lea.hbm %s6912_s1, 8192 }
  0x25   : > { %s3847_s28 = scalar_lea.hbm %s4159_s29, 4096  ;;  %p3853_p5 = scmp.lt.u32.totalorder %s4159_s29, %s6912_s1 }
  0x26   : > { %p3848_p1 = scmp.ne.s32.totalorder %s4159_s29, %s3847_s28  ;;  %p3854_p7 = scmp.lt.u32.totalorder %s3852_s30, %s3847_s28 }
  0x27   : > { %p3856_p10 = scmp.lt.u32.totalorder %s3847_s28, %s4159_s29 }
  0x28   : > { %p3850_p3 = pnand %p4171_p2, %p3848_p1  ;;  %p3855_p8 = por %p3854_p7, %p3853_p5 }
  0x2a   : > { %p3851_p4 = pneg %p3850_p3  ;;  %p3857_p9 = por %p3856_p10, %p3855_p8 }
  0x2c   : > { %p3858_p0 = pnand %p3857_p9, %p3851_p4 }
  0x2e   : > { %3861 = shalt.err (!%p3858_p0)
}
  0x2f   : > { %s3862_s21 = scalar_lea.vmem %s4162_s13, 4096  ;;  %s4009_s22 = smov [#allocation6]  }
  0x30   : > { %p3863_p1 = scmp.ne.s32.totalorder %s4162_s13, %s3862_s21  ;;  %s3867_s27 = sshll.u32 %s4009_s22, 4  ;;  %s3868_s27 = int_to_ptr.vmem [resolvable:$false] %s3867_s27 }
  0x31   : > { %s3869_s12 = scalar_lea.vmem %s3868_s27, 8192  ;;  %p3870_p11 = scmp.lt.s32.totalorder %s4162_s13, %s3868_s27 }
  0x32   : > { %p3865_p3 = pnand %p3863_p1, %p4171_p2  ;;  %p3871_p6 = scmp.lt.s32.totalorder %s3869_s12, %s3862_s21 }
  0x34   : > { %p3866_p12 = pneg %p3865_p3  ;;  %p3872_p5 = por %p3871_p6, %p3870_p11 }
  0x36   : > { %p3873_p7 = pnand %p3872_p5, %p3866_p12 }
  0x38   : > { %3876 = shalt.err (!%p3873_p7)
}
  0x39   : > { %s6633_s23 = smov 128   ;;  %s6635_s28 = smov 8  }
  0x3a   : > { %3600 = dma.hbm_to_vmem [thread:$0]  (!%p4150_p13), %s4159_s29, 4096, %s4162_s13, %s4165_s17, %s6633_s23, %s6633_s23, %s6635_s28  }
  0x3b   : > { %p451_p6 = scmp.lt.s32.totalorder %s4007_s26, 3  ;;  %s6914_s0 = sld [smem:[#allocation91_spill]] }
  0x3c   : > { %p6915_p9 = scmp.ge.s32.totalorder %s4007_s26, 1  ;;  %s378_s12 = scalar_lea.vmem [#allocation3], %s4148_s19 }
  0x3d   : > { %s385_s1 = sshll.u32 %s378_s12, 4  ;;  %s6917_s13 = sand.u32 1, %s4003_s25   ;;  %s4212_s1 = int_to_ptr.vmem [resolvable:$true] %s385_s1 }
  0x3e   : > { %p4207_p11 = pnand %p6915_p9, %p451_p6  ;;  %s4216_s29 = scalar_lea.sflag [#allocation4], %s6917_s13 }
  0x40   : > { %s6916_s27 = scalar_select %p4207_p11, 1, 0 }
  0x41   : > { %s4203_s22 = scalar_lea.hbm %s6914_s0, %s4144_s18  ;;  %s3882_s28 = scalar_lea.hbm %s6914_s0, 8192 }
  0x42   : > { %s3877_s23 = scalar_lea.hbm %s4203_s22, 4096  ;;  %p3883_p8 = scmp.lt.u32.totalorder %s4203_s22, %s6914_s0 }
  0x43   : > { %p3878_p12 = scmp.ne.s32.totalorder %s4203_s22, %s3877_s23  ;;  %p3884_p10 = scmp.lt.u32.totalorder %s3882_s28, %s3877_s23 }
  0x44   : > { %p3886_p3 = scmp.lt.u32.totalorder %s3877_s23, %s4203_s22 }
  0x45   : > { %p3880_p0 = pnand %p3878_p12, %p4171_p2  ;;  %p3885_p1 = por %p3884_p10, %p3883_p8 }
  0x47   : > { %p3881_p4 = pneg %p3880_p0  ;;  %p3887_p5 = por %p3886_p3, %p3885_p1 }
  0x49   : > { %p3888_p7 = pnand %p3887_p5, %p3881_p4 }
  0x4b   : > { %3891 = shalt.err (!%p3888_p7)
}
  0x4c   : > { %s3892_s12 = scalar_lea.vmem %s4212_s1, 4096  ;;  %s4012_s13 = smov [#allocation3]  }
  0x4d   : > { %p3893_p6 = scmp.ne.s32.totalorder %s4212_s1, %s3892_s12  ;;  %s3897_s30 = sshll.u32 %s4012_s13, 4  ;;  %s3898_s30 = int_to_ptr.vmem [resolvable:$false] %s3897_s30 }
  0x4e   : > { %s3899_s26 = scalar_lea.vmem %s3898_s30, 8192  ;;  %p3900_p0 = scmp.lt.s32.totalorder %s4212_s1, %s3898_s30 }
  0x4f   : > { %p3895_p9 = pnand %p3893_p6, %p4171_p2  ;;  %p3901_p11 = scmp.lt.s32.totalorder %s3899_s26, %s3892_s12 }
  0x51   : > { %p3896_p12 = pneg %p3895_p9  ;;  %p3902_p8 = por %p3901_p11, %p3900_p0 }
  0x53   : > { %p3903_p10 = pnand %p3902_p8, %p3896_p12 }
  0x55   : > { %3906 = shalt.err (!%p3903_p10)
}
  0x56   : > { %s6918_s15 = smov 8   ;;  %s6919_s23 = smov 128  }
  0x57   : > { %3597 = dma.hbm_to_vmem [thread:$0]  (!%p4150_p13), %s4203_s22, 4096, %s4212_s1, %s4216_s29, %s6919_s23, %s6919_s23, %s6918_s15  }
  0x58   : > { %s4247_s13 = scalar_lea.hbm %s6614_s2, %s4144_s18  ;;  %s420_s12 = scalar_lea.vmem [#allocation8], %s4148_s19 }
  0x59   : > { %s427_s30 = sshll.u32 %s420_s12, 4  ;;  %s3907_s26 = scalar_lea.hbm %s4247_s13, 4096  ;;  %s4250_s30 = int_to_ptr.vmem [resolvable:$true] %s427_s30 }
  0x5a   : > { %p3908_p11 = scmp.ne.s32.totalorder %s4247_s13, %s3907_s26  ;;  %s3912_s22 = scalar_lea.hbm %s6614_s2, 8192 }
  0x5b   : > { %p3913_p3 = scmp.lt.u32.totalorder %s4247_s13, %s6614_s2  ;;  %p3914_p5 = scmp.lt.u32.totalorder %s3912_s22, %s3907_s26 }
  0x5c   : > { %p3910_p4 = pnand %p3908_p11, %p4171_p2  ;;  %p3916_p6 = scmp.lt.u32.totalorder %s3907_s26, %s4247_s13 }
  0x5d   : > { %p3915_p7 = por %p3914_p5, %p3913_p3 }
  0x5e   : > { %p3911_p1 = pneg %p3910_p4 }
  0x5f   : > { %p3917_p9 = por %p3916_p6, %p3915_p7 }
  0x61   : > { %p3918_p12 = pnand %p3917_p9, %p3911_p1 }
  0x63   : > { %3921 = shalt.err (!%p3918_p12)
}
  0x64   : > { %s3922_s19 = scalar_lea.vmem %s4250_s30, 4096  ;;  %s4013_s0 = smov [#allocation8]  }
  0x65   : > { %p3923_p0 = scmp.ne.s32.totalorder %s4250_s30, %s3922_s19  ;;  %s3927_s28 = sshll.u32 %s4013_s0, 4  ;;  %s3928_s28 = int_to_ptr.vmem [resolvable:$false] %s3927_s28 }
  0x66   : > { %s3929_s21 = scalar_lea.vmem %s3928_s28, 8192  ;;  %p3930_p11 = scmp.lt.s32.totalorder %s4250_s30, %s3928_s28 }
  0x67   : > { %p3925_p8 = pnand %p3923_p0, %p4171_p2  ;;  %p3931_p4 = scmp.lt.s32.totalorder %s3929_s21, %s3922_s19 }
  0x69   : > { %p3926_p10 = pneg %p3925_p8  ;;  %p3932_p3 = por %p3931_p4, %p3930_p11 }
  0x6b   : > { %p3933_p5 = pnand %p3932_p3, %p3926_p10 }
  0x6d   : > { %3936 = shalt.err (!%p3933_p5)
}
  0x6e   : > { %3603 = dma.hbm_to_vmem [thread:$0]  (!%p4150_p13), %s4247_s13, 4096, %s4250_s30, %s4165_s17, %s6919_s23, %s6919_s23, %s6918_s15  }
  0x6f   : > { %p6920_p2 = scmp.ne.s32.totalorder %s6916_s27, 0 }
  0x71   : > { %455 = sbr.rel (%p6920_p2) target bundleno = 1064 (0x428), region = 68 }
  0x78   : > { %s4280_s16 = sand.u32 1, %s3999_s24   ;;  %p6921_p1 = scmp.ne.s32.totalorder %s6906_s14, 0 }
  0x79   : > { %s3157_s12 = sshll.u32 %s4280_s16, 8  ;;  %s458_s26 = scalar_lea.sflag [#allocation4], %s4280_s16 }
  0x7a   : > { %s4284_s1 = scalar_lea.vmem [#allocation3], %s3157_s12 }
  0x7b   : > { %3982 = dma.done.wait (%p6921_p1), %s458_s26, 4096  }
  0x7c   : > { %3984 = vsyncadd (%p6921_p1), %s458_s26, 4294963200  ;;  %s466_s17 = sand.u32 1, %s4109_s11   ;;  %s4291_s27 = scalar_lea.vmem [#allocation6], %s3157_s12 }
  0x7d   : > { %s467_s20 = scalar_lea.sflag [#allocation7], %s466_s17 }
  0x7e   : > { %3986 = dma.done.wait (%p6921_p1), %s467_s20, 8192  }
  0x7f   : > { %3988 = vsyncadd (%p6921_p1), %s467_s20, 4294959104  ;;  %s4297_s15 = scalar_lea.vmem [#allocation8], %s3157_s12  ;;  %v4303_v1 = vld [vmem:[%s4291_s27 + $0x80] sm:$0xff]  ;;  %v4311_v5 = vld [vmem:[%s4291_s27 + $0x88] sm:$0xff]  ;;  %s3161_s18 = sshll.u32 %s4109_s11, 1 }
  0x80   : > { %v4300_v0 = vld [vmem:[%s4297_s15 + $0x80] sm:$0xff]  ;;  %v4306_v2 = vld [vmem:[%s4297_s15 + $0x88] sm:$0xff]  ;;  %v6693_v4 = vmax.f32 %v4303_v1, 0.0  ;;  %v6692_v7 = vmax.f32 %v4311_v5, 0.0  ;;  %v4368_v24 = vld [vmem:[%s4291_s27 + $0x98] sm:$0xff]  ;;  %p542_p13 = scmp.lt.s32.totalorder %s3161_s18, 3 }
  0x81   : > { %v6689_v3 = vmax.f32 %v4300_v0, 0.0  ;;  %v6688_v6 = vmax.f32 %v4306_v2, 0.0  ;;  %v4320_v8 = vld [vmem:[%s4291_s27 + $0x8] sm:$0xff]  ;;  %v4323_v9 = vld [vmem:[%s4291_s27] sm:$0xff]  ;;  %v4371_v25 = vld [vmem:[%s4291_s27 + $0x90] sm:$0xff]  ;;  %v6669_v26 = vmax.f32 %v4368_v24, 0.0 }
  0x82   : > { %1209 = vadd.xlane.f32.xlu0 %v6693_v4  ;;  %v6685_v10 = vmax.f32 %v4320_v8, 0.0  ;;  %v6684_v11 = vmax.f32 %v4323_v9, 0.0  ;;  %v4332_v12 = vld [vmem:[%s4297_s15 + $0x8] sm:$0xff]  ;;  %v4335_v13 = vld [vmem:[%s4297_s15] sm:$0xff]  ;;  %v6668_v27 = vmax.f32 %v4371_v25, 0.0  ;;  %v4380_v28 = vld [vmem:[%s4297_s15 + $0x98] sm:$0xff] }
  0x83   : > { %1639 = vadd.xlane.f32.xlu1 %v6689_v3  ;;  %v6681_v14 = vmax.f32 %v4332_v12, 0.0  ;;  %v6680_v15 = vmax.f32 %v4335_v13, 0.0  ;;  %v4344_v16 = vld [vmem:[%s4284_s1 + $0x88] sm:$0xff]  ;;  %v4347_v17 = vld [vmem:[%s4284_s1 + $0x80] sm:$0xff]  ;;  %v4383_v29 = vld [vmem:[%s4297_s15 + $0x90] sm:$0xff]  ;;  %v6665_v30 = vmax.f32 %v4380_v28, 0.0 }
  0x84   : > { %v6677_v18 = vmax.f32 %v4344_v16, 0.0  ;;  %v6676_v19 = vmax.f32 %v4347_v17, 0.0  ;;  %v4356_v20 = vld [vmem:[%s4284_s1 + $0x8] sm:$0xff]  ;;  %v4359_v21 = vld [vmem:[%s4284_s1] sm:$0xff]  ;;  %v6664_v31 = vmax.f32 %v4383_v29, 0.0  ;;  %v4392_v32 = vld [vmem:[%s4291_s27 + $0x18] sm:$0xff] }
  0x85   : > { %v6673_v22 = vmax.f32 %v4356_v20, 0.0  ;;  %v6672_v23 = vmax.f32 %v4359_v21, 0.0  ;;  %v4395_v33 = vld [vmem:[%s4291_s27 + $0x10] sm:$0xff]  ;;  %v6661_v34 = vmax.f32 %v4392_v32, 0.0  ;;  %v4404_v36 = vld [vmem:[%s4297_s15 + $0x18] sm:$0xff]  ;;  %v4440_v48 = vld [vmem:[%s4291_s27 + $0xa8] sm:$0xff] }
  0x86   : > { %1211 = vadd.xlane.f32.xlu0 %v6692_v7  ;;  %v6660_v35 = vmax.f32 %v4395_v33, 0.0  ;;  %v4407_v37 = vld [vmem:[%s4297_s15 + $0x10] sm:$0xff]  ;;  %v6657_v38 = vmax.f32 %v4404_v36, 0.0  ;;  %v4416_v40 = vld [vmem:[%s4284_s1 + $0x98] sm:$0xff]  ;;  %v4443_v49 = vld [vmem:[%s4291_s27 + $0xa0] sm:$0xff]  ;;  %v6645_v50 = vmax.f32 %v4440_v48, 0.0 }
  0x87   : > { %1641 = vadd.xlane.f32.xlu1 %v6688_v6  ;;  %v6656_v39 = vmax.f32 %v4407_v37, 0.0  ;;  %v4419_v41 = vld [vmem:[%s4284_s1 + $0x90] sm:$0xff]  ;;  %v6653_v42 = vmax.f32 %v4416_v40, 0.0  ;;  %v4428_v44 = vld [vmem:[%s4284_s1 + $0x18] sm:$0xff]  ;;  %v6644_v51 = vmax.f32 %v4443_v49, 0.0  ;;  %v4452_v52 = vld [vmem:[%s4297_s15 + $0xa8] sm:$0xff] }
  0x88   : > { %v6652_v43 = vmax.f32 %v4419_v41, 0.0  ;;  %v4431_v45 = vld [vmem:[%s4284_s1 + $0x10] sm:$0xff]  ;;  %v6649_v46 = vmax.f32 %v4428_v44, 0.0  ;;  %v4455_v53 = vld [vmem:[%s4297_s15 + $0xa0] sm:$0xff]  ;;  %v6641_v54 = vmax.f32 %v4452_v52, 0.0  ;;  %v4464_v56 = vld [vmem:[%s4291_s27 + $0x28] sm:$0xff] }
  0x89   : > { %v6648_v47 = vmax.f32 %v4431_v45, 0.0  ;;  %v6640_v55 = vmax.f32 %v4455_v53, 0.0  ;;  %6922 = vst [vmem:[#allocation19_spill] sm:$0xff] %v4464_v56  ;;  %v4467_v57 = vld [vmem:[%s4291_s27 + $0x20] sm:$0xff]  ;;  %v6642_v58 = vmax.f32 %v4464_v56, 0.0  ;;  %v4476_v60 = vld [vmem:[%s4297_s15 + $0x28] sm:$0xff] }
  0x8a   : > { %1177 = vadd.xlane.f32.xlu0 %v6684_v11  ;;  %6923 = vst [vmem:[#allocation20_spill] sm:$0xff] %v4467_v57  ;;  %v6643_v59 = vmax.f32 %v4467_v57, 0.0  ;;  %6924 = vst [vmem:[#allocation21_spill] sm:$0xff] %v4476_v60  ;;  %v4479_v61 = vld [vmem:[%s4297_s15 + $0x20] sm:$0xff]  ;;  %v6646_v62 = vmax.f32 %v4476_v60, 0.0  ;;  %v4620_v11 = vld [vmem:[%s4297_s15 + $0x48] sm:$0xff] }
  0x8b   : > { %1179 = vadd.xlane.f32.xlu1 %v6685_v10  ;;  %6925 = vst [vmem:[#allocation22_spill] sm:$0xff] %v4479_v61  ;;  %v6647_v63 = vmax.f32 %v4479_v61, 0.0  ;;  %6948 = vst [vmem:[#allocation45_spill] sm:$0xff] %v4620_v11  ;;  %v4623_v10 = vld [vmem:[%s4297_s15 + $0x40] sm:$0xff]  ;;  %v4632_v6 = vld [vmem:[%s4284_s1 + $0xc8] sm:$0xff]  ;;  %v6988_v57 = vmax.f32 %v4303_v1, 0.0 }
  0x8c   : > { %6949 = vst [vmem:[#allocation46_spill] sm:$0xff] %v4623_v10  ;;  %6950 = vst [vmem:[#allocation47_spill] sm:$0xff] %v4632_v6  ;;  %v4635_v3 = vld [vmem:[%s4284_s1 + $0xc0] sm:$0xff]  ;;  %v4644_v7 = vld [vmem:[%s4284_s1 + $0x48] sm:$0xff]  ;;  %s7375_s18 = smov (!%p542_p13, %s3161_s18), 3  ;;  %s3160_s17 = sshll.u32 %s4280_s16, 1 }
  0x8d   : > { %6951 = vst [vmem:[#allocation48_spill] sm:$0xff] %v4635_v3  ;;  %6952 = vst [vmem:[#allocation49_spill] sm:$0xff] %v4644_v7  ;;  %v4647_v4 = vld [vmem:[%s4284_s1 + $0x40] sm:$0xff]  ;;  %v4908_v61 = vld [vmem:[%s4284_s1 + $0x70] sm:$0xff]  ;;  %s544_s28 = scalar_lea.vmem %s6615_s3, %s7375_s18  ;;  %s549_s26 = scalar_lea.vmem %s6616_s4, %s7375_s18 }
  0x8e   : > { %1607 = vadd.xlane.f32.xlu0 %v6680_v15  ;;  %v4608_v15 = vld [vmem:[%s4291_s27 + $0x48] sm:$0xff]  ;;  %6953 = vst [vmem:[#allocation50_spill] sm:$0xff] %v4647_v4  ;;  %s7361_s20 = sld [smem:[#allocation17_spill]]  ;;  %s7362_s30 = sld [smem:[#allocation93_spill]] }
  0x8f   : > { %1609 = vadd.xlane.f32.xlu1 %v6681_v14  ;;  %6946 = vst [vmem:[#allocation43_spill] sm:$0xff] %v4608_v15  ;;  %v4611_v14 = vld [vmem:[%s4291_s27 + $0x40] sm:$0xff]  ;;  %s2999_s29 = scalar_lea.sflag [#allocation5], %s4280_s16 }
  0x90   : > { %6947 = vst [vmem:[#allocation44_spill] sm:$0xff] %v4611_v14 }
  0x92   : > { %778 = vadd.xlane.f32.xlu0 %v6676_v19  ;;  %v4596_v19 = vld [vmem:[%s4297_s15 + $0xc8] sm:$0xff] }
  0x93   : > { %780 = vadd.xlane.f32.xlu1 %v6677_v18  ;;  %6944 = vst [vmem:[#allocation41_spill] sm:$0xff] %v4596_v19  ;;  %v4599_v18 = vld [vmem:[%s4297_s15 + $0xc0] sm:$0xff] }
  0x94   : > { %6945 = vst [vmem:[#allocation42_spill] sm:$0xff] %v4599_v18  ;;  %p7363_p6 = scmp.ne.s32.totalorder %s7361_s20, 0 }
  0x96   : > { %746 = vadd.xlane.f32.xlu0 %v6672_v23  ;;  %v4584_v23 = vld [vmem:[%s4291_s27 + $0xc8] sm:$0xff] }
  0x97   : > { %748 = vadd.xlane.f32.xlu1 %v6673_v22  ;;  %6942 = vst [vmem:[#allocation39_spill] sm:$0xff] %v4584_v23  ;;  %v4587_v22 = vld [vmem:[%s4291_s27 + $0xc0] sm:$0xff] }
  0x98   : > { %6943 = vst [vmem:[#allocation40_spill] sm:$0xff] %v4587_v22 }
  0x9a   : > { %1213 = vadd.xlane.f32.xlu0 %v6668_v27  ;;  %v4572_v27 = vld [vmem:[%s4284_s1 + $0x38] sm:$0xff] }
  0x9b   : > { %1215 = vadd.xlane.f32.xlu1 %v6669_v26  ;;  %6940 = vst [vmem:[#allocation37_spill] sm:$0xff] %v4572_v27  ;;  %v4575_v26 = vld [vmem:[%s4284_s1 + $0x30] sm:$0xff] }
  0x9c   : > { %6941 = vst [vmem:[#allocation38_spill] sm:$0xff] %v4575_v26 }
  0x9e   : > { %1643 = vadd.xlane.f32.xlu0 %v6664_v31  ;;  %v4560_v31 = vld [vmem:[%s4284_s1 + $0xb8] sm:$0xff] }
  0x9f   : > { %1645 = vadd.xlane.f32.xlu1 %v6665_v30  ;;  %6938 = vst [vmem:[#allocation35_spill] sm:$0xff] %v4560_v31  ;;  %v4563_v30 = vld [vmem:[%s4284_s1 + $0xb0] sm:$0xff] }
  0xa0   : > { %6939 = vst [vmem:[#allocation36_spill] sm:$0xff] %v4563_v30 }
  0xa2   : > { %1181 = vadd.xlane.f32.xlu0 %v6660_v35  ;;  %v4548_v35 = vld [vmem:[%s4297_s15 + $0x38] sm:$0xff] }
  0xa3   : > { %1183 = vadd.xlane.f32.xlu1 %v6661_v34  ;;  %6936 = vst [vmem:[#allocation33_spill] sm:$0xff] %v4548_v35  ;;  %v4551_v34 = vld [vmem:[%s4297_s15 + $0x30] sm:$0xff] }
  0xa4   : > { %6937 = vst [vmem:[#allocation34_spill] sm:$0xff] %v4551_v34 }
  0xa6   : > { %1611 = vadd.xlane.f32.xlu0 %v6656_v39  ;;  %v4536_v39 = vld [vmem:[%s4291_s27 + $0x38] sm:$0xff] }
  0xa7   : > { %1613 = vadd.xlane.f32.xlu1 %v6657_v38  ;;  %6934 = vst [vmem:[#allocation31_spill] sm:$0xff] %v4536_v39  ;;  %v4539_v38 = vld [vmem:[%s4291_s27 + $0x30] sm:$0xff] }
  0xa8   : > { %6935 = vst [vmem:[#allocation32_spill] sm:$0xff] %v4539_v38 }
  0xaa   : > { %782 = vadd.xlane.f32.xlu0 %v6652_v43  ;;  %v4524_v43 = vld [vmem:[%s4297_s15 + $0xb8] sm:$0xff] }
  0xab   : > { %784 = vadd.xlane.f32.xlu1 %v6653_v42  ;;  %6932 = vst [vmem:[#allocation29_spill] sm:$0xff] %v4524_v43  ;;  %v4527_v42 = vld [vmem:[%s4297_s15 + $0xb0] sm:$0xff] }
  0xac   : > { %6933 = vst [vmem:[#allocation30_spill] sm:$0xff] %v4527_v42 }
  0xae   : > { %750 = vadd.xlane.f32.xlu0 %v6648_v47  ;;  %v4512_v47 = vld [vmem:[%s4291_s27 + $0xb8] sm:$0xff] }
  0xaf   : > { %752 = vadd.xlane.f32.xlu1 %v6649_v46  ;;  %6930 = vst [vmem:[#allocation27_spill] sm:$0xff] %v4512_v47  ;;  %v4515_v46 = vld [vmem:[%s4291_s27 + $0xb0] sm:$0xff] }
  0xb0   : > { %6931 = vst [vmem:[#allocation28_spill] sm:$0xff] %v4515_v46 }
  0xb2   : > { %1217 = vadd.xlane.f32.xlu0 %v6644_v51  ;;  %v4500_v51 = vld [vmem:[%s4284_s1 + $0x28] sm:$0xff] }
  0xb3   : > { %1219 = vadd.xlane.f32.xlu1 %v6645_v50  ;;  %6928 = vst [vmem:[#allocation25_spill] sm:$0xff] %v4500_v51  ;;  %v4503_v50 = vld [vmem:[%s4284_s1 + $0x20] sm:$0xff] }
  0xb4   : > { %6929 = vst [vmem:[#allocation26_spill] sm:$0xff] %v4503_v50 }
  0xb6   : > { %1647 = vadd.xlane.f32.xlu0 %v6640_v55  ;;  %v4488_v55 = vld [vmem:[%s4284_s1 + $0xa8] sm:$0xff] }
  0xb7   : > { %1649 = vadd.xlane.f32.xlu1 %v6641_v54  ;;  %6926 = vst [vmem:[#allocation23_spill] sm:$0xff] %v4488_v55  ;;  %v4491_v54 = vld [vmem:[%s4284_s1 + $0xa0] sm:$0xff] }
  0xb8   : > { %6927 = vst [vmem:[#allocation24_spill] sm:$0xff] %v4491_v54 }
  0xba   : > { %1185 = vadd.xlane.f32.xlu0 %v6643_v59  ;;  %v6651_v59 = vmax.f32 %v4491_v54, 0.0 }
  0xbb   : > { %1187 = vadd.xlane.f32.xlu1 %v6642_v58  ;;  %v6650_v58 = vmax.f32 %v4488_v55, 0.0  ;;  %v4905_v55 = vld [vmem:[%s4284_s1 + $0x78] sm:$0xff] }
  0xbe   : > { %1615 = vadd.xlane.f32.xlu0 %v6647_v63  ;;  %v6655_v63 = vmax.f32 %v4503_v50, 0.0  ;;  %v4888_v50 = vld [vmem:[%s4284_s1 + $0xf8] sm:$0xff] }
  0xbf   : > { %1617 = vadd.xlane.f32.xlu1 %v6646_v62  ;;  %v6654_v62 = vmax.f32 %v4500_v51, 0.0  ;;  %6986 = vst [vmem:[#allocation83_spill] sm:$0xff] %v4888_v50  ;;  %v4891_v51 = vld [vmem:[%s4284_s1 + $0xf0] sm:$0xff] }
  0xc0   : > { %6987 = vst [vmem:[#allocation84_spill] sm:$0xff] %v4891_v51 }
  0xc2   : > { %786 = vadd.xlane.f32.xlu0 %v6651_v59  ;;  %v6659_v59 = vmax.f32 %v4515_v46, 0.0  ;;  %v4872_v46 = vld [vmem:[%s4297_s15 + $0x78] sm:$0xff] }
  0xc3   : > { %788 = vadd.xlane.f32.xlu1 %v6650_v58  ;;  %v6658_v58 = vmax.f32 %v4512_v47, 0.0  ;;  %6984 = vst [vmem:[#allocation81_spill] sm:$0xff] %v4872_v46  ;;  %v4875_v47 = vld [vmem:[%s4297_s15 + $0x70] sm:$0xff] }
  0xc4   : > { %6985 = vst [vmem:[#allocation82_spill] sm:$0xff] %v4875_v47 }
  0xc6   : > { %754 = vadd.xlane.f32.xlu0 %v6655_v63  ;;  %v6663_v63 = vmax.f32 %v4527_v42, 0.0  ;;  %v4856_v42 = vld [vmem:[%s4291_s27 + $0x78] sm:$0xff] }
  0xc7   : > { %756 = vadd.xlane.f32.xlu1 %v6654_v62  ;;  %v6662_v62 = vmax.f32 %v4524_v43, 0.0  ;;  %6982 = vst [vmem:[#allocation79_spill] sm:$0xff] %v4856_v42  ;;  %v4859_v43 = vld [vmem:[%s4291_s27 + $0x70] sm:$0xff] }
  0xc8   : > { %6983 = vst [vmem:[#allocation80_spill] sm:$0xff] %v4859_v43 }
  0xca   : > { %1221 = vadd.xlane.f32.xlu0 %v6659_v59  ;;  %v6667_v59 = vmax.f32 %v4539_v38, 0.0  ;;  %v4840_v38 = vld [vmem:[%s4297_s15 + $0xf8] sm:$0xff] }
  0xcb   : > { %1223 = vadd.xlane.f32.xlu1 %v6658_v58  ;;  %v6666_v58 = vmax.f32 %v4536_v39, 0.0  ;;  %6980 = vst [vmem:[#allocation77_spill] sm:$0xff] %v4840_v38  ;;  %v4843_v39 = vld [vmem:[%s4297_s15 + $0xf0] sm:$0xff] }
  0xcc   : > { %6981 = vst [vmem:[#allocation78_spill] sm:$0xff] %v4843_v39 }
  0xce   : > { %1651 = vadd.xlane.f32.xlu0 %v6663_v63  ;;  %v6671_v63 = vmax.f32 %v4551_v34, 0.0  ;;  %v4824_v34 = vld [vmem:[%s4291_s27 + $0xf8] sm:$0xff] }
  0xcf   : > { %1653 = vadd.xlane.f32.xlu1 %v6662_v62  ;;  %v6670_v62 = vmax.f32 %v4548_v35, 0.0  ;;  %6978 = vst [vmem:[#allocation75_spill] sm:$0xff] %v4824_v34  ;;  %v4827_v35 = vld [vmem:[%s4291_s27 + $0xf0] sm:$0xff] }
  0xd0   : > { %6979 = vst [vmem:[#allocation76_spill] sm:$0xff] %v4827_v35 }
  0xd2   : > { %1189 = vadd.xlane.f32.xlu0 %v6667_v59  ;;  %v6675_v59 = vmax.f32 %v4563_v30, 0.0  ;;  %v4808_v30 = vld [vmem:[%s4284_s1 + $0x68] sm:$0xff] }
  0xd3   : > { %1191 = vadd.xlane.f32.xlu1 %v6666_v58  ;;  %v6674_v58 = vmax.f32 %v4560_v31, 0.0  ;;  %6976 = vst [vmem:[#allocation73_spill] sm:$0xff] %v4808_v30  ;;  %v4811_v31 = vld [vmem:[%s4284_s1 + $0x60] sm:$0xff] }
  0xd4   : > { %6977 = vst [vmem:[#allocation74_spill] sm:$0xff] %v4811_v31 }
  0xd6   : > { %1619 = vadd.xlane.f32.xlu0 %v6671_v63  ;;  %v6679_v63 = vmax.f32 %v4575_v26, 0.0  ;;  %v4792_v26 = vld [vmem:[%s4284_s1 + $0xe8] sm:$0xff] }
  0xd7   : > { %1621 = vadd.xlane.f32.xlu1 %v6670_v62  ;;  %v6678_v62 = vmax.f32 %v4572_v27, 0.0  ;;  %6974 = vst [vmem:[#allocation71_spill] sm:$0xff] %v4792_v26  ;;  %v4795_v27 = vld [vmem:[%s4284_s1 + $0xe0] sm:$0xff] }
  0xd8   : > { %6975 = vst [vmem:[#allocation72_spill] sm:$0xff] %v4795_v27 }
  0xda   : > { %790 = vadd.xlane.f32.xlu0 %v6675_v59  ;;  %v6683_v59 = vmax.f32 %v4587_v22, 0.0  ;;  %v4776_v22 = vld [vmem:[%s4297_s15 + $0x68] sm:$0xff] }
  0xdb   : > { %792 = vadd.xlane.f32.xlu1 %v6674_v58  ;;  %v6682_v58 = vmax.f32 %v4584_v23, 0.0  ;;  %6972 = vst [vmem:[#allocation69_spill] sm:$0xff] %v4776_v22  ;;  %v4779_v23 = vld [vmem:[%s4297_s15 + $0x60] sm:$0xff] }
  0xdc   : > { %6973 = vst [vmem:[#allocation70_spill] sm:$0xff] %v4779_v23 }
  0xde   : > { %758 = vadd.xlane.f32.xlu0 %v6679_v63  ;;  %v6687_v63 = vmax.f32 %v4599_v18, 0.0  ;;  %v4760_v18 = vld [vmem:[%s4291_s27 + $0x68] sm:$0xff] }
  0xdf   : > { %760 = vadd.xlane.f32.xlu1 %v6678_v62  ;;  %v6686_v62 = vmax.f32 %v4596_v19, 0.0  ;;  %6970 = vst [vmem:[#allocation67_spill] sm:$0xff] %v4760_v18  ;;  %v4763_v19 = vld [vmem:[%s4291_s27 + $0x60] sm:$0xff] }
  0xe0   : > { %6971 = vst [vmem:[#allocation68_spill] sm:$0xff] %v4763_v19 }
  0xe2   : > { %1225 = vadd.xlane.f32.xlu0 %v6683_v59  ;;  %v6691_v59 = vmax.f32 %v4611_v14, 0.0  ;;  %v4744_v14 = vld [vmem:[%s4297_s15 + $0xe8] sm:$0xff] }
  0xe3   : > { %1227 = vadd.xlane.f32.xlu1 %v6682_v58  ;;  %v6690_v58 = vmax.f32 %v4608_v15, 0.0  ;;  %6968 = vst [vmem:[#allocation65_spill] sm:$0xff] %v4744_v14  ;;  %v4747_v15 = vld [vmem:[%s4297_s15 + $0xe0] sm:$0xff] }
  0xe4   : > { %6969 = vst [vmem:[#allocation66_spill] sm:$0xff] %v4747_v15 }
  0xe6   : > { %1655 = vadd.xlane.f32.xlu0 %v6687_v63  ;;  %v6695_v63 = vmax.f32 %v4623_v10, 0.0  ;;  %v4656_v10 = vld [vmem:[%s4291_s27 + $0xd8] sm:$0xff] }
  0xe7   : > { %1657 = vadd.xlane.f32.xlu1 %v6686_v62  ;;  %v6694_v62 = vmax.f32 %v4620_v11, 0.0  ;;  %6954 = vst [vmem:[#allocation51_spill] sm:$0xff] %v4656_v10  ;;  %v4659_v11 = vld [vmem:[%s4291_s27 + $0xd0] sm:$0xff] }
  0xe8   : > { %6955 = vst [vmem:[#allocation52_spill] sm:$0xff] %v4659_v11 }
  0xea   : > { %1193 = vadd.xlane.f32.xlu0 %v6691_v59  ;;  %v6699_v59 = vmax.f32 %v4635_v3, 0.0  ;;  %v4668_v3 = vld [vmem:[%s4297_s15 + $0xd8] sm:$0xff] }
  0xeb   : > { %1195 = vadd.xlane.f32.xlu1 %v6690_v58  ;;  %v6698_v58 = vmax.f32 %v4632_v6, 0.0  ;;  %6956 = vst [vmem:[#allocation53_spill] sm:$0xff] %v4668_v3  ;;  %v4671_v6 = vld [vmem:[%s4297_s15 + $0xd0] sm:$0xff] }
  0xec   : > { %6957 = vst [vmem:[#allocation54_spill] sm:$0xff] %v4671_v6 }
  0xee   : > { %1623 = vadd.xlane.f32.xlu0 %v6695_v63  ;;  %v6703_v63 = vmax.f32 %v4647_v4, 0.0  ;;  %v4680_v4 = vld [vmem:[%s4291_s27 + $0x58] sm:$0xff] }
  0xef   : > { %1625 = vadd.xlane.f32.xlu1 %v6694_v62  ;;  %v6702_v62 = vmax.f32 %v4644_v7, 0.0  ;;  %6958 = vst [vmem:[#allocation55_spill] sm:$0xff] %v4680_v4  ;;  %v4683_v7 = vld [vmem:[%s4291_s27 + $0x50] sm:$0xff] }
  0xf0   : > { %6959 = vst [vmem:[#allocation56_spill] sm:$0xff] %v4683_v7 }
  0xf2   : > { %794 = vadd.xlane.f32.xlu0 %v6699_v59  ;;  %v6707_v59 = vmax.f32 %v4659_v11, 0.0  ;;  %v4692_v11 = vld [vmem:[%s4297_s15 + $0x58] sm:$0xff] }
  0xf3   : > { %796 = vadd.xlane.f32.xlu1 %v6698_v58  ;;  %v6706_v58 = vmax.f32 %v4656_v10, 0.0  ;;  %6960 = vst [vmem:[#allocation57_spill] sm:$0xff] %v4692_v11  ;;  %v4695_v10 = vld [vmem:[%s4297_s15 + $0x50] sm:$0xff]  ;;  %s537_s15 = scalar_lea.vmem [#allocation9], %s3160_s17 }
  0xf4   : > { %6961 = vst [vmem:[#allocation58_spill] sm:$0xff] %v4695_v10  ;;  %s3013_s14 = sshll.u32 %s537_s15, 4  ;;  %s6570_s14 = int_to_ptr.vmem [resolvable:$true] %s3013_s14 }
  0xf5   : > { %s3937_s18 = scalar_lea.vmem %s6570_s14, 32 }
  0xf6   : > { %762 = vadd.xlane.f32.xlu0 %v6703_v63  ;;  %v6711_v63 = vmax.f32 %v4671_v6, 0.0  ;;  %v4704_v6 = vld [vmem:[%s4284_s1 + $0xd8] sm:$0xff]  ;;  %p3938_p7 = scmp.ne.s32.totalorder %s6570_s14, %s3937_s18 }
  0xf7   : > { %764 = vadd.xlane.f32.xlu1 %v6702_v62  ;;  %v6710_v62 = vmax.f32 %v4668_v3, 0.0  ;;  %6962 = vst [vmem:[#allocation59_spill] sm:$0xff] %v4704_v6  ;;  %v4707_v3 = vld [vmem:[%s4284_s1 + $0xd0] sm:$0xff] }
  0xf8   : > { %6963 = vst [vmem:[#allocation60_spill] sm:$0xff] %v4707_v3  ;;  %p3939_p9 = pnand %p3938_p7, %p7363_p6 }
  0xfa   : > { %1229 = vadd.xlane.f32.xlu0 %v6707_v59  ;;  %v6715_v59 = vmax.f32 %v4683_v7, 0.0  ;;  %v4716_v7 = vld [vmem:[%s4284_s1 + $0x58] sm:$0xff]  ;;  %p3940_p12 = pneg %p3939_p9 }
  0xfb   : > { %1231 = vadd.xlane.f32.xlu1 %v6706_v58  ;;  %v6714_v58 = vmax.f32 %v4680_v4, 0.0  ;;  %6964 = vst [vmem:[#allocation61_spill] sm:$0xff] %v4716_v7  ;;  %v4719_v4 = vld [vmem:[%s4284_s1 + $0x50] sm:$0xff]  ;;  %s2967_s1 = sld [smem:[#allocation2]] }
  0xfc   : > { %6965 = vst [vmem:[#allocation62_spill] sm:$0xff] %v4719_v4 }
  0xfe   : > { %1659 = vadd.xlane.f32.xlu0 %v6711_v63  ;;  %v6719_v63 = vmax.f32 %v4695_v10, 0.0  ;;  %v4728_v10 = vld [vmem:[%s4291_s27 + $0xe8] sm:$0xff] }
  0xff   : > { %1661 = vadd.xlane.f32.xlu1 %v6710_v62  ;;  %v6718_v62 = vmax.f32 %v4692_v11, 0.0  ;;  %6966 = vst [vmem:[#allocation63_spill] sm:$0xff] %v4728_v10  ;;  %v4731_v11 = vld [vmem:[%s4291_s27 + $0xe0] sm:$0xff]  ;;  %s3177_s27 = sshll.u32 %s4109_s11, 5  ;;  %s4019_s11 = smov [#allocation9]  }
 0x100   : > { %6967 = vst [vmem:[#allocation64_spill] sm:$0xff] %v4731_v11  ;;  %s6568_s22 = scalar_lea.hbm %s7362_s30, %s3177_s27  ;;  %s3941_s19 = sshll.u32 %s4019_s11, 4  ;;  %s3942_s19 = int_to_ptr.vmem [resolvable:$false] %s3941_s19 }
 0x101   : > { %s3943_s0 = scalar_lea.vmem %s3942_s19, 64  ;;  %p3944_p0 = scmp.lt.s32.totalorder %s6570_s14, %s3942_s19 }
 0x102   : > { %1197 = vadd.xlane.f32.xlu0 %v6715_v59  ;;  %v6723_v59 = vmax.f32 %v4707_v3, 0.0  ;;  %p3945_p8 = scmp.lt.s32.totalorder %s3943_s0, %s3937_s18 }
 0x103   : > { %1199 = vadd.xlane.f32.xlu1 %v6714_v58  ;;  %v6722_v58 = vmax.f32 %v4704_v6, 0.0 }
 0x104   : > { %p3946_p10 = por %p3945_p8, %p3944_p0 }
 0x106   : > { %1627 = vadd.xlane.f32.xlu0 %v6719_v63  ;;  %v6728_v63 = vmax.f32 %v4719_v4, 0.0  ;;  %p3947_p11 = pnand %p3946_p10, %p3940_p12 }
 0x107   : > { %1629 = vadd.xlane.f32.xlu1 %v6718_v62  ;;  %v6729_v62 = vmax.f32 %v4716_v7, 0.0 }
 0x10a   : > { %798 = vadd.xlane.f32.xlu0 %v6723_v59  ;;  %v6734_v59 = vmax.f32 %v4731_v11, 0.0 }
 0x10b   : > { %800 = vadd.xlane.f32.xlu1 %v6722_v58  ;;  %v6735_v58 = vmax.f32 %v4728_v10, 0.0 }
 0x10e   : > { %766 = vadd.xlane.f32.xlu0 %v6728_v63  ;;  %v6741_v63 = vmax.f32 %v4744_v14, 0.0 }
 0x10f   : > { %768 = vadd.xlane.f32.xlu1 %v6729_v62  ;;  %v4741_v6 = vpop.xlane.xlu0 %1209  ;;  %v6740_v62 = vmax.f32 %v4747_v15, 0.0 }
 0x110   : > { %v4739_v3 = vpop.xlane.xlu1 %1639 }
 0x112   : > { %1233 = vadd.xlane.f32.xlu0 %v6734_v59  ;;  %v6747_v59 = vmax.f32 %v4760_v18, 0.0 }
 0x113   : > { %1235 = vadd.xlane.f32.xlu1 %v6735_v58  ;;  %v4757_v7 = vpop.xlane.xlu0 %1211  ;;  %v6746_v58 = vmax.f32 %v4763_v19, 0.0 }
 0x114   : > { %v4755_v4 = vpop.xlane.xlu1 %1641 }
 0x116   : > { %1663 = vadd.xlane.f32.xlu0 %v6740_v62  ;;  %v6753_v62 = vmax.f32 %v4776_v22, 0.0 }
 0x117   : > { %1665 = vadd.xlane.f32.xlu1 %v6741_v63  ;;  %v4773_v10 = vpop.xlane.xlu0 %1177  ;;  %v6752_v63 = vmax.f32 %v4779_v23, 0.0 }
 0x118   : > { %v4771_v11 = vpop.xlane.xlu1 %1179 }
 0x11a   : > { %1201 = vadd.xlane.f32.xlu0 %v6746_v58  ;;  %v6759_v58 = vmax.f32 %v4792_v26, 0.0 }
 0x11b   : > { %1203 = vadd.xlane.f32.xlu1 %v6747_v59  ;;  %v4789_v14 = vpop.xlane.xlu0 %1607  ;;  %v6758_v59 = vmax.f32 %v4795_v27, 0.0 }
 0x11c   : > { %v4787_v15 = vpop.xlane.xlu1 %1609 }
 0x11e   : > { %1631 = vadd.xlane.f32.xlu0 %v6752_v63  ;;  %v6765_v63 = vmax.f32 %v4808_v30, 0.0 }
 0x11f   : > { %1633 = vadd.xlane.f32.xlu1 %v6753_v62  ;;  %v4805_v18 = vpop.xlane.xlu0 %778  ;;  %v6764_v62 = vmax.f32 %v4811_v31, 0.0 }
 0x120   : > { %v4803_v19 = vpop.xlane.xlu1 %780 }
 0x122   : > { %802 = vadd.xlane.f32.xlu0 %v6758_v59  ;;  %v6771_v59 = vmax.f32 %v4824_v34, 0.0 }
 0x123   : > { %804 = vadd.xlane.f32.xlu1 %v6759_v58  ;;  %v4821_v22 = vpop.xlane.xlu0 %746  ;;  %v6770_v58 = vmax.f32 %v4827_v35, 0.0 }
 0x124   : > { %v4819_v23 = vpop.xlane.xlu1 %748 }
 0x126   : > { %770 = vadd.xlane.f32.xlu0 %v6764_v62  ;;  %v6777_v62 = vmax.f32 %v4840_v38, 0.0 }
 0x127   : > { %772 = vadd.xlane.f32.xlu1 %v6765_v63  ;;  %v4837_v26 = vpop.xlane.xlu0 %1213  ;;  %v6776_v63 = vmax.f32 %v4843_v39, 0.0 }
 0x128   : > { %v4835_v27 = vpop.xlane.xlu1 %1215 }
 0x12a   : > { %1237 = vadd.xlane.f32.xlu0 %v6770_v58  ;;  %v6783_v58 = vmax.f32 %v4856_v42, 0.0 }
 0x12b   : > { %1239 = vadd.xlane.f32.xlu1 %v6771_v59  ;;  %v4853_v30 = vpop.xlane.xlu0 %1643  ;;  %v6782_v59 = vmax.f32 %v4859_v43, 0.0  ;;  %v1257_v43 = vmul.f32 0.0078125, %v4741_v6  ;;  %v6800_v6 = vmax.f32 %v4908_v61, 0.0 }
 0x12c   : > { %v4851_v31 = vpop.xlane.xlu1 %1645 }
 0x12d   : > { %v4924_v56 = vsub.f32 %v6988_v57, %v1257_v43  ;;  %v1241_v57 = vmul.f32 0.0078125, %v4773_v10 }
 0x12e   : > { %1667 = vadd.xlane.f32.xlu0 %v6776_v63  ;;  %v6791_v63 = vmax.f32 %v4872_v46, 0.0  ;;  %v1258_v46 = vmul.f32 0.0078125, %v4757_v7  ;;  %v1688_v7 = vmul.f32 0.0078125, %v4755_v4 }
 0x12f   : > { %1669 = vadd.xlane.f32.xlu1 %v6777_v62  ;;  %v4869_v34 = vpop.xlane.xlu0 %1181  ;;  %v6790_v62 = vmax.f32 %v4875_v47, 0.0  ;;  %v1321_v4 = vmul.f32 %v4924_v56, %v4924_v56 }
 0x130   : > { %v4867_v35 = vpop.xlane.xlu1 %1183 }
 0x132   : > { %1205 = vadd.xlane.f32.xlu0 %v6782_v59  ;;  %v6796_v59 = vmax.f32 %v4888_v50, 0.0 }
 0x133   : > { %1207 = vadd.xlane.f32.xlu1 %v6783_v58  ;;  %v4885_v38 = vpop.xlane.xlu0 %1611  ;;  %v6798_v58 = vmax.f32 %v4891_v51, 0.0 }
 0x134   : > { %v4883_v39 = vpop.xlane.xlu1 %1613 }
 0x136   : > { %1635 = vadd.xlane.f32.xlu0 %v6790_v62  ;;  %v6801_v62 = vmax.f32 %v4905_v55, 0.0 }
 0x137   : > { %1637 = vadd.xlane.f32.xlu1 %v6791_v63  ;;  %v4902_v54 = vpop.xlane.xlu0 %782  ;;  %v1687_v63 = vmul.f32 0.0078125, %v4739_v3  ;;  %v6990_v3 = vmax.f32 %v4300_v0, 0.0 }
 0x138   : > { %v4900_v42 = vpop.xlane.xlu1 %784 }
 0x13a   : > { %806 = vadd.xlane.f32.xlu0 %v6798_v58  ;;  %v4937_v58 = vsub.f32 %v6990_v3, %v1687_v63  ;;  %v1671_v63 = vmul.f32 0.0078125, %v4789_v14  ;;  %v6994_v14 = vmax.f32 %v4332_v12, 0.0 }
 0x13b   : > { %808 = vadd.xlane.f32.xlu1 %v6796_v59  ;;  %v4920_v60 = vpop.xlane.xlu0 %750  ;;  %v6989_v59 = vmax.f32 %v4311_v5, 0.0  ;;  %v6991_v5 = vmax.f32 %v4306_v2, 0.0  ;;  %v6992_v2 = vmax.f32 %v4320_v8, 0.0  ;;  %v6996_v8 = vmax.f32 %v4335_v13, 0.0 }
 0x13c   : > { %v4918_v47 = vpop.xlane.xlu1 %752 }
 0x13d   : > { %v4929_v51 = vsub.f32 %v6989_v59, %v1258_v46  ;;  %v4947_v43 = vsub.f32 %v6991_v5, %v1688_v7  ;;  %v1242_v46 = vmul.f32 0.0078125, %v4771_v11  ;;  %v1672_v59 = vmul.f32 0.0078125, %v4787_v15 }
 0x13e   : > { %774 = vadd.xlane.f32.xlu0 %v6800_v6  ;;  %v6993_v11 = vmax.f32 %v4323_v9, 0.0  ;;  %v1751_v15 = vmul.f32 %v4937_v58, %v4937_v58 }
 0x13f   : > { %776 = vadd.xlane.f32.xlu1 %v6801_v62  ;;  %v4941_v1 = vpop.xlane.xlu0 %1217  ;;  %v1322_v0 = vmul.f32 %v4929_v51, %v4929_v51  ;;  %v4961_v7 = vsub.f32 %v6992_v2, %v1242_v46  ;;  %v1752_v5 = vmul.f32 %v4947_v43, %v4947_v43  ;;  %v4977_v46 = vsub.f32 %v6996_v8, %v1671_v63 }
 0x140   : > { %v4939_v50 = vpop.xlane.xlu1 %1219  ;;  %v4965_v10 = vsub.f32 %v6993_v11, %v1241_v57  ;;  %v828_v57 = vmul.f32 0.0078125, %v4803_v19  ;;  %v827_v2 = vmul.f32 0.0078125, %v4805_v18  ;;  %v6998_v18 = vmax.f32 %v4344_v16, 0.0 }
 0x141   : > { %6997 = vst [vmem:[#allocation86_spill] sm:$0xff] %v4977_v46  ;;  %v1306_v11 = vmul.f32 %v4961_v7, %v4961_v7  ;;  %v1735_v19 = vmul.f32 %v4977_v46, %v4977_v46  ;;  %v812_v8 = vmul.f32 0.0078125, %v4819_v23  ;;  %v1259_v62 = vmul.f32 0.0078125, %v4837_v26 }
 0x142   : > { %1369 = vadd.xlane.f32.xlu0 %v1321_v4  ;;  %v4973_v4 = vsub.f32 %v6994_v14, %v1672_v59  ;;  %v1305_v12 = vmul.f32 %v4965_v10, %v4965_v10  ;;  %v7000_v16 = vmax.f32 %v4356_v20, 0.0  ;;  %v7002_v26 = vmax.f32 %v4368_v24, 0.0 }
 0x143   : > { %1371 = vadd.xlane.f32.xlu1 %v1322_v0  ;;  %v4957_v6 = vpop.xlane.xlu0 %1647  ;;  %v7003_v20 = vmax.f32 %v4371_v25, 0.0 }
 0x144   : > { %v4955_v3 = vpop.xlane.xlu1 %1649  ;;  %6995 = vst [vmem:[#allocation85_spill] sm:$0xff] %v4973_v4  ;;  %v1736_v63 = vmul.f32 %v4973_v4, %v4973_v4 }
 0x146   : > { %1799 = vadd.xlane.f32.xlu0 %v1751_v15  ;;  %v6999_v15 = vmax.f32 %v4347_v17, 0.0  ;;  %v7001_v17 = vmax.f32 %v4359_v21, 0.0 }
 0x147   : > { %1801 = vadd.xlane.f32.xlu1 %v1752_v5  ;;  %v4981_v9 = vpop.xlane.xlu0 %1185  ;;  %v4999_v5 = vsub.f32 %v6998_v18, %v828_v57  ;;  %v5015_v57 = vsub.f32 %v7000_v16, %v812_v8  ;;  %v1690_v18 = vmul.f32 0.0078125, %v4851_v31  ;;  %v7005_v16 = vmax.f32 %v4383_v29, 0.0 }
 0x148   : > { %v4979_v0 = vpop.xlane.xlu1 %1187  ;;  %v5003_v14 = vsub.f32 %v6999_v15, %v827_v2  ;;  %v1689_v15 = vmul.f32 0.0078125, %v4853_v30  ;;  %v7004_v30 = vmax.f32 %v4380_v28, 0.0  ;;  %v7006_v28 = vmax.f32 %v4392_v32, 0.0 }
 0x149   : > { %v876_v8 = vmul.f32 %v5015_v57, %v5015_v57  ;;  %v7007_v29 = vmax.f32 %v4395_v33, 0.0  ;;  %v7009_v32 = vmax.f32 %v4407_v37, 0.0 }
 0x14a   : > { %1337 = vadd.xlane.f32.xlu0 %v1305_v12  ;;  %v1260_v12 = vmul.f32 0.0078125, %v4835_v27  ;;  %v891_v23 = vmul.f32 %v5003_v14, %v5003_v14 }
 0x14b   : > { %1339 = vadd.xlane.f32.xlu1 %v1306_v11  ;;  %v4991_v13 = vpop.xlane.xlu0 %1615  ;;  %v811_v11 = vmul.f32 0.0078125, %v4821_v22  ;;  %v892_v22 = vmul.f32 %v4999_v5, %v4999_v5 }
 0x14c   : > { %v4989_v59 = vpop.xlane.xlu1 %1617  ;;  %v5027_v27 = vsub.f32 %v7002_v26, %v1260_v12  ;;  %v5053_v12 = vsub.f32 %v7004_v30, %v1690_v18  ;;  %v1674_v26 = vmul.f32 0.0078125, %v4883_v39  ;;  %v830_v30 = vmul.f32 0.0078125, %v4900_v42 }
 0x14d   : > { %v5019_v2 = vsub.f32 %v7001_v17, %v811_v11  ;;  %v5057_v17 = vsub.f32 %v7005_v16, %v1689_v15  ;;  %v829_v16 = vmul.f32 0.0078125, %v4902_v54  ;;  %v7010_v54 = vmax.f32 %v4416_v40, 0.0 }
 0x14e   : > { %1767 = vadd.xlane.f32.xlu0 %v1735_v19  ;;  %v7012_v40 = vmax.f32 %v4428_v44, 0.0  ;;  %v7016_v44 = vmax.f32 %v4443_v49, 0.0 }
 0x14f   : > { %1769 = vadd.xlane.f32.xlu1 %v1736_v63  ;;  %v5011_v46 = vpop.xlane.xlu0 %786  ;;  %v5031_v63 = vsub.f32 %v7003_v20, %v1259_v62  ;;  %v875_v24 = vmul.f32 %v5019_v2, %v5019_v2  ;;  %v1324_v62 = vmul.f32 %v5027_v27, %v5027_v27  ;;  %v1673_v20 = vmul.f32 0.0078125, %v4885_v38 }
 0x150   : > { %v5009_v4 = vpop.xlane.xlu1 %788  ;;  %v7008_v38 = vmax.f32 %v4404_v36, 0.0 }
 0x151   : > { %v1323_v31 = vmul.f32 %v5031_v63, %v5031_v63 }
 0x152   : > { %939 = vadd.xlane.f32.xlu0 %v891_v23  ;;  %v1243_v23 = vmul.f32 0.0078125, %v4869_v34  ;;  %v1754_v34 = vmul.f32 %v5053_v12, %v5053_v12  ;;  %v5081_v39 = vsub.f32 %v7008_v38, %v1674_v26  ;;  %v1262_v38 = vmul.f32 0.0078125, %v4939_v50 }
 0x153   : > { %941 = vadd.xlane.f32.xlu1 %v892_v22  ;;  %v5035_v21 = vpop.xlane.xlu0 %754  ;;  %v1244_v22 = vmul.f32 0.0078125, %v4867_v35  ;;  %v1753_v35 = vmul.f32 %v5057_v17, %v5057_v17 }
 0x154   : > { %v5033_v19 = vpop.xlane.xlu1 %756  ;;  %v5073_v15 = vsub.f32 %v7007_v29, %v1243_v23  ;;  %v1738_v26 = vmul.f32 %v5081_v39, %v5081_v39 }
 0x155   : > { %v5069_v18 = vsub.f32 %v7006_v28, %v1244_v22  ;;  %v7011_v28 = vmax.f32 %v4419_v41, 0.0  ;;  %v7013_v41 = vmax.f32 %v4431_v45, 0.0 }
 0x156   : > { %907 = vadd.xlane.f32.xlu0 %v875_v24  ;;  %v1307_v36 = vmul.f32 %v5073_v15, %v5073_v15 }
 0x157   : > { %909 = vadd.xlane.f32.xlu1 %v876_v8  ;;  %v5045_v25 = vpop.xlane.xlu0 %1221  ;;  %v1308_v22 = vmul.f32 %v5069_v18, %v5069_v18  ;;  %v5111_v29 = vsub.f32 %v7011_v28, %v829_v16  ;;  %v1691_v28 = vmul.f32 0.0078125, %v4957_v6  ;;  %v7018_v6 = vmax.f32 %v4452_v52, 0.0  ;;  %v7022_v52 = vld [vmem:[#allocation19_spill] sm:$0xff] }
 0x158   : > { %v5043_v11 = vpop.xlane.xlu1 %1223 }
 0x159   : > { %v893_v50 = vmul.f32 %v5111_v29, %v5111_v29 }
 0x15a   : > { %1373 = vadd.xlane.f32.xlu0 %v1323_v31 }
 0x15b   : > { %1375 = vadd.xlane.f32.xlu1 %v1324_v62  ;;  %v5065_v24 = vpop.xlane.xlu0 %1651  ;;  %v5085_v62 = vsub.f32 %v7009_v32, %v1673_v20  ;;  %v5107_v20 = vsub.f32 %v7010_v54, %v830_v30  ;;  %v1261_v32 = vmul.f32 0.0078125, %v4941_v1  ;;  %v1692_v54 = vmul.f32 0.0078125, %v4955_v3 }
 0x15c   : > { %v5063_v8 = vpop.xlane.xlu1 %1653 }
 0x15d   : > { %v1737_v42 = vmul.f32 %v5085_v62, %v5085_v62 }
 0x15e   : > { %1803 = vadd.xlane.f32.xlu0 %v1753_v35  ;;  %v813_v35 = vmul.f32 0.0078125, %v4920_v60  ;;  %v7014_v60 = vmax.f32 %v4440_v48, 0.0 }
 0x15f   : > { %1805 = vadd.xlane.f32.xlu1 %v1754_v34  ;;  %v5089_v33 = vpop.xlane.xlu0 %1189  ;;  %v814_v34 = vmul.f32 0.0078125, %v4918_v47  ;;  %v894_v47 = vmul.f32 %v5107_v20, %v5107_v20 }
 0x160   : > { %v5087_v31 = vpop.xlane.xlu1 %1191  ;;  %v5127_v16 = vsub.f32 %v7013_v41, %v813_v35  ;;  %v5135_v1 = vsub.f32 %v7014_v60, %v1262_v38  ;;  %v1676_v60 = vmul.f32 0.0078125, %v4989_v59  ;;  %v7028_v59 = vld [vmem:[#allocation21_spill] sm:$0xff] }
 0x161   : > { %v5123_v30 = vsub.f32 %v7012_v40, %v814_v34  ;;  %v7020_v40 = vmax.f32 %v4455_v53, 0.0  ;;  %v7025_v53 = vld [vmem:[#allocation20_spill] sm:$0xff] }
 0x162   : > { %1341 = vadd.xlane.f32.xlu0 %v1307_v36  ;;  %7015 = vst [vmem:[#allocation87_spill] sm:$0xff] %v5135_v1  ;;  %v877_v48 = vmul.f32 %v5127_v16, %v5127_v16  ;;  %v1326_v38 = vmul.f32 %v5135_v1, %v5135_v1 }
 0x163   : > { %1343 = vadd.xlane.f32.xlu1 %v1308_v22  ;;  %v5099_v37 = vpop.xlane.xlu0 %1619  ;;  %v878_v34 = vmul.f32 %v5123_v30, %v5123_v30  ;;  %v5165_v41 = vsub.f32 %v7020_v40, %v1691_v28  ;;  %v7026_v28 = vmax.f32 %v7025_v53, 0.0  ;;  %v832_v53 = vmul.f32 0.0078125, %v5009_v4 }
 0x164   : > { %v5097_v23 = vpop.xlane.xlu1 %1621 }
 0x165   : > { %7021 = vst [vmem:[#allocation90_spill] sm:$0xff] %v5165_v41 }
 0x166   : > { %1771 = vadd.xlane.f32.xlu0 %v1737_v42 }
 0x167   : > { %1773 = vadd.xlane.f32.xlu1 %v1738_v26  ;;  %v5119_v36 = vpop.xlane.xlu0 %790  ;;  %v5139_v26 = vsub.f32 %v7016_v44, %v1261_v32  ;;  %v5161_v32 = vsub.f32 %v7018_v6, %v1692_v54  ;;  %v1675_v44 = vmul.f32 0.0078125, %v4991_v13  ;;  %v7023_v54 = vmax.f32 %v7022_v52, 0.0 }
 0x168   : > { %v5117_v22 = vpop.xlane.xlu1 %792  ;;  %v7029_v13 = vmax.f32 %v7028_v59, 0.0 }
 0x169   : > { %7017 = vst [vmem:[#allocation88_spill] sm:$0xff] %v5139_v26  ;;  %v1325_v3 = vmul.f32 %v5139_v26, %v5139_v26  ;;  %7019 = vst [vmem:[#allocation89_spill] sm:$0xff] %v5161_v32 }
 0x16a   : > { %943 = vadd.xlane.f32.xlu0 %v893_v50  ;;  %v1245_v50 = vmul.f32 0.0078125, %v4981_v9  ;;  %v1755_v9 = vmul.f32 %v5165_v41, %v5165_v41 }
 0x16b   : > { %945 = vadd.xlane.f32.xlu1 %v894_v47  ;;  %v5143_v45 = vpop.xlane.xlu0 %758  ;;  %v1246_v47 = vmul.f32 0.0078125, %v4979_v0  ;;  %v1756_v0 = vmul.f32 %v5161_v32, %v5161_v32 }
 0x16c   : > { %v5141_v42 = vpop.xlane.xlu1 %760  ;;  %v5181_v40 = vsub.f32 %v7026_v28, %v1245_v50  ;;  %v831_v28 = vmul.f32 0.0078125, %v5011_v46 }
 0x16d   : > { %v5177_v6 = vsub.f32 %v7023_v54, %v1246_v47 }
 0x16e   : > { %911 = vadd.xlane.f32.xlu0 %v877_v48  ;;  %7027 = vst [vmem:[#allocation20_spill] sm:$0xff] %v5181_v40 }
 0x16f   : > { %913 = vadd.xlane.f32.xlu1 %v878_v34  ;;  %v5153_v49 = vpop.xlane.xlu0 %1225  ;;  %7024 = vst [vmem:[#allocation19_spill] sm:$0xff] %v5177_v6 }
 0x170   : > { %v5151_v35 = vpop.xlane.xlu1 %1227 }
 0x172   : > { %1377 = vadd.xlane.f32.xlu0 %v1325_v3  ;;  %v7031_v3 = vld [vmem:[#allocation22_spill] sm:$0xff] }
 0x173   : > { %1379 = vadd.xlane.f32.xlu1 %v1326_v38  ;;  %v5173_v48 = vpop.xlane.xlu0 %1655  ;;  %v5189_v38 = vsub.f32 %v7029_v13, %v1676_v60  ;;  %v7032_v52 = vmax.f32 %v7031_v3, 0.0  ;;  %v7034_v13 = vld [vmem:[#allocation23_spill] sm:$0xff] }
 0x174   : > { %v5171_v34 = vpop.xlane.xlu1 %1657  ;;  %v7035_v46 = vmax.f32 %v7034_v13, 0.0 }
 0x175   : > { %7030 = vst [vmem:[#allocation21_spill] sm:$0xff] %v5189_v38  ;;  %v5193_v47 = vsub.f32 %v7032_v52, %v1675_v44  ;;  %v1740_v59 = vmul.f32 %v5189_v38, %v5189_v38  ;;  %v7037_v52 = vld [vmem:[#allocation24_spill] sm:$0xff]  ;;  %v1263_v38 = vmul.f32 0.0078125, %v5045_v25 }
 0x176   : > { %1807 = vadd.xlane.f32.xlu0 %v1755_v9  ;;  %v1309_v9 = vmul.f32 %v5181_v40, %v5181_v40  ;;  %v5215_v3 = vsub.f32 %v7035_v46, %v832_v53  ;;  %v1264_v40 = vmul.f32 0.0078125, %v5043_v11  ;;  %v7040_v53 = vld [vmem:[#allocation25_spill] sm:$0xff]  ;;  %v7046_v11 = vld [vmem:[#allocation27_spill] sm:$0xff] }
 0x177   : > { %1809 = vadd.xlane.f32.xlu1 %v1756_v0  ;;  %7033 = vst [vmem:[#allocation22_spill] sm:$0xff] %v5193_v47  ;;  %v5197_v50 = vpop.xlane.xlu0 %1193  ;;  %v1310_v0 = vmul.f32 %v5177_v6, %v5177_v6  ;;  %v1739_v4 = vmul.f32 %v5193_v47, %v5193_v47  ;;  %v7038_v6 = vmax.f32 %v7037_v52, 0.0  ;;  %v7041_v13 = vmax.f32 %v7040_v53, 0.0 }
 0x178   : > { %v5195_v54 = vpop.xlane.xlu1 %1195  ;;  %7036 = vst [vmem:[#allocation23_spill] sm:$0xff] %v5215_v3  ;;  %v7047_v25 = vmax.f32 %v7046_v11, 0.0 }
 0x179   : > { %v5219_v41 = vsub.f32 %v7038_v6, %v831_v28  ;;  %v7043_v6 = vld [vmem:[#allocation26_spill] sm:$0xff] }
 0x17a   : > { %1345 = vadd.xlane.f32.xlu0 %v1309_v9  ;;  %v815_v9 = vmul.f32 0.0078125, %v5035_v21  ;;  %v7044_v28 = vmax.f32 %v7043_v6, 0.0  ;;  %v1694_v6 = vmul.f32 0.0078125, %v5063_v8 }
 0x17b   : > { %1347 = vadd.xlane.f32.xlu1 %v1310_v0  ;;  %v5207_v44 = vpop.xlane.xlu0 %1623  ;;  %7039 = vst [vmem:[#allocation24_spill] sm:$0xff] %v5219_v41  ;;  %v816_v0 = vmul.f32 0.0078125, %v5033_v19  ;;  %v896_v19 = vmul.f32 %v5215_v3, %v5215_v3  ;;  %v895_v21 = vmul.f32 %v5219_v41, %v5219_v41 }
 0x17c   : > { %v5205_v60 = vpop.xlane.xlu1 %1625  ;;  %v5235_v52 = vsub.f32 %v7044_v28, %v815_v9  ;;  %v1693_v28 = vmul.f32 0.0078125, %v5065_v24 }
 0x17d   : > { %v5231_v46 = vsub.f32 %v7041_v13, %v816_v0 }
 0x17e   : > { %1775 = vadd.xlane.f32.xlu0 %v1739_v4  ;;  %7045 = vst [vmem:[#allocation26_spill] sm:$0xff] %v5235_v52  ;;  %v7049_v4 = vld [vmem:[#allocation28_spill] sm:$0xff] }
 0x17f   : > { %1777 = vadd.xlane.f32.xlu1 %v1740_v59  ;;  %v5227_v47 = vpop.xlane.xlu0 %794  ;;  %7042 = vst [vmem:[#allocation25_spill] sm:$0xff] %v5231_v46  ;;  %v5243_v59 = vsub.f32 %v7047_v25, %v1264_v40  ;;  %v7050_v53 = vmax.f32 %v7049_v4, 0.0  ;;  %v7052_v25 = vld [vmem:[#allocation29_spill] sm:$0xff] }
 0x180   : > { %v5225_v32 = vpop.xlane.xlu1 %796  ;;  %v7053_v24 = vmax.f32 %v7052_v25, 0.0 }
 0x181   : > { %7048 = vst [vmem:[#allocation27_spill] sm:$0xff] %v5243_v59  ;;  %v5247_v0 = vsub.f32 %v7050_v53, %v1263_v38  ;;  %v1328_v11 = vmul.f32 %v5243_v59, %v5243_v59  ;;  %v7055_v53 = vld [vmem:[#allocation30_spill] sm:$0xff]  ;;  %v1677_v59 = vmul.f32 0.0078125, %v5099_v37 }
 0x182   : > { %947 = vadd.xlane.f32.xlu0 %v895_v21  ;;  %v879_v21 = vmul.f32 %v5235_v52, %v5235_v52  ;;  %v5269_v4 = vsub.f32 %v7053_v24, %v1694_v6  ;;  %v1678_v52 = vmul.f32 0.0078125, %v5097_v23  ;;  %v7058_v6 = vld [vmem:[#allocation31_spill] sm:$0xff]  ;;  %v7064_v23 = vld [vmem:[#allocation33_spill] sm:$0xff] }
 0x183   : > { %949 = vadd.xlane.f32.xlu1 %v896_v19  ;;  %7051 = vst [vmem:[#allocation28_spill] sm:$0xff] %v5247_v0  ;;  %v5251_v9 = vpop.xlane.xlu0 %762  ;;  %v880_v19 = vmul.f32 %v5231_v46, %v5231_v46  ;;  %v1327_v8 = vmul.f32 %v5247_v0, %v5247_v0  ;;  %v7056_v46 = vmax.f32 %v7055_v53, 0.0  ;;  %v7059_v25 = vmax.f32 %v7058_v6, 0.0 }
 0x184   : > { %v5249_v13 = vpop.xlane.xlu1 %764  ;;  %7054 = vst [vmem:[#allocation29_spill] sm:$0xff] %v5269_v4  ;;  %v7065_v37 = vmax.f32 %v7064_v23, 0.0 }
 0x185   : > { %v5273_v41 = vsub.f32 %v7056_v46, %v1693_v28  ;;  %v7061_v46 = vld [vmem:[#allocation32_spill] sm:$0xff] }
 0x186   : > { %915 = vadd.xlane.f32.xlu0 %v879_v21  ;;  %v1247_v21 = vmul.f32 0.0078125, %v5089_v33  ;;  %v7062_v28 = vmax.f32 %v7061_v46, 0.0  ;;  %v834_v46 = vmul.f32 0.0078125, %v5117_v22 }
 0x187   : > { %917 = vadd.xlane.f32.xlu1 %v880_v19  ;;  %v5261_v38 = vpop.xlane.xlu0 %1229  ;;  %7057 = vst [vmem:[#allocation30_spill] sm:$0xff] %v5273_v41  ;;  %v1248_v19 = vmul.f32 0.0078125, %v5087_v31  ;;  %v1758_v31 = vmul.f32 %v5269_v4, %v5269_v4  ;;  %v1757_v33 = vmul.f32 %v5273_v41, %v5273_v41 }
 0x188   : > { %v5259_v40 = vpop.xlane.xlu1 %1231  ;;  %v5289_v53 = vsub.f32 %v7062_v28, %v1247_v21  ;;  %v833_v28 = vmul.f32 0.0078125, %v5119_v36 }
 0x189   : > { %v5285_v24 = vsub.f32 %v7059_v25, %v1248_v19 }
 0x18a   : > { %1381 = vadd.xlane.f32.xlu0 %v1327_v8  ;;  %7063 = vst [vmem:[#allocation32_spill] sm:$0xff] %v5289_v53  ;;  %v7067_v8 = vld [vmem:[#allocation34_spill] sm:$0xff] }
 0x18b   : > { %1383 = vadd.xlane.f32.xlu1 %v1328_v11  ;;  %v5281_v0 = vpop.xlane.xlu0 %1659  ;;  %7060 = vst [vmem:[#allocation31_spill] sm:$0xff] %v5285_v24  ;;  %v5297_v11 = vsub.f32 %v7065_v37, %v1678_v52  ;;  %v7068_v6 = vmax.f32 %v7067_v8, 0.0  ;;  %v7070_v37 = vld [vmem:[#allocation35_spill] sm:$0xff] }
 0x18c   : > { %v5279_v3 = vpop.xlane.xlu1 %1661  ;;  %v7071_v36 = vmax.f32 %v7070_v37, 0.0 }
 0x18d   : > { %7066 = vst [vmem:[#allocation33_spill] sm:$0xff] %v5297_v11  ;;  %v5301_v19 = vsub.f32 %v7068_v6, %v1677_v59  ;;  %v1742_v23 = vmul.f32 %v5297_v11, %v5297_v11  ;;  %v7073_v6 = vld [vmem:[#allocation36_spill] sm:$0xff]  ;;  %v1265_v11 = vmul.f32 0.0078125, %v5153_v49 }
 0x18e   : > { %1811 = vadd.xlane.f32.xlu0 %v1757_v33  ;;  %v1311_v33 = vmul.f32 %v5289_v53, %v5289_v53  ;;  %v5323_v8 = vsub.f32 %v7071_v36, %v834_v46  ;;  %v1266_v53 = vmul.f32 0.0078125, %v5151_v35  ;;  %v7076_v46 = vld [vmem:[#allocation37_spill] sm:$0xff]  ;;  %v7082_v35 = vld [vmem:[#allocation39_spill] sm:$0xff] }
 0x18f   : > { %1813 = vadd.xlane.f32.xlu1 %v1758_v31  ;;  %7069 = vst [vmem:[#allocation34_spill] sm:$0xff] %v5301_v19  ;;  %v5305_v21 = vpop.xlane.xlu0 %1197  ;;  %v1312_v31 = vmul.f32 %v5285_v24, %v5285_v24  ;;  %v1741_v22 = vmul.f32 %v5301_v19, %v5301_v19  ;;  %v7074_v24 = vmax.f32 %v7073_v6, 0.0  ;;  %v7077_v37 = vmax.f32 %v7076_v46, 0.0 }
 0x190   : > { %v5303_v25 = vpop.xlane.xlu1 %1199  ;;  %7072 = vst [vmem:[#allocation35_spill] sm:$0xff] %v5323_v8  ;;  %v7083_v49 = vmax.f32 %v7082_v35, 0.0 }
 0x191   : > { %v5327_v41 = vsub.f32 %v7074_v24, %v833_v28  ;;  %v7079_v24 = vld [vmem:[#allocation38_spill] sm:$0xff] }
 0x192   : > { %1349 = vadd.xlane.f32.xlu0 %v1311_v33  ;;  %v817_v33 = vmul.f32 0.0078125, %v5143_v45  ;;  %v7080_v28 = vmax.f32 %v7079_v24, 0.0  ;;  %v1696_v24 = vmul.f32 0.0078125, %v5171_v34 }
 0x193   : > { %1351 = vadd.xlane.f32.xlu1 %v1312_v31  ;;  %v5315_v59 = vpop.xlane.xlu0 %1627  ;;  %7075 = vst [vmem:[#allocation36_spill] sm:$0xff] %v5327_v41  ;;  %v818_v31 = vmul.f32 0.0078125, %v5141_v42  ;;  %v898_v42 = vmul.f32 %v5323_v8, %v5323_v8  ;;  %v897_v45 = vmul.f32 %v5327_v41, %v5327_v41 }
 0x194   : > { %v5313_v52 = vpop.xlane.xlu1 %1629  ;;  %v5343_v6 = vsub.f32 %v7080_v28, %v817_v33  ;;  %v1695_v28 = vmul.f32 0.0078125, %v5173_v48 }
 0x195   : > { %v5339_v36 = vsub.f32 %v7077_v37, %v818_v31 }
 0x196   : > { %1779 = vadd.xlane.f32.xlu0 %v1741_v22  ;;  %7081 = vst [vmem:[#allocation38_spill] sm:$0xff] %v5343_v6  ;;  %v7085_v22 = vld [vmem:[#allocation40_spill] sm:$0xff] }
 0x197   : > { %1781 = vadd.xlane.f32.xlu1 %v1742_v23  ;;  %v5335_v19 = vpop.xlane.xlu0 %798  ;;  %7078 = vst [vmem:[#allocation37_spill] sm:$0xff] %v5339_v36  ;;  %v5351_v23 = vsub.f32 %v7083_v49, %v1266_v53  ;;  %v7086_v46 = vmax.f32 %v7085_v22, 0.0  ;;  %v7088_v49 = vld [vmem:[#allocation41_spill] sm:$0xff] }
 0x198   : > { %v5333_v4 = vpop.xlane.xlu1 %800  ;;  %v7089_v48 = vmax.f32 %v7088_v49, 0.0 }
 0x199   : > { %7084 = vst [vmem:[#allocation39_spill] sm:$0xff] %v5351_v23  ;;  %v5355_v31 = vsub.f32 %v7086_v46, %v1265_v11  ;;  %v1330_v35 = vmul.f32 %v5351_v23, %v5351_v23  ;;  %v7091_v46 = vld [vmem:[#allocation42_spill] sm:$0xff]  ;;  %v1679_v23 = vmul.f32 0.0078125, %v5207_v44 }
 0x19a   : > { %951 = vadd.xlane.f32.xlu0 %v897_v45  ;;  %v881_v45 = vmul.f32 %v5343_v6, %v5343_v6  ;;  %v5377_v22 = vsub.f32 %v7089_v48, %v1696_v24  ;;  %v1680_v6 = vmul.f32 0.0078125, %v5205_v60  ;;  %v7094_v24 = vld [vmem:[#allocation43_spill] sm:$0xff]  ;;  %v7100_v60 = vld [vmem:[#allocation45_spill] sm:$0xff] }
 0x19b   : > { %953 = vadd.xlane.f32.xlu1 %v898_v42  ;;  %7087 = vst [vmem:[#allocation40_spill] sm:$0xff] %v5355_v31  ;;  %v5359_v33 = vpop.xlane.xlu0 %766  ;;  %v882_v42 = vmul.f32 %v5339_v36, %v5339_v36  ;;  %v1329_v34 = vmul.f32 %v5355_v31, %v5355_v31  ;;  %v7092_v36 = vmax.f32 %v7091_v46, 0.0  ;;  %v7095_v49 = vmax.f32 %v7094_v24, 0.0 }
 0x19c   : > { %v5357_v37 = vpop.xlane.xlu1 %768  ;;  %7090 = vst [vmem:[#allocation41_spill] sm:$0xff] %v5377_v22  ;;  %v7101_v44 = vmax.f32 %v7100_v60, 0.0 }
 0x19d   : > { %v5381_v41 = vsub.f32 %v7092_v36, %v1695_v28  ;;  %v7097_v36 = vld [vmem:[#allocation44_spill] sm:$0xff] }
 0x19e   : > { %919 = vadd.xlane.f32.xlu0 %v881_v45  ;;  %v1249_v45 = vmul.f32 0.0078125, %v5197_v50  ;;  %v7098_v28 = vmax.f32 %v7097_v36, 0.0  ;;  %v836_v36 = vmul.f32 0.0078125, %v5225_v32 }
 0x19f   : > { %921 = vadd.xlane.f32.xlu1 %v882_v42  ;;  %v5369_v11 = vpop.xlane.xlu0 %1233  ;;  %7093 = vst [vmem:[#allocation42_spill] sm:$0xff] %v5381_v41  ;;  %v1250_v42 = vmul.f32 0.0078125, %v5195_v54  ;;  %v1760_v54 = vmul.f32 %v5377_v22, %v5377_v22  ;;  %v1759_v50 = vmul.f32 %v5381_v41, %v5381_v41 }
 0x1a0   : > { %v5367_v53 = vpop.xlane.xlu1 %1235  ;;  %v5397_v46 = vsub.f32 %v7098_v28, %v1249_v45  ;;  %v835_v28 = vmul.f32 0.0078125, %v5227_v47 }
 0x1a1   : > { %v5393_v48 = vsub.f32 %v7095_v49, %v1250_v42 }
 0x1a2   : > { %1385 = vadd.xlane.f32.xlu0 %v1329_v34  ;;  %7099 = vst [vmem:[#allocation44_spill] sm:$0xff] %v5397_v46  ;;  %v7103_v34 = vld [vmem:[#allocation46_spill] sm:$0xff] }
 0x1a3   : > { %1387 = vadd.xlane.f32.xlu1 %v1330_v35  ;;  %v5389_v31 = vpop.xlane.xlu0 %1663  ;;  %7096 = vst [vmem:[#allocation43_spill] sm:$0xff] %v5393_v48  ;;  %v5405_v35 = vsub.f32 %v7101_v44, %v1680_v6  ;;  %v7104_v24 = vmax.f32 %v7103_v34, 0.0  ;;  %v7106_v44 = vld [vmem:[#allocation47_spill] sm:$0xff] }
 0x1a4   : > { %v5387_v8 = vpop.xlane.xlu1 %1665  ;;  %v7107_v47 = vmax.f32 %v7106_v44, 0.0 }
 0x1a5   : > { %7102 = vst [vmem:[#allocation45_spill] sm:$0xff] %v5405_v35  ;;  %v5409_v42 = vsub.f32 %v7104_v24, %v1679_v23  ;;  %v1744_v60 = vmul.f32 %v5405_v35, %v5405_v35  ;;  %v7109_v24 = vld [vmem:[#allocation48_spill] sm:$0xff]  ;;  %v1267_v35 = vmul.f32 0.0078125, %v5261_v38 }
 0x1a6   : > { %1815 = vadd.xlane.f32.xlu0 %v1759_v50  ;;  %v1313_v50 = vmul.f32 %v5397_v46, %v5397_v46  ;;  %v5431_v34 = vsub.f32 %v7107_v47, %v836_v36  ;;  %v1268_v46 = vmul.f32 0.0078125, %v5259_v40  ;;  %v7112_v36 = vld [vmem:[#allocation49_spill] sm:$0xff]  ;;  %v7118_v40 = vld [vmem:[#allocation51_spill] sm:$0xff] }
 0x1a7   : > { %1817 = vadd.xlane.f32.xlu1 %v1760_v54  ;;  %7105 = vst [vmem:[#allocation46_spill] sm:$0xff] %v5409_v42  ;;  %v5413_v45 = vpop.xlane.xlu0 %1201  ;;  %v1314_v54 = vmul.f32 %v5393_v48, %v5393_v48  ;;  %v1743_v32 = vmul.f32 %v5409_v42, %v5409_v42  ;;  %v7110_v48 = vmax.f32 %v7109_v24, 0.0  ;;  %v7113_v44 = vmax.f32 %v7112_v36, 0.0 }
 0x1a8   : > { %v5411_v49 = vpop.xlane.xlu1 %1203  ;;  %7108 = vst [vmem:[#allocation47_spill] sm:$0xff] %v5431_v34  ;;  %v7119_v38 = vmax.f32 %v7118_v40, 0.0 }
 0x1a9   : > { %v5435_v41 = vsub.f32 %v7110_v48, %v835_v28  ;;  %v7115_v48 = vld [vmem:[#allocation50_spill] sm:$0xff] }
 0x1aa   : > { %1353 = vadd.xlane.f32.xlu0 %v1313_v50  ;;  %v819_v50 = vmul.f32 0.0078125, %v5251_v9  ;;  %v7116_v28 = vmax.f32 %v7115_v48, 0.0  ;;  %v1698_v48 = vmul.f32 0.0078125, %v5279_v3 }
 0x1ab   : > { %1355 = vadd.xlane.f32.xlu1 %v1314_v54  ;;  %v5423_v23 = vpop.xlane.xlu0 %1631  ;;  %7111 = vst [vmem:[#allocation48_spill] sm:$0xff] %v5435_v41  ;;  %v820_v54 = vmul.f32 0.0078125, %v5249_v13  ;;  %v900_v13 = vmul.f32 %v5431_v34, %v5431_v34  ;;  %v899_v9 = vmul.f32 %v5435_v41, %v5435_v41 }
 0x1ac   : > { %v5421_v6 = vpop.xlane.xlu1 %1633  ;;  %v5451_v24 = vsub.f32 %v7116_v28, %v819_v50  ;;  %v1697_v28 = vmul.f32 0.0078125, %v5281_v0  ;;  %v1683_v1 = vmul.f32 0.0078125, %v5423_v23 }
 0x1ad   : > { %v5447_v47 = vsub.f32 %v7113_v44, %v820_v54 }
 0x1ae   : > { %1783 = vadd.xlane.f32.xlu0 %v1743_v32  ;;  %7117 = vst [vmem:[#allocation50_spill] sm:$0xff] %v5451_v24  ;;  %v7121_v32 = vld [vmem:[#allocation52_spill] sm:$0xff] }
 0x1af   : > { %1785 = vadd.xlane.f32.xlu1 %v1744_v60  ;;  %v5443_v42 = vpop.xlane.xlu0 %802  ;;  %7114 = vst [vmem:[#allocation49_spill] sm:$0xff] %v5447_v47  ;;  %v5459_v60 = vsub.f32 %v7119_v38, %v1268_v46  ;;  %v7122_v36 = vmax.f32 %v7121_v32, 0.0  ;;  %v7124_v38 = vld [vmem:[#allocation53_spill] sm:$0xff] }
 0x1b0   : > { %v5441_v22 = vpop.xlane.xlu1 %804  ;;  %v7125_v0 = vmax.f32 %v7124_v38, 0.0 }
 0x1b1   : > { %7120 = vst [vmem:[#allocation51_spill] sm:$0xff] %v5459_v60  ;;  %v5463_v54 = vsub.f32 %v7122_v36, %v1267_v35  ;;  %v1332_v40 = vmul.f32 %v5459_v60, %v5459_v60  ;;  %v7127_v36 = vld [vmem:[#allocation54_spill] sm:$0xff]  ;;  %v1681_v60 = vmul.f32 0.0078125, %v5315_v59 }
 0x1b2   : > { %955 = vadd.xlane.f32.xlu0 %v899_v9  ;;  %v883_v9 = vmul.f32 %v5451_v24, %v5451_v24  ;;  %v5485_v32 = vsub.f32 %v7125_v0, %v1698_v48  ;;  %v1682_v24 = vmul.f32 0.0078125, %v5313_v52  ;;  %v7130_v48 = vld [vmem:[#allocation55_spill] sm:$0xff]  ;;  %v7136_v52 = vld [vmem:[#allocation57_spill] sm:$0xff] }
 0x1b3   : > { %957 = vadd.xlane.f32.xlu1 %v900_v13  ;;  %7123 = vst [vmem:[#allocation52_spill] sm:$0xff] %v5463_v54  ;;  %v5467_v50 = vpop.xlane.xlu0 %770  ;;  %v884_v13 = vmul.f32 %v5447_v47, %v5447_v47  ;;  %v1331_v3 = vmul.f32 %v5463_v54, %v5463_v54  ;;  %v7128_v47 = vmax.f32 %v7127_v36, 0.0  ;;  %v7131_v38 = vmax.f32 %v7130_v48, 0.0 }
 0x1b4   : > { %v5465_v44 = vpop.xlane.xlu1 %772  ;;  %7126 = vst [vmem:[#allocation53_spill] sm:$0xff] %v5485_v32  ;;  %v7137_v59 = vmax.f32 %v7136_v52, 0.0 }
 0x1b5   : > { %v5489_v41 = vsub.f32 %v7128_v47, %v1697_v28  ;;  %v7133_v47 = vld [vmem:[#allocation56_spill] sm:$0xff] }
 0x1b6   : > { %923 = vadd.xlane.f32.xlu0 %v883_v9  ;;  %v1251_v9 = vmul.f32 0.0078125, %v5305_v21  ;;  %v7134_v28 = vmax.f32 %v7133_v47, 0.0  ;;  %v838_v47 = vmul.f32 0.0078125, %v5333_v4 }
 0x1b7   : > { %925 = vadd.xlane.f32.xlu1 %v884_v13  ;;  %v5477_v35 = vpop.xlane.xlu0 %1237  ;;  %7129 = vst [vmem:[#allocation54_spill] sm:$0xff] %v5489_v41  ;;  %v1252_v13 = vmul.f32 0.0078125, %v5303_v25  ;;  %v1762_v25 = vmul.f32 %v5485_v32, %v5485_v32  ;;  %v1761_v21 = vmul.f32 %v5489_v41, %v5489_v41 }
 0x1b8   : > { %v5475_v46 = vpop.xlane.xlu1 %1239  ;;  %v5505_v36 = vsub.f32 %v7134_v28, %v1251_v9  ;;  %v837_v28 = vmul.f32 0.0078125, %v5335_v19 }
 0x1b9   : > { %v5501_v0 = vsub.f32 %v7131_v38, %v1252_v13 }
 0x1ba   : > { %1389 = vadd.xlane.f32.xlu0 %v1331_v3  ;;  %7135 = vst [vmem:[#allocation56_spill] sm:$0xff] %v5505_v36  ;;  %v7139_v3 = vld [vmem:[#allocation58_spill] sm:$0xff] }
 0x1bb   : > { %1391 = vadd.xlane.f32.xlu1 %v1332_v40  ;;  %v5497_v54 = vpop.xlane.xlu0 %1667  ;;  %7132 = vst [vmem:[#allocation55_spill] sm:$0xff] %v5501_v0  ;;  %v5513_v40 = vsub.f32 %v7137_v59, %v1682_v24  ;;  %v7140_v48 = vmax.f32 %v7139_v3, 0.0  ;;  %v7142_v59 = vld [vmem:[#allocation59_spill] sm:$0xff] }
 0x1bc   : > { %v5495_v34 = vpop.xlane.xlu1 %1669  ;;  %v7143_v19 = vmax.f32 %v7142_v59, 0.0 }
 0x1bd   : > { %7138 = vst [vmem:[#allocation57_spill] sm:$0xff] %v5513_v40  ;;  %v5517_v13 = vsub.f32 %v7140_v48, %v1681_v60  ;;  %v1746_v52 = vmul.f32 %v5513_v40, %v5513_v40  ;;  %v7145_v48 = vld [vmem:[#allocation60_spill] sm:$0xff]  ;;  %v1269_v40 = vmul.f32 0.0078125, %v5369_v11 }
 0x1be   : > { %1819 = vadd.xlane.f32.xlu0 %v1761_v21  ;;  %v1315_v21 = vmul.f32 %v5505_v36, %v5505_v36  ;;  %v5539_v3 = vsub.f32 %v7143_v19, %v838_v47  ;;  %v1270_v36 = vmul.f32 0.0078125, %v5367_v53  ;;  %v7148_v47 = vld [vmem:[#allocation61_spill] sm:$0xff]  ;;  %v7154_v53 = vld [vmem:[#allocation63_spill] sm:$0xff] }
 0x1bf   : > { %1821 = vadd.xlane.f32.xlu1 %v1762_v25  ;;  %7141 = vst [vmem:[#allocation58_spill] sm:$0xff] %v5517_v13  ;;  %v5521_v9 = vpop.xlane.xlu0 %1205  ;;  %v1316_v25 = vmul.f32 %v5501_v0, %v5501_v0  ;;  %v1745_v4 = vmul.f32 %v5517_v13, %v5517_v13  ;;  %v7146_v0 = vmax.f32 %v7145_v48, 0.0  ;;  %v7149_v59 = vmax.f32 %v7148_v47, 0.0 }
 0x1c0   : > { %v5519_v38 = vpop.xlane.xlu1 %1207  ;;  %7144 = vst [vmem:[#allocation59_spill] sm:$0xff] %v5539_v3  ;;  %v7155_v11 = vmax.f32 %v7154_v53, 0.0 }
 0x1c1   : > { %v5543_v41 = vsub.f32 %v7146_v0, %v837_v28  ;;  %v7151_v0 = vld [vmem:[#allocation62_spill] sm:$0xff] }
 0x1c2   : > { %1357 = vadd.xlane.f32.xlu0 %v1315_v21  ;;  %v821_v21 = vmul.f32 0.0078125, %v5359_v33  ;;  %v7152_v28 = vmax.f32 %v7151_v0, 0.0 }
 0x1c3   : > { %1359 = vadd.xlane.f32.xlu1 %v1316_v25  ;;  %v5531_v60 = vpop.xlane.xlu0 %1635  ;;  %7147 = vst [vmem:[#allocation60_spill] sm:$0xff] %v5543_v41  ;;  %v822_v25 = vmul.f32 0.0078125, %v5357_v37  ;;  %v902_v37 = vmul.f32 %v5539_v3, %v5539_v3  ;;  %v901_v33 = vmul.f32 %v5543_v41, %v5543_v41  ;;  %v1254_v41 = vmul.f32 0.0078125, %v5411_v49  ;;  %v7166_v3 = vld [vmem:[#allocation67_spill] sm:$0xff] }
 0x1c4   : > { %v5529_v24 = vpop.xlane.xlu1 %1637  ;;  %v5559_v48 = vsub.f32 %v7152_v28, %v821_v21  ;;  %v1699_v21 = vmul.f32 0.0078125, %v5389_v31 }
 0x1c5   : > { %v5555_v19 = vsub.f32 %v7149_v59, %v822_v25  ;;  %v1700_v59 = vmul.f32 0.0078125, %v5387_v8  ;;  %v7160_v8 = vld [vmem:[#allocation65_spill] sm:$0xff] }
 0x1c6   : > { %1787 = vadd.xlane.f32.xlu0 %v1745_v4  ;;  %7153 = vst [vmem:[#allocation62_spill] sm:$0xff] %v5559_v48  ;;  %v7157_v4 = vld [vmem:[#allocation64_spill] sm:$0xff]  ;;  %v7161_v31 = vmax.f32 %v7160_v8, 0.0 }
 0x1c7   : > { %1789 = vadd.xlane.f32.xlu1 %v1746_v52  ;;  %v5551_v13 = vpop.xlane.xlu0 %806  ;;  %7150 = vst [vmem:[#allocation61_spill] sm:$0xff] %v5555_v19  ;;  %v5567_v52 = vsub.f32 %v7155_v11, %v1270_v36  ;;  %v7158_v47 = vmax.f32 %v7157_v4, 0.0  ;;  %v886_v36 = vmul.f32 %v5555_v19, %v5555_v19  ;;  %v7163_v11 = vld [vmem:[#allocation66_spill] sm:$0xff] }
 0x1c8   : > { %v5549_v32 = vpop.xlane.xlu1 %808  ;;  %v5588_v53 = vsub.f32 %v7161_v31, %v1700_v59  ;;  %v7164_v4 = vmax.f32 %v7163_v11, 0.0 }
 0x1c9   : > { %7156 = vst [vmem:[#allocation63_spill] sm:$0xff] %v5567_v52  ;;  %v5571_v25 = vsub.f32 %v7158_v47, %v1269_v40  ;;  %v1684_v40 = vmul.f32 0.0078125, %v5421_v6  ;;  %v1334_v19 = vmul.f32 %v5567_v52, %v5567_v52  ;;  %v7167_v6 = vmax.f32 %v7166_v3, 0.0 }
 0x1ca   : > { %959 = vadd.xlane.f32.xlu0 %v901_v33  ;;  %v885_v33 = vmul.f32 %v5559_v48, %v5559_v48  ;;  %7162 = vst [vmem:[#allocation65_spill] sm:$0xff] %v5588_v53  ;;  %v5592_v47 = vsub.f32 %v7164_v4, %v1699_v21  ;;  %v7172_v21 = vld [vmem:[#allocation69_spill] sm:$0xff]  ;;  %v840_v52 = vmul.f32 0.0078125, %v5441_v22  ;;  %v824_v3 = vmul.f32 0.0078125, %v5465_v44 }
 0x1cb   : > { %961 = vadd.xlane.f32.xlu1 %v902_v37  ;;  %7159 = vst [vmem:[#allocation64_spill] sm:$0xff] %v5571_v25  ;;  %v5577_v28 = vpop.xlane.xlu0 %774  ;;  %v1253_v37 = vmul.f32 0.0078125, %v5413_v45  ;;  %v1333_v48 = vmul.f32 %v5571_v25, %v5571_v25  ;;  %v7173_v4 = vmax.f32 %v7172_v21, 0.0  ;;  %v839_v25 = vmul.f32 0.0078125, %v5443_v42  ;;  %v7178_v21 = vld [vmem:[#allocation72_spill] sm:$0xff] }
 0x1cc   : > { %v5575_v0 = vpop.xlane.xlu1 %776  ;;  %7165 = vst [vmem:[#allocation66_spill] sm:$0xff] %v5592_v47  ;;  %v1763_v23 = vmul.f32 %v5592_v47, %v5592_v47 }
 0x1cd   : > { %v5608_v26 = vsub.f32 %v7173_v4, %v1684_v40  ;;  %v1764_v40 = vmul.f32 %v5588_v53, %v5588_v53  ;;  %v7179_v4 = vmax.f32 %v7178_v21, 0.0 }
 0x1ce   : > { %927 = vadd.xlane.f32.xlu0 %v885_v33  ;;  %v7169_v33 = vld [vmem:[#allocation68_spill] sm:$0xff] }
 0x1cf   : > { %929 = vadd.xlane.f32.xlu1 %v886_v36  ;;  %v1370_v45 = vpop.xlane.xlu0 %1369  ;;  %v5600_v36 = vsub.f32 %v7167_v6, %v1254_v41  ;;  %v7170_v8 = vmax.f32 %v7169_v33, 0.0  ;;  %v5633_v53 = vsub.f32 %v7179_v4, %v839_v25  ;;  %v1271_v25 = vmul.f32 0.0078125, %v5477_v35  ;;  %v7186_v35 = vld [vmem:[#allocation75_spill] sm:$0xff] }
 0x1d0   : > { %v1372_v49 = vpop.xlane.xlu1 %1371  ;;  %v1417_v11 = vmul.f32 0.0078125, %v1370_v45  ;;  %v1702_v4 = vmul.f32 0.0078125, %v5495_v34 }
 0x1d1   : > { %7168 = vst [vmem:[#allocation67_spill] sm:$0xff] %v5600_v36  ;;  %v5604_v59 = vsub.f32 %v7170_v8, %v1253_v37  ;;  %v1418_v31 = vmul.f32 0.0078125, %v1372_v49  ;;  %v823_v37 = vmul.f32 0.0078125, %v5467_v50  ;;  %v1318_v42 = vmul.f32 %v5600_v36, %v5600_v36  ;;  %v7176_v8 = vld [vmem:[#allocation71_spill] sm:$0xff]  ;;  %7180 = vst [vmem:[#allocation69_spill] sm:$0xff] %v5633_v53 }
 0x1d2   : > { %1393 = vadd.xlane.f32.xlu0 %v1333_v48  ;;  %v1449_v6 = vadd.f32 1e-05, %v1417_v11 }
 0x1d3   : > { %7171 = vst [vmem:[#allocation68_spill] sm:$0xff] %v5604_v59  ;;  %v1450_v41 = vadd.f32 1e-05, %v1418_v31  ;;  %1395 = vadd.xlane.f32.xlu1 %v1334_v19  ;;  %v1800_v45 = vpop.xlane.xlu0 %1799  ;;  %v1317_v44 = vmul.f32 %v5604_v59, %v5604_v59  ;;  %v7174_v19 = vld [vmem:[#allocation70_spill] sm:$0xff]  ;;  %v7177_v31 = vmax.f32 %v7176_v8, 0.0  ;;  %v1272_v8 = vmul.f32 0.0078125, %v5475_v46 }
 0x1d4   : > { %v1802_v49 = vpop.xlane.xlu1 %1801  ;;  %v1847_v22 = vmul.f32 0.0078125, %v1800_v45  ;;  %v7175_v48 = vmax.f32 %v7174_v19, 0.0  ;;  %v7181_v45 = vld [vmem:[#allocation73_spill] sm:$0xff] }
 0x1d5   : > { %v1848_v33 = vmul.f32 0.0078125, %v1802_v49  ;;  %v5629_v11 = vsub.f32 %v7177_v31, %v840_v52  ;;  %v1748_v49 = vmul.f32 %v5608_v26, %v5608_v26  ;;  %v7182_v36 = vmax.f32 %v7181_v45, 0.0 }
 0x1d6   : > { %v5625_v50 = vsub.f32 %v7175_v48, %v1683_v1  ;;  %3649 = vrsqrt.f32 %v1450_v41  ;;  %v1879_v19 = vadd.f32 1e-05, %v1847_v22  ;;  %1823 = vadd.xlane.f32.xlu0 %v1763_v23  ;;  %v7184_v1 = vld [vmem:[#allocation74_spill] sm:$0xff]  ;;  %v1701_v41 = vmul.f32 0.0078125, %v5497_v54  ;;  %v7188_v54 = vld [vmem:[#allocation76_spill] sm:$0xff] }
 0x1d7   : > { %v5639_v47 = vsub.f32 %v7182_v36, %v824_v3  ;;  %v1880_v59 = vadd.f32 1e-05, %v1848_v33  ;;  %1825 = vadd.xlane.f32.xlu1 %v1764_v40  ;;  %v7185_v48 = vmax.f32 %v7184_v1, 0.0  ;;  %3651 = vrsqrt.f32 %v1449_v6  ;;  %v1338_v21 = vpop.xlane.xlu0 %1337 }
 0x1d8   : > { %v1340_v31 = vpop.xlane.xlu1 %1339  ;;  %v1401_v3 = vmul.f32 0.0078125, %v1338_v21  ;;  %v1256_v40 = vmul.f32 0.0078125, %v5519_v38  ;;  %v1255_v23 = vmul.f32 0.0078125, %v5521_v9  ;;  %v1747_v46 = vmul.f32 %v5625_v50, %v5625_v50 }
 0x1d9   : > { %7183 = vst [vmem:[#allocation70_spill] sm:$0xff] %v5639_v47  ;;  %v5643_v52 = vsub.f32 %v7185_v48, %v823_v37  ;;  %3653 = vrsqrt.f32 %v1880_v59  ;;  %v1402_v36 = vmul.f32 0.0078125, %v1340_v31  ;;  %v904_v34 = vmul.f32 %v5629_v11, %v5629_v11 }
 0x1da   : > { %3655 = vrsqrt.f32 %v1879_v19  ;;  %v1433_v33 = vadd.f32 1e-05, %v1401_v3  ;;  %1361 = vadd.xlane.f32.xlu0 %v1317_v44  ;;  %v7187_v59 = vmax.f32 %v7186_v35, 0.0  ;;  %v7189_v22 = vmax.f32 %v7188_v54, 0.0  ;;  %v7191_v19 = vld [vmem:[#allocation77_spill] sm:$0xff]  ;;  %v7197_v35 = vld [vmem:[#allocation79_spill] sm:$0xff] }
 0x1db   : > { %v1434_v37 = vadd.f32 1e-05, %v1402_v36  ;;  %1363 = vadd.xlane.f32.xlu1 %v1318_v42  ;;  %v1768_v45 = vpop.xlane.xlu0 %1767  ;;  %v903_v42 = vmul.f32 %v5633_v53, %v5633_v53  ;;  %v888_v44 = vmul.f32 %v5639_v47, %v5639_v47  ;;  %v7192_v1 = vmax.f32 %v7191_v19, 0.0  ;;  %v7194_v36 = vld [vmem:[#allocation78_spill] sm:$0xff] }
 0x1dc   : > { %v5657_v6 = vsub.f32 %v7187_v59, %v1272_v8  ;;  %v5661_v38 = vsub.f32 %v7189_v22, %v1271_v25  ;;  %v1770_v9 = vpop.xlane.xlu1 %1769  ;;  %v1831_v21 = vmul.f32 0.0078125, %v1768_v45  ;;  %v887_v8 = vmul.f32 %v5643_v52, %v5643_v52  ;;  %v7200_v22 = vld [vmem:[#allocation80_spill] sm:$0xff] }
 0x1dd   : > { %v5669_v48 = vsub.f32 %v7192_v1, %v1702_v4  ;;  %v1832_v31 = vmul.f32 0.0078125, %v1770_v9  ;;  %v7195_v25 = vmax.f32 %v7194_v36, 0.0  ;;  %v7198_v59 = vmax.f32 %v7197_v35, 0.0 }
 0x1de   : > { %7190 = vst [vmem:[#allocation71_spill] sm:$0xff] %v5661_v38  ;;  %v7201_v53 = vmax.f32 %v7200_v22, 0.0  ;;  %3657 = vrsqrt.f32 %v1434_v37  ;;  %v1686_v4 = vmul.f32 0.0078125, %v5529_v24  ;;  %v1863_v45 = vadd.f32 1e-05, %v1831_v21  ;;  %1791 = vadd.xlane.f32.xlu0 %v1747_v46  ;;  %v7203_v21 = vld [vmem:[#allocation81_spill] sm:$0xff] }
 0x1df   : > { %7193 = vst [vmem:[#allocation72_spill] sm:$0xff] %v5669_v48  ;;  %v5675_v3 = vsub.f32 %v7195_v25, %v1701_v41  ;;  %v5679_v54 = vsub.f32 %v7198_v59, %v1256_v40  ;;  %3659 = vrsqrt.f32 %v1433_v33  ;;  %v1864_v9 = vadd.f32 1e-05, %v1832_v31  ;;  %1793 = vadd.xlane.f32.xlu1 %v1748_v49  ;;  %v940_v36 = vpop.xlane.xlu0 %939 }
 0x1e0   : > { %v5683_v47 = vsub.f32 %v7201_v53, %v1255_v23  ;;  %v1685_v19 = vmul.f32 0.0078125, %v5531_v60  ;;  %v842_v41 = vmul.f32 0.0078125, %v5549_v32  ;;  %v942_v1 = vpop.xlane.xlu1 %941  ;;  %v1336_v40 = vmul.f32 %v5657_v6, %v5657_v6  ;;  %v3650_v23 = vpop.eup %3649 }
 0x1e1   : > { %7196 = vst [vmem:[#allocation73_spill] sm:$0xff] %v5675_v3  ;;  %7199 = vst [vmem:[#allocation74_spill] sm:$0xff] %v5679_v54  ;;  %v1335_v53 = vmul.f32 %v5661_v38, %v5661_v38  ;;  %3661 = vrsqrt.f32 %v1864_v9  ;;  %v988_v24 = vmul.f32 0.0078125, %v942_v1  ;;  %v987_v37 = vmul.f32 0.0078125, %v940_v36  ;;  %v3652_v33 = vpop.eup %3651  ;;  %v7205_v1 = vld [vmem:[#allocation82_spill] sm:$0xff] }
 0x1e2   : > { %7202 = vst [vmem:[#allocation75_spill] sm:$0xff] %v5683_v47  ;;  %v5694_v49 = vmul.f32 %v5669_v48, %v5669_v48  ;;  %3663 = vrsqrt.f32 %v1863_v45  ;;  %v5698_v32 = vmul.f32 %v5675_v3, %v5675_v3  ;;  %v5702_v60 = vmul.f32 %v5679_v54, %v5679_v54  ;;  %963 = vadd.xlane.f32.xlu0 %v903_v42  ;;  %v7207_v3 = vld [vmem:[#allocation83_spill] sm:$0xff] }
 0x1e3   : > { %v5706_v46 = vmul.f32 %v5683_v47, %v5683_v47  ;;  %v3654_v31 = vpop.eup %3653  ;;  %v7204_v25 = vmax.f32 %v7203_v21, 0.0  ;;  %v841_v59 = vmul.f32 0.0078125, %v5551_v13  ;;  %v1020_v22 = vadd.f32 1e-05, %v988_v24  ;;  %965 = vadd.xlane.f32.xlu1 %v904_v34 }
 0x1e4   : > { %v1019_v9 = vadd.f32 1e-05, %v987_v37  ;;  %v3656_v45 = vpop.eup %3655  ;;  %v7206_v36 = vmax.f32 %v7205_v1, 0.0  ;;  %v7208_v48 = vmax.f32 %v7207_v3, 0.0  ;;  %v826_v38 = vmul.f32 0.0078125, %v5575_v0  ;;  %v910_v21 = vpop.xlane.xlu1 %909 }
 0x1e5   : > { %v5710_v35 = vsub.f32 %v7204_v25, %v1686_v4  ;;  %v825_v4 = vmul.f32 0.0078125, %v5577_v28  ;;  %v908_v25 = vpop.xlane.xlu0 %907  ;;  %v1514_v13 = vmul.f32 %v3650_v23, %v4929_v51  ;;  %3665 = vrsqrt.f32 %v1020_v22  ;;  %v5730_v0 = vld [vmem:[%s6619_s7] ss:$0 sm:$0xff]  ;;  %v7209_v28 = vld [vmem:[#allocation84_spill] sm:$0xff] }
 0x1e6   : > { %v5715_v54 = vsub.f32 %v7206_v36, %v1685_v19  ;;  %v5719_v47 = vsub.f32 %v7208_v48, %v842_v41  ;;  %v972_v34 = vmul.f32 0.0078125, %v910_v21  ;;  %v971_v42 = vmul.f32 0.0078125, %v908_v25  ;;  %931 = vadd.xlane.f32.xlu0 %v887_v8 }
 0x1e7   : > { %v1513_v24 = vmul.f32 %v3652_v33, %v4924_v56  ;;  %v1944_v19 = vmul.f32 %v3654_v31, %v4947_v43  ;;  %v1943_v37 = vmul.f32 %v3656_v45, %v4937_v58  ;;  %3667 = vrsqrt.f32 %v1019_v9  ;;  %933 = vadd.xlane.f32.xlu1 %v888_v44  ;;  %v5743_v58 = vld [vmem:[%s6621_s9] ss:$0 sm:$0xff] }
 0x1e8   : > { %v7210_v48 = vmax.f32 %v7209_v28, 0.0  ;;  %v1004_v51 = vadd.f32 1e-05, %v972_v34  ;;  %v1003_v41 = vadd.f32 1e-05, %v971_v42  ;;  %v5738_v56 = vmul.f32 %v5710_v35, %v5710_v35  ;;  %v3658_v43 = vpop.eup %3657  ;;  %v1376_v44 = vpop.xlane.xlu1 %1375 }
 0x1e9   : > { %v7211_v23 = vmax.f32 %v4905_v55, 0.0  ;;  %v7212_v31 = vmax.f32 %v4908_v61, 0.0  ;;  %v1374_v8 = vpop.xlane.xlu0 %1373  ;;  %v5755_v22 = vmul.f32 %v5715_v54, %v5715_v54  ;;  %v5759_v9 = vmul.f32 %v5719_v47, %v5719_v47  ;;  %v3660_v45 = vpop.eup %3659  ;;  %v5765_v61 = vld [vmem:[%s6620_s8] ss:$0 sm:$0xff] }
 0x1ea   : > { %v5734_v3 = vsub.f32 %v7210_v48, %v841_v59  ;;  %3669 = vrsqrt.f32 %v1004_v51  ;;  %v1420_v1 = vmul.f32 0.0078125, %v1376_v44  ;;  %v1419_v55 = vmul.f32 0.0078125, %v1374_v8  ;;  %1397 = vadd.xlane.f32.xlu0 %v1335_v53  ;;  %v5778_v48 = vld [vmem:[%s6622_s10] ss:$0 sm:$0xff] }
 0x1eb   : > { %v5747_v33 = vsub.f32 %v7211_v23, %v826_v38  ;;  %v5751_v59 = vsub.f32 %v7212_v31, %v825_v4  ;;  %v1552_v38 = vmul.f32 %v5730_v0, %v1514_v13  ;;  %3671 = vrsqrt.f32 %v1003_v41  ;;  %v3662_v25 = vpop.eup %3661  ;;  %1399 = vadd.xlane.f32.xlu1 %v1336_v40 }
 0x1ec   : > { %v1551_v36 = vmul.f32 %v5730_v0, %v1513_v24  ;;  %v1981_v4 = vmul.f32 %v5743_v58, %v1943_v37  ;;  %v1982_v21 = vmul.f32 %v5743_v58, %v1944_v19  ;;  %v1498_v34 = vmul.f32 %v3658_v43, %v4961_v7  ;;  %v3664_v24 = vpop.eup %3663  ;;  %v7213_v19 = vld [vmem:[#allocation85_spill] sm:$0xff]  ;;  %v1806_v41 = vpop.xlane.xlu1 %1805  ;;  %v7214_v43 = vld [vmem:[#allocation86_spill] sm:$0xff] }
 0x1ed   : > { %v1452_v42 = vadd.f32 1e-05, %v1420_v1  ;;  %v1451_v28 = vadd.f32 1e-05, %v1419_v55  ;;  %v5773_v13 = vmul.f32 %v5734_v3, %v5734_v3  ;;  %v1497_v37 = vmul.f32 %v3660_v45, %v4965_v10  ;;  %v1804_v7 = vpop.xlane.xlu0 %1803 }
 0x1ee   : > { %v1928_v51 = vmul.f32 %v3662_v25, %v7213_v19  ;;  %v5784_v40 = vmul.f32 %v5747_v33, %v5747_v33  ;;  %v5788_v53 = vmul.f32 %v5751_v59, %v5751_v59  ;;  %v1927_v23 = vmul.f32 %v3664_v24, %v7214_v43  ;;  %1827 = vadd.xlane.f32.xlu0 %v5698_v32  ;;  %v5800_v24 = vld [vmem:[%s6617_s5] ss:$0 sm:$0xff] }
 0x1ef   : > { %v1850_v31 = vmul.f32 0.0078125, %v1806_v41  ;;  %v1849_v44 = vmul.f32 0.0078125, %v1804_v7  ;;  %v1590_v8 = vadd.f32 %v5765_v61, %v1552_v38  ;;  %3673 = vrsqrt.f32 %v1452_v42  ;;  %v3666_v55 = vpop.eup %3665  ;;  %1829 = vadd.xlane.f32.xlu1 %v5694_v49 }
 0x1f0   : > { %v1589_v10 = vadd.f32 %v5765_v61, %v1551_v36  ;;  %v2019_v45 = vadd.f32 %v5778_v48, %v1981_v4  ;;  %v2020_v1 = vadd.f32 %v5778_v48, %v1982_v21  ;;  %3675 = vrsqrt.f32 %v1451_v28  ;;  %v1344_v42 = vpop.xlane.xlu1 %1343 }
 0x1f1   : > { %v1882_v25 = vadd.f32 1e-05, %v1850_v31  ;;  %v1881_v19 = vadd.f32 1e-05, %v1849_v44  ;;  %v1536_v38 = vmul.f32 %v5730_v0, %v1498_v34  ;;  %v3668_v36 = vpop.eup %3667  ;;  %v1084_v4 = vmul.f32 %v3666_v55, %v4999_v5  ;;  %v1342_v21 = vpop.xlane.xlu0 %1341  ;;  %v5811_v34 = vld [vmem:[%s6618_s6] ss:$0 sm:$0xff] }
 0x1f2   : > { %v1535_v28 = vmul.f32 %v5730_v0, %v1497_v37  ;;  %v1965_v41 = vmul.f32 %v5743_v58, %v1927_v23  ;;  %v1966_v49 = vmul.f32 %v5743_v58, %v1928_v51  ;;  %v1083_v32 = vmul.f32 %v3668_v36, %v5003_v14  ;;  %1365 = vadd.xlane.f32.xlu0 %v5706_v46 }
 0x1f3   : > { %3677 = vrsqrt.f32 %v1882_v25  ;;  %v1404_v7 = vmul.f32 0.0078125, %v1344_v42  ;;  %v1403_v43 = vmul.f32 0.0078125, %v1342_v21  ;;  %v1122_v5 = vmul.f32 %v5800_v24, %v1084_v4  ;;  %1367 = vadd.xlane.f32.xlu1 %v5702_v60 }
 0x1f4   : > { %3679 = vrsqrt.f32 %v1881_v19  ;;  %v2051_v31 = vmul.f32 %v2019_v45, %v1589_v10  ;;  %v2052_v44 = vmul.f32 %v2020_v1, %v1590_v8  ;;  %v3670_v37 = vpop.eup %3669  ;;  %v1121_v14 = vmul.f32 %v5800_v24, %v1083_v32  ;;  %v1774_v42 = vpop.xlane.xlu1 %1773 }
 0x1f5   : > { %v1436_v55 = vadd.f32 1e-05, %v1404_v7  ;;  %v1435_v23 = vadd.f32 1e-05, %v1403_v43  ;;  %v1574_v51 = vadd.f32 %v5765_v61, %v1536_v38  ;;  %v3672_v25 = vpop.eup %3671  ;;  %v1068_v36 = vmul.f32 %v3670_v37, %v5015_v57  ;;  %v1772_v19 = vpop.xlane.xlu0 %1771 }
 0x1f6   : > { %v1160_v4 = vadd.f32 %v5811_v34, %v1122_v5  ;;  %v1573_v8 = vadd.f32 %v5765_v61, %v1535_v28  ;;  %v2004_v10 = vadd.f32 %v5778_v48, %v1966_v49  ;;  %v1067_v45 = vmul.f32 %v3672_v25, %v5019_v2  ;;  %1795 = vadd.xlane.f32.xlu0 %v5755_v22 }
 0x1f7   : > { %v1834_v60 = vmul.f32 0.0078125, %v1774_v42  ;;  %v1833_v1 = vmul.f32 0.0078125, %v1772_v19  ;;  %v2003_v46 = vadd.f32 %v5778_v48, %v1965_v41  ;;  %3681 = vrsqrt.f32 %v1435_v23  ;;  %1797 = vadd.xlane.f32.xlu1 %v5738_v56 }
 0x1f8   : > { %v1159_v38 = vadd.f32 %v5811_v34, %v1121_v14  ;;  %v2084_v21 = vmul.f32 %v2052_v44, %v1160_v4  ;;  %v1106_v57 = vmul.f32 %v5800_v24, %v1068_v36  ;;  %3683 = vrsqrt.f32 %v1436_v55  ;;  %v946_v49 = vpop.xlane.xlu1 %945 }
 0x1f9   : > { %v1866_v32 = vadd.f32 1e-05, %v1834_v60  ;;  %v1865_v7 = vadd.f32 1e-05, %v1833_v1  ;;  %v1105_v28 = vmul.f32 %v5800_v24, %v1067_v45  ;;  %v3674_v2 = vpop.eup %3673  ;;  %v944_v43 = vpop.xlane.xlu0 %943  ;;  %v2036_v23 = vmul.f32 %v2004_v10, %v1574_v51 }
 0x1fa   : > { %v2083_v5 = vmul.f32 %v2051_v31, %v1159_v38  ;;  %v2163_v41 = vand.u32 4294901760, %v2084_v21  ;;  %v1144_v37 = vadd.f32 %v5811_v34, %v1106_v57  ;;  %v3676_v44 = vpop.eup %3675  ;;  %v990_v14 = vmul.f32 0.0078125, %v946_v49  ;;  %967 = vadd.xlane.f32.xlu0 %v5773_v13 }
 0x1fb   : > { %3685 = vrsqrt.f32 %v1866_v32  ;;  %v989_v55 = vmul.f32 0.0078125, %v944_v43  ;;  %v2035_v25 = vmul.f32 %v2003_v46, %v1573_v8  ;;  %v1143_v22 = vadd.f32 %v5811_v34, %v1105_v28  ;;  %969 = vadd.xlane.f32.xlu1 %v5759_v9 }
 0x1fc   : > { %3687 = vrsqrt.f32 %v1865_v7  ;;  %v2160_v36 = vand.u32 4294901760, %v2083_v5  ;;  %v5830_v56 = vsub.f32 %v2084_v21, %v2163_v41  ;;  %v1516_v19 = vmul.f32 %v3674_v2, %v5027_v27  ;;  %v914_v8 = vpop.xlane.xlu1 %913 }
 0x1fd   : > { %v3678_v42 = vpop.eup %3677  ;;  %v1022_v4 = vadd.f32 1e-05, %v990_v14  ;;  %v1021_v31 = vadd.f32 1e-05, %v989_v55  ;;  %v2068_v51 = vmul.f32 %v2036_v23, %v1144_v37  ;;  %v1515_v45 = vmul.f32 %v3676_v44, %v5031_v63  ;;  %v912_v46 = vpop.xlane.xlu0 %911 }
 0x1fe   : > { %7215 = vst [vmem:[#allocation76_spill] sm:$0xff] %v5830_v56  ;;  %v3680_v10 = vpop.eup %3679  ;;  %v5837_v60 = vpack.c.bf16 %v2163_v41, %v2160_v36  ;;  %v5839_v1 = vsub.f32 %v2083_v5, %v2160_v36  ;;  %v2067_v38 = vmul.f32 %v2035_v25, %v1143_v22  ;;  %v1946_v21 = vmul.f32 %v3678_v42, %v5053_v12 }
 0x1ff   : > { %3689 = vrsqrt.f32 %v1022_v4  ;;  %v974_v27 = vmul.f32 0.0078125, %v914_v8  ;;  %v973_v57 = vmul.f32 0.0078125, %v912_v46  ;;  %v1945_v9 = vmul.f32 %v3680_v10, %v5057_v17  ;;  %937 = vadd.xlane.f32.xlu1 %v5784_v40  ;;  %935 = vadd.xlane.f32.xlu0 %v5788_v53 }
 0x200   : > { %7216 = vst [vmem:[#allocation77_spill] sm:$0xff] %v5837_v60  ;;  %7217 = vst [vmem:[#allocation78_spill] sm:$0xff] %v5839_v1  ;;  %3691 = vrsqrt.f32 %v1021_v31  ;;  %3383 = vmatprep.subr.bf16.mxu1 %v5837_v60  ;;  %3479 = vmatprep.subr.bf16.mxu0 %v5837_v60  ;;  %v2112_v63 = vand.u32 4294901760, %v2067_v38  ;;  %v2115_v13 = vand.u32 4294901760, %v2068_v51  ;;  %v1380_v12 = vpop.xlane.xlu1 %1379  ;;  %v1553_v23 = vmul.f32 %v5730_v0, %v1515_v45 }
 0x201   : > { %v1006_v32 = vadd.f32 1e-05, %v974_v27  ;;  %v1005_v7 = vadd.f32 1e-05, %v973_v57  ;;  %v3682_v28 = vpop.eup %3681  ;;  %v1378_v43 = vpop.xlane.xlu0 %1377  ;;  %v1422_v41 = vmul.f32 0.0078125, %v1380_v12  ;;  %v1554_v40 = vmul.f32 %v5730_v0, %v1516_v19 }
 0x202   : > { %v5847_v2 = vpack.c.bf16 %v2115_v13, %v2112_v63  ;;  %v5849_v49 = vsub.f32 %v2067_v38, %v2112_v63  ;;  %v5851_v17 = vsub.f32 %v2068_v51, %v2115_v13  ;;  %v3684_v5 = vpop.eup %3683  ;;  %v1421_v37 = vmul.f32 0.0078125, %v1378_v43 }
 0x203   : > { %3693 = vrsqrt.f32 %v1006_v32  ;;  %v1983_v53 = vmul.f32 %v5743_v58, %v1945_v9  ;;  %v1984_v44 = vmul.f32 %v5743_v58, %v1946_v21  ;;  %v1499_v55 = vmul.f32 %v3682_v28, %v5073_v15 }
 0x204   : > { %7218 = vst [vmem:[#allocation79_spill] sm:$0xff] %v5847_v2  ;;  %7219 = vst [vmem:[#allocation80_spill] sm:$0xff] %v5849_v49  ;;  %3695 = vrsqrt.f32 %v1005_v7  ;;  %3385 = vmatpush3.bf16.xpose.msra.mxu1 %v5847_v2  ;;  %3481 = vmatpush3.bf16.xpose.msra.mxu0 %v5847_v2  ;;  %v1454_v25 = vadd.f32 1e-05, %v1422_v41  ;;  %v1453_v36 = vadd.f32 1e-05, %v1421_v37  ;;  %v1500_v42 = vmul.f32 %v3684_v5, %v5069_v18  ;;  %v1810_v31 = vpop.xlane.xlu1 %1809 }
 0x205   : > { %7220 = vst [vmem:[#allocation81_spill] sm:$0xff] %v5851_v17  ;;  %v3686_v14 = vpop.eup %3685  ;;  %v1808_v51 = vpop.xlane.xlu0 %1807  ;;  %v1852_v45 = vmul.f32 0.0078125, %v1810_v31  ;;  %v1591_v8 = vadd.f32 %v5765_v61, %v1553_v23  ;;  %v1592_v46 = vadd.f32 %v5765_v61, %v1554_v40  ;;  %v2021_v15 = vadd.f32 %v5778_v48, %v1983_v53 }
 0x206   : > { %v3688_v22 = vpop.eup %3687  ;;  %v1930_v4 = vmul.f32 %v3686_v14, %v5081_v39  ;;  %v1851_v19 = vmul.f32 0.0078125, %v1808_v51  ;;  %3697 = vrsqrt.f32 %v1454_v25  ;;  %v2022_v38 = vadd.f32 %v5778_v48, %v1984_v44 }
 0x207   : > { %v1929_v10 = vmul.f32 %v3688_v22, %v5085_v62  ;;  %3699 = vrsqrt.f32 %v1453_v36  ;;  %v1884_v18 = vadd.f32 1e-05, %v1852_v45  ;;  %v1537_v39 = vmul.f32 %v5730_v0, %v1499_v55 }
 0x208   : > { %v1883_v27 = vadd.f32 1e-05, %v1851_v19  ;;  %v1348_v9 = vpop.xlane.xlu1 %1347  ;;  %v1538_v13 = vmul.f32 %v5730_v0, %v1500_v42  ;;  %v1968_v7 = vmul.f32 %v5743_v58, %v1930_v4  ;;  %v2053_v41 = vmul.f32 %v2021_v15, %v1591_v8 }
 0x209   : > { %v3690_v21 = vpop.eup %3689  ;;  %v1346_v63 = vpop.xlane.xlu0 %1345  ;;  %v1967_v32 = vmul.f32 %v5743_v58, %v1929_v10  ;;  %3701 = vrsqrt.f32 %v1884_v18  ;;  %v1406_v12 = vmul.f32 0.0078125, %v1348_v9  ;;  %v2054_v37 = vmul.f32 %v2022_v38, %v1592_v46 }
 0x20a   : > { %v3692_v57 = vpop.eup %3691  ;;  %v1086_v62 = vmul.f32 %v3690_v21, %v5107_v20  ;;  %v1405_v43 = vmul.f32 0.0078125, %v1346_v63  ;;  %3703 = vrsqrt.f32 %v1883_v27  ;;  %v1575_v44 = vadd.f32 %v5765_v61, %v1537_v39 }
 0x20b   : > { %v1085_v28 = vmul.f32 %v3692_v57, %v5111_v29  ;;  %v1438_v20 = vadd.f32 1e-05, %v1406_v12  ;;  %v1576_v22 = vadd.f32 %v5765_v61, %v1538_v13  ;;  %v2005_v42 = vadd.f32 %v5778_v48, %v1967_v32 }
 0x20c   : > { %v1124_v5 = vmul.f32 %v5800_v24, %v1086_v62  ;;  %v1437_v40 = vadd.f32 1e-05, %v1405_v43  ;;  %v1778_v25 = vpop.xlane.xlu1 %1777  ;;  %v2006_v10 = vadd.f32 %v5778_v48, %v1968_v7  ;;  %v7221_v43 = vld [vmem:[#allocation87_spill] sm:$0xff] }
 0x20d   : > { %v3694_v23 = vpop.eup %3693  ;;  %v1123_v53 = vmul.f32 %v5800_v24, %v1085_v28  ;;  %v1776_v29 = vpop.xlane.xlu0 %1775  ;;  %v1836_v31 = vmul.f32 0.0078125, %v1778_v25  ;;  %v2037_v57 = vmul.f32 %v2005_v42, %v1575_v44 }
 0x20e   : > { %v3696_v14 = vpop.eup %3695  ;;  %v1070_v55 = vmul.f32 %v3694_v23, %v5123_v30  ;;  %v1162_v36 = vadd.f32 %v5811_v34, %v1124_v5  ;;  %v1835_v51 = vmul.f32 0.0078125, %v1776_v29  ;;  %3705 = vrsqrt.f32 %v1437_v40  ;;  %v7222_v40 = vld [vmem:[#allocation88_spill] sm:$0xff] }
 0x20f   : > { %v1069_v4 = vmul.f32 %v3696_v14, %v5127_v16  ;;  %v1161_v45 = vadd.f32 %v5811_v34, %v1123_v53  ;;  %3707 = vrsqrt.f32 %v1438_v20  ;;  %v1868_v8 = vadd.f32 1e-05, %v1836_v31  ;;  %v7226_v31 = vld [vmem:[#allocation90_spill] sm:$0xff] }
 0x210   : > { %v2086_v19 = vmul.f32 %v2054_v37, %v1162_v36  ;;  %v1108_v30 = vmul.f32 %v5800_v24, %v1070_v55  ;;  %v1867_v46 = vadd.f32 1e-05, %v1835_v51  ;;  %v3698_v38 = vpop.eup %3697  ;;  %v950_v21 = vpop.xlane.xlu1 %949  ;;  %v2038_v13 = vmul.f32 %v2006_v10, %v1576_v22  ;;  %v7225_v36 = vld [vmem:[#allocation89_spill] sm:$0xff] }
 0x211   : > { %v1107_v15 = vmul.f32 %v5800_v24, %v1069_v4  ;;  %v948_v18 = vpop.xlane.xlu0 %947  ;;  %v2085_v27 = vmul.f32 %v2053_v41, %v1161_v45  ;;  %v3700_v62 = vpop.eup %3699  ;;  %3709 = vrsqrt.f32 %v1868_v8  ;;  %v992_v9 = vmul.f32 0.0078125, %v950_v21 }
 0x212   : > { %v2169_v16 = vand.u32 4294901760, %v2086_v19  ;;  %v1146_v39 = vadd.f32 %v5811_v34, %v1108_v30  ;;  %v991_v63 = vmul.f32 0.0078125, %v948_v18  ;;  %3711 = vrsqrt.f32 %v1867_v46 }
 0x213   : > { %v2166_v32 = vand.u32 4294901760, %v2085_v27  ;;  %v1145_v28 = vadd.f32 %v5811_v34, %v1107_v15  ;;  %v3702_v12 = vpop.eup %3701  ;;  %v1518_v5 = vmul.f32 %v3698_v38, %v7221_v43  ;;  %v1024_v37 = vadd.f32 1e-05, %v992_v9 }
 0x214   : > { %v5886_v7 = vsub.f32 %v2086_v19, %v2169_v16  ;;  %v1023_v41 = vadd.f32 1e-05, %v991_v63  ;;  %v2070_v23 = vmul.f32 %v2038_v13, %v1146_v39  ;;  %v3704_v20 = vpop.eup %3703  ;;  %v1517_v53 = vmul.f32 %v3700_v62, %v7222_v40  ;;  %v918_v44 = vpop.xlane.xlu1 %917 }
 0x215   : > { %v5891_v14 = vpack.c.bf16 %v2169_v16, %v2166_v32  ;;  %v5893_v55 = vsub.f32 %v2085_v27, %v2166_v32  ;;  %v916_v25 = vpop.xlane.xlu0 %915  ;;  %v2069_v29 = vmul.f32 %v2037_v57, %v1145_v28  ;;  %v1948_v22 = vmul.f32 %v3702_v12, %v7225_v36  ;;  %v7229_v32 = vld [vmem:[#allocation20_spill] sm:$0xff] }
 0x216   : > { %3713 = vrsqrt.f32 %v1024_v37  ;;  %v976_v42 = vmul.f32 0.0078125, %v918_v44  ;;  %v975_v4 = vmul.f32 0.0078125, %v916_v25  ;;  %v1947_v51 = vmul.f32 %v3704_v20, %v7226_v31  ;;  %v7231_v20 = vld [vmem:[#allocation21_spill] sm:$0xff] }
 0x217   : > { %7223 = vst [vmem:[#allocation82_spill] sm:$0xff] %v5891_v14  ;;  %7224 = vst [vmem:[#allocation83_spill] sm:$0xff] %v5893_v55  ;;  %3715 = vrsqrt.f32 %v1023_v41  ;;  %3387 = vmatprep.subr.bf16.mxu1 %v5891_v14  ;;  %3483 = vmatprep.subr.bf16.mxu0 %v5891_v14  ;;  %v2118_v10 = vand.u32 4294901760, %v2069_v29  ;;  %v2121_v45 = vand.u32 4294901760, %v2070_v23  ;;  %v1555_v57 = vmul.f32 %v5730_v0, %v1517_v53  ;;  %v7230_v41 = vld [vmem:[#allocation19_spill] sm:$0xff] }
 0x218   : > { %v1008_v19 = vadd.f32 1e-05, %v976_v42  ;;  %v1007_v30 = vadd.f32 1e-05, %v975_v4  ;;  %v3706_v8 = vpop.eup %3705  ;;  %v1384_v46 = vpop.xlane.xlu1 %1383  ;;  %v1556_v62 = vmul.f32 %v5730_v0, %v1518_v5  ;;  %v1985_v9 = vmul.f32 %v5743_v58, %v1947_v51 }
 0x219   : > { %v5899_v15 = vpack.c.bf16 %v2121_v45, %v2118_v10  ;;  %v5901_v38 = vsub.f32 %v2069_v29, %v2118_v10  ;;  %v5903_v21 = vsub.f32 %v2070_v23, %v2121_v45  ;;  %v1382_v18 = vpop.xlane.xlu0 %1381  ;;  %v3708_v27 = vpop.eup %3707  ;;  %v1424_v16 = vmul.f32 0.0078125, %v1384_v46  ;;  %v7232_v29 = vld [vmem:[#allocation22_spill] sm:$0xff] }
 0x21a   : > { %3717 = vrsqrt.f32 %v1008_v19  ;;  %v1423_v39 = vmul.f32 0.0078125, %v1382_v18  ;;  %v1986_v63 = vmul.f32 %v5743_v58, %v1948_v22  ;;  %v1501_v28 = vmul.f32 %v3706_v8, %v7229_v32  ;;  %v7233_v18 = vld [vmem:[#allocation23_spill] sm:$0xff] }
 0x21b   : > { %7227 = vst [vmem:[#allocation84_spill] sm:$0xff] %v5899_v15  ;;  %7228 = vst [vmem:[#allocation85_spill] sm:$0xff] %v5903_v21  ;;  %3719 = vrsqrt.f32 %v1007_v30  ;;  %3389 = vmatpush3.bf16.xpose.msra.mxu1 %v5899_v15  ;;  %3485 = vmatpush3.bf16.xpose.msra.mxu0 %v5899_v15  ;;  %v3710_v13 = vpop.eup %3709  ;;  %v1456_v12 = vadd.f32 1e-05, %v1424_v16  ;;  %v1502_v23 = vmul.f32 %v3708_v27, %v7230_v41  ;;  %v6866_v25 = vand.u32 4294901760, %v5839_v1 }
 0x21c   : > { %v1455_v43 = vadd.f32 1e-05, %v1423_v39  ;;  %v3712_v37 = vpop.eup %3711  ;;  %v1932_v40 = vmul.f32 %v3710_v13, %v7231_v20  ;;  %v1814_v53 = vpop.xlane.xlu1 %1813  ;;  %v6865_v5 = vand.u32 4294901760, %v5830_v56  ;;  %v1593_v4 = vadd.f32 %v5765_v61, %v1555_v57 }
 0x21d   : > { %v1812_v44 = vpop.xlane.xlu0 %1811  ;;  %v1931_v36 = vmul.f32 %v3712_v37, %v7232_v29  ;;  %v1854_v42 = vmul.f32 0.0078125, %v1814_v53  ;;  %3721 = vrsqrt.f32 %v1456_v12  ;;  %v1594_v31 = vadd.f32 %v5765_v61, %v1556_v62 }
 0x21e   : > { %v1853_v22 = vmul.f32 0.0078125, %v1812_v44  ;;  %v2023_v51 = vadd.f32 %v5778_v48, %v1985_v9  ;;  %v2024_v10 = vadd.f32 %v5778_v48, %v1986_v63  ;;  %3723 = vrsqrt.f32 %v1455_v43  ;;  %v7234_v9 = vld [vmem:[#allocation24_spill] sm:$0xff] }
 0x21f   : > { %v1886_v19 = vadd.f32 1e-05, %v1854_v42  ;;  %v1539_v8 = vmul.f32 %v5730_v0, %v1501_v28  ;;  %v1540_v57 = vmul.f32 %v5730_v0, %v1502_v23  ;;  %v1969_v13 = vmul.f32 %v5743_v58, %v1931_v36  ;;  %v7235_v36 = vld [vmem:[#allocation25_spill] sm:$0xff] }
 0x220   : > { %v3714_v45 = vpop.eup %3713  ;;  %v1885_v30 = vadd.f32 1e-05, %v1853_v22  ;;  %v1352_v16 = vpop.xlane.xlu1 %1351  ;;  %v1970_v62 = vmul.f32 %v5743_v58, %v1932_v40  ;;  %v2055_v28 = vmul.f32 %v2023_v51, %v1593_v4  ;;  %v2056_v37 = vmul.f32 %v2024_v10, %v1594_v31  ;;  %v7236_v4 = vld [vmem:[#allocation26_spill] sm:$0xff] }
 0x221   : > { %v3716_v46 = vpop.eup %3715  ;;  %v1088_v27 = vmul.f32 %v3714_v45, %v7233_v18  ;;  %v1350_v39 = vpop.xlane.xlu0 %1349  ;;  %3725 = vrsqrt.f32 %v1886_v19  ;;  %v1408_v63 = vmul.f32 0.0078125, %v1352_v16  ;;  %v1577_v23 = vadd.f32 %v5765_v61, %v1539_v8 }
 0x222   : > { %v1087_v32 = vmul.f32 %v3716_v46, %v7234_v9  ;;  %v1407_v12 = vmul.f32 0.0078125, %v1350_v39  ;;  %3727 = vrsqrt.f32 %v1885_v30  ;;  %v2007_v19 = vadd.f32 %v5778_v48, %v1969_v13 }
 0x223   : > { %v1126_v43 = vmul.f32 %v5800_v24, %v1088_v27  ;;  %v1440_v20 = vadd.f32 1e-05, %v1408_v63  ;;  %v2008_v30 = vadd.f32 %v5778_v48, %v1970_v62  ;;  %v1578_v9 = vadd.f32 %v5765_v61, %v1540_v57 }
 0x224   : > { %v3718_v41 = vpop.eup %3717  ;;  %v1439_v53 = vadd.f32 1e-05, %v1407_v12  ;;  %v1125_v44 = vmul.f32 %v5800_v24, %v1087_v32  ;;  %v1782_v42 = vpop.xlane.xlu1 %1781 }
 0x225   : > { %v3720_v29 = vpop.eup %3719  ;;  %v1072_v40 = vmul.f32 %v3718_v41, %v7235_v36  ;;  %v1780_v22 = vpop.xlane.xlu0 %1779  ;;  %v1164_v45 = vadd.f32 %v5811_v34, %v1126_v43  ;;  %3729 = vrsqrt.f32 %v1440_v20  ;;  %v1838_v51 = vmul.f32 0.0078125, %v1782_v42  ;;  %v7237_v42 = vld [vmem:[#allocation27_spill] sm:$0xff] }
 0x226   : > { %v1071_v31 = vmul.f32 %v3720_v29, %v7236_v4  ;;  %v1837_v10 = vmul.f32 0.0078125, %v1780_v22  ;;  %3731 = vrsqrt.f32 %v1439_v53  ;;  %v1163_v46 = vadd.f32 %v5811_v34, %v1125_v44 }
 0x227   : > { %v2088_v8 = vmul.f32 %v2056_v37, %v1164_v45  ;;  %v1110_v18 = vmul.f32 %v5800_v24, %v1072_v40  ;;  %v1870_v27 = vadd.f32 1e-05, %v1838_v51  ;;  %v3722_v13 = vpop.eup %3721  ;;  %v2039_v41 = vmul.f32 %v2007_v19, %v1577_v23  ;;  %v7238_v51 = vld [vmem:[#allocation28_spill] sm:$0xff] }
 0x228   : > { %v1869_v16 = vadd.f32 1e-05, %v1837_v10  ;;  %v1109_v39 = vmul.f32 %v5800_v24, %v1071_v31  ;;  %v954_v32 = vpop.xlane.xlu1 %953  ;;  %v2087_v63 = vmul.f32 %v2055_v28, %v1163_v46  ;;  %v3724_v20 = vpop.eup %3723  ;;  %v2040_v44 = vmul.f32 %v2008_v30, %v1578_v9  ;;  %v7241_v9 = vld [vmem:[#allocation30_spill] sm:$0xff] }
 0x229   : > { %v952_v62 = vpop.xlane.xlu0 %951  ;;  %v2175_v12 = vand.u32 4294901760, %v2088_v8  ;;  %v1148_v43 = vadd.f32 %v5811_v34, %v1110_v18  ;;  %3733 = vrsqrt.f32 %v1870_v27  ;;  %v994_v53 = vmul.f32 0.0078125, %v954_v32 }
 0x22a   : > { %v993_v37 = vmul.f32 0.0078125, %v952_v62  ;;  %3735 = vrsqrt.f32 %v1869_v16  ;;  %v2172_v29 = vand.u32 4294901760, %v2087_v63  ;;  %v1147_v40 = vadd.f32 %v5811_v34, %v1109_v39 }
 0x22b   : > { %v5940_v36 = vsub.f32 %v2088_v8, %v2175_v12  ;;  %v3726_v57 = vpop.eup %3725  ;;  %v1520_v22 = vmul.f32 %v3722_v13, %v7237_v42  ;;  %v1026_v45 = vadd.f32 1e-05, %v994_v53  ;;  %v2072_v4 = vmul.f32 %v2040_v44, %v1148_v43  ;;  %v7240_v8 = vld [vmem:[#allocation29_spill] sm:$0xff] }
 0x22c   : > { %v1025_v28 = vadd.f32 1e-05, %v993_v37  ;;  %v3728_v31 = vpop.eup %3727  ;;  %v1519_v23 = vmul.f32 %v3724_v20, %v7238_v51  ;;  %v922_v19 = vpop.xlane.xlu1 %921  ;;  %v5945_v10 = vpack.c.bf16 %v2175_v12, %v2172_v29  ;;  %v5947_v46 = vsub.f32 %v2087_v63, %v2172_v29  ;;  %v7243_v51 = vld [vmem:[#allocation32_spill] sm:$0xff] }
 0x22d   : > { %v920_v30 = vpop.xlane.xlu0 %919  ;;  %v2071_v18 = vmul.f32 %v2039_v41, %v1147_v40  ;;  %v1950_v27 = vmul.f32 %v3726_v57, %v7240_v8  ;;  %3737 = vrsqrt.f32 %v1026_v45  ;;  %v978_v16 = vmul.f32 0.0078125, %v922_v19  ;;  %v7244_v8 = vld [vmem:[#allocation31_spill] sm:$0xff] }
 0x22e   : > { %7239 = vst [vmem:[#allocation86_spill] sm:$0xff] %v5945_v10  ;;  %v977_v39 = vmul.f32 0.0078125, %v920_v30  ;;  %v1949_v13 = vmul.f32 %v3728_v31, %v7241_v9  ;;  %3739 = vrsqrt.f32 %v1025_v28  ;;  %3391 = vmatprep.subr.bf16.mxu1 %v5945_v10  ;;  %3487 = vmatprep.subr.bf16.mxu0 %v5945_v10  ;;  %v2127_v62 = vand.u32 4294901760, %v2072_v4 }
 0x22f   : > { %v2124_v32 = vand.u32 4294901760, %v2071_v18  ;;  %v3730_v12 = vpop.eup %3729  ;;  %v1010_v43 = vadd.f32 1e-05, %v978_v16  ;;  %v5956_v41 = vsub.f32 %v5839_v1, %v6866_v25  ;;  %v5961_v20 = vsub.f32 %v5830_v56, %v6865_v5 }
 0x230   : > { %v1009_v63 = vadd.f32 1e-05, %v977_v39  ;;  %v3732_v53 = vpop.eup %3731  ;;  %v1388_v37 = vpop.xlane.xlu1 %1387  ;;  %v5967_v40 = vsub.f32 %v2072_v4, %v2127_v62  ;;  %v1557_v42 = vmul.f32 %v5730_v0, %v1519_v23  ;;  %v1558_v31 = vmul.f32 %v5730_v0, %v1520_v22  ;;  %v7245_v22 = vld [vmem:[#allocation33_spill] sm:$0xff] }
 0x231   : > { %v5963_v44 = vpack.c.bf16 %v2127_v62, %v2124_v32  ;;  %v5965_v29 = vsub.f32 %v2071_v18, %v2124_v32  ;;  %v1386_v57 = vpop.xlane.xlu0 %1385  ;;  %3741 = vrsqrt.f32 %v1010_v43  ;;  %v1426_v45 = vmul.f32 0.0078125, %v1388_v37 }
 0x232   : > { %v1425_v28 = vmul.f32 0.0078125, %v1386_v57  ;;  %v1503_v19 = vmul.f32 %v3732_v53, %v7243_v51  ;;  %3743 = vrsqrt.f32 %v1009_v63  ;;  %v1987_v30 = vmul.f32 %v5743_v58, %v1949_v13  ;;  %v7246_v57 = vld [vmem:[#allocation34_spill] sm:$0xff] }
 0x233   : > { %7242 = vst [vmem:[#allocation87_spill] sm:$0xff] %v5963_v44  ;;  %3393 = vmatpush3.bf16.xpose.msra.mxu1 %v5963_v44  ;;  %3489 = vmatpush3.bf16.xpose.msra.mxu0 %v5963_v44  ;;  %v1988_v4 = vmul.f32 %v5743_v58, %v1950_v27  ;;  %v3734_v18 = vpop.eup %3733  ;;  %v1504_v16 = vmul.f32 %v3730_v12, %v7244_v8  ;;  %v1458_v23 = vadd.f32 1e-05, %v1426_v45  ;;  %v6867_v12 = vmov 2.2351742e-08  }
 0x234   : > { %v1457_v39 = vadd.f32 1e-05, %v1425_v28  ;;  %v3736_v32 = vpop.eup %3735  ;;  %v1934_v62 = vmul.f32 %v3734_v18, %v7245_v22  ;;  %v1818_v43 = vpop.xlane.xlu1 %1817  ;;  %v1595_v53 = vadd.f32 %v5765_v61, %v1557_v42  ;;  %v1596_v5 = vadd.f32 %v5765_v61, %v1558_v31  ;;  %3210 = vmatprep.mubr.f32.mxu1 %v6867_v12 }
 0x235   : > { %v1816_v63 = vpop.xlane.xlu0 %1815  ;;  %v1933_v13 = vmul.f32 %v3736_v32, %v7246_v57  ;;  %v1856_v51 = vmul.f32 0.0078125, %v1818_v43  ;;  %3745 = vrsqrt.f32 %v1458_v23  ;;  %v2025_v45 = vadd.f32 %v5778_v48, %v1987_v30  ;;  %v7248_v30 = vld [vmem:[#allocation36_spill] sm:$0xff] }
 0x236   : > { %v1855_v27 = vmul.f32 0.0078125, %v1816_v63  ;;  %v2026_v28 = vadd.f32 %v5778_v48, %v1988_v4  ;;  %v1541_v18 = vmul.f32 %v5730_v0, %v1503_v19  ;;  %3747 = vrsqrt.f32 %v1457_v39  ;;  %v7247_v63 = vld [vmem:[#allocation35_spill] sm:$0xff] }
 0x237   : > { %v3738_v8 = vpop.eup %3737  ;;  %v1888_v42 = vadd.f32 1e-05, %v1856_v51  ;;  %v1542_v32 = vmul.f32 %v5730_v0, %v1504_v16  ;;  %v1971_v12 = vmul.f32 %v5743_v58, %v1933_v13  ;;  %v1972_v23 = vmul.f32 %v5743_v58, %v1934_v62 }
 0x238   : > { %v1887_v22 = vadd.f32 1e-05, %v1855_v27  ;;  %v3740_v43 = vpop.eup %3739  ;;  %v1090_v57 = vmul.f32 %v3738_v8, %v7247_v63  ;;  %v1356_v31 = vpop.xlane.xlu1 %1355  ;;  %v6868_v9 = vmov 9.417534e-06   ;;  %v2057_v16 = vmul.f32 %v2025_v45, %v1595_v53  ;;  %v7250_v53 = vld [vmem:[#allocation38_spill] sm:$0xff] }
 0x239   : > { %v1354_v25 = vpop.xlane.xlu0 %1353  ;;  %v1089_v37 = vmul.f32 %v3740_v43, %v7248_v30  ;;  %3749 = vrsqrt.f32 %v1888_v42  ;;  %v1410_v4 = vmul.f32 0.0078125, %v1356_v31  ;;  %3312 = vmatprep.mubr.f32.mxu0 %v6868_v9  ;;  %v2058_v39 = vmul.f32 %v2026_v28, %v1596_v5  ;;  %v7249_v43 = vld [vmem:[#allocation37_spill] sm:$0xff]  ;;  %v7255_v9 = vld [vmem:[#allocation42_spill] sm:$0xff] }
 0x23a   : > { %v1409_v19 = vmul.f32 0.0078125, %v1354_v25  ;;  %3751 = vrsqrt.f32 %v1887_v22  ;;  %v1128_v0 = vmul.f32 %v5800_v24, %v1090_v57  ;;  %v1579_v58 = vadd.f32 %v5765_v61, %v1541_v18 }
 0x23b   : > { %v3742_v51 = vpop.eup %3741  ;;  %v1442_v27 = vadd.f32 1e-05, %v1410_v4  ;;  %v1127_v13 = vmul.f32 %v5800_v24, %v1089_v37  ;;  %v1580_v22 = vadd.f32 %v5765_v61, %v1542_v32  ;;  %v2009_v57 = vadd.f32 %v5778_v48, %v1971_v12 }
 0x23c   : > { %v1441_v8 = vadd.f32 1e-05, %v1409_v19  ;;  %v3744_v62 = vpop.eup %3743  ;;  %v1074_v42 = vmul.f32 %v3742_v51, %v7249_v43  ;;  %v1786_v63 = vpop.xlane.xlu1 %1785  ;;  %v1166_v31 = vadd.f32 %v5811_v34, %v1128_v0  ;;  %v2010_v30 = vadd.f32 %v5778_v48, %v1972_v23 }
 0x23d   : > { %v1784_v25 = vpop.xlane.xlu0 %1783  ;;  %v1073_v5 = vmul.f32 %v3744_v62, %v7250_v53  ;;  %v1840_v45 = vmul.f32 0.0078125, %v1786_v63  ;;  %v1165_v37 = vadd.f32 %v5811_v34, %v1127_v13  ;;  %v7251_v53 = vld [vmem:[#allocation39_spill] sm:$0xff] }
 0x23e   : > { %v1839_v28 = vmul.f32 0.0078125, %v1784_v25  ;;  %3753 = vrsqrt.f32 %v1441_v8  ;;  %v2090_v18 = vmul.f32 %v2058_v39, %v1166_v31  ;;  %v1112_v4 = vmul.f32 %v5800_v24, %v1074_v42 }
 0x23f   : > { %3755 = vrsqrt.f32 %v1442_v27  ;;  %v1872_v19 = vadd.f32 1e-05, %v1840_v45  ;;  %v1111_v0 = vmul.f32 %v5800_v24, %v1073_v5  ;;  %v3746_v61 = vpop.eup %3745  ;;  %v2089_v43 = vmul.f32 %v2057_v16, %v1165_v37 }
 0x240   : > { %v1871_v51 = vadd.f32 1e-05, %v1839_v28  ;;  %v958_v32 = vpop.xlane.xlu1 %957  ;;  %v2181_v62 = vand.u32 4294901760, %v2090_v18  ;;  %v1150_v63 = vadd.f32 %v5811_v34, %v1112_v4  ;;  %v2041_v25 = vmul.f32 %v2009_v57, %v1579_v58  ;;  %v3748_v48 = vpop.eup %3747  ;;  %v7252_v4 = vld [vmem:[#allocation40_spill] sm:$0xff] }
 0x241   : > { %v956_v12 = vpop.xlane.xlu0 %955  ;;  %3757 = vrsqrt.f32 %v1872_v19  ;;  %v996_v23 = vmul.f32 0.0078125, %v958_v32  ;;  %v2042_v39 = vmul.f32 %v2010_v30, %v1580_v22  ;;  %v2178_v13 = vand.u32 4294901760, %v2089_v43 }
 0x242   : > { %v995_v8 = vmul.f32 0.0078125, %v956_v12  ;;  %3759 = vrsqrt.f32 %v1871_v51  ;;  %v6006_v27 = vsub.f32 %v2090_v18, %v2181_v62  ;;  %v1149_v42 = vadd.f32 %v5811_v34, %v1111_v0  ;;  %v7254_v18 = vld [vmem:[#allocation41_spill] sm:$0xff] }
 0x243   : > { %v3750_v31 = vpop.eup %3749  ;;  %v1522_v5 = vmul.f32 %v3746_v61, %v7251_v53  ;;  %v1028_v45 = vadd.f32 1e-05, %v996_v23  ;;  %v2074_v28 = vmul.f32 %v2042_v39, %v1150_v63  ;;  %v1521_v58 = vmul.f32 %v3748_v48, %v7252_v4 }
 0x244   : > { %v1027_v16 = vadd.f32 1e-05, %v995_v8  ;;  %v3752_v37 = vpop.eup %3751  ;;  %v926_v57 = vpop.xlane.xlu1 %925  ;;  %v6011_v19 = vpack.c.bf16 %v2181_v62, %v2178_v13  ;;  %v6013_v32 = vsub.f32 %v2089_v43, %v2178_v13  ;;  %v2073_v30 = vmul.f32 %v2041_v25, %v1149_v42 }
 0x245   : > { %v924_v22 = vpop.xlane.xlu0 %923  ;;  %v1952_v51 = vmul.f32 %v3750_v31, %v7254_v18  ;;  %3761 = vrsqrt.f32 %v1028_v45  ;;  %v980_v0 = vmul.f32 0.0078125, %v926_v57  ;;  %v1951_v61 = vmul.f32 %v3752_v37, %v7255_v9  ;;  %v6035_v57 = vld [vmem:[%s6619_s7] ss:$0 sm:$0xff] }
 0x246   : > { %7253 = vst [vmem:[#allocation88_spill] sm:$0xff] %v6011_v19  ;;  %v979_v12 = vmul.f32 0.0078125, %v924_v22  ;;  %3763 = vrsqrt.f32 %v1027_v16  ;;  %3395 = vmatprep.subr.bf16.mxu1 %v6011_v19  ;;  %3491 = vmatprep.subr.bf16.mxu0 %v6011_v19  ;;  %v2130_v63 = vand.u32 4294901760, %v2073_v30  ;;  %v2133_v48 = vand.u32 4294901760, %v2074_v28 }
 0x247   : > { %v1012_v62 = vadd.f32 1e-05, %v980_v0  ;;  %v7257_v31 = vand.u32 4294901760, %v5956_v41  ;;  %v7258_v53 = vand.u32 4294901760, %v5961_v20  ;;  %v1559_v22 = vmul.f32 %v6035_v57, %v1521_v58  ;;  %v6044_v20 = vld [vmem:[%s6621_s9] ss:$0 sm:$0xff] }
 0x248   : > { %v1011_v23 = vadd.f32 1e-05, %v979_v12  ;;  %v3754_v8 = vpop.eup %3753  ;;  %v1392_v25 = vpop.xlane.xlu1 %1391  ;;  %v6020_v39 = vpack.c.bf16 %v2133_v48, %v2130_v63  ;;  %v6022_v13 = vsub.f32 %v2073_v30, %v2130_v63  ;;  %v6024_v42 = vsub.f32 %v2074_v28, %v2133_v48  ;;  %v7260_v0 = vld [vmem:[#allocation44_spill] sm:$0xff] }
 0x249   : > { %v1390_v9 = vpop.xlane.xlu0 %1389  ;;  %v6030_v45 = vpack.c.bf16 %v7258_v53, %v7257_v31  ;;  %v3756_v16 = vpop.eup %3755  ;;  %3765 = vrsqrt.f32 %v1012_v62  ;;  %v1428_v37 = vmul.f32 0.0078125, %v1392_v25  ;;  %v1560_v41 = vmul.f32 %v6035_v57, %v1522_v5  ;;  %v7264_v25 = vld [vmem:[#allocation43_spill] sm:$0xff]  ;;  %v7265_v31 = vld [vmem:[#allocation45_spill] sm:$0xff] }
 0x24a   : > { %7256 = vst [vmem:[#allocation89_spill] sm:$0xff] %v6020_v39  ;;  %v1427_v4 = vmul.f32 0.0078125, %v1390_v9  ;;  %3767 = vrsqrt.f32 %v1011_v23  ;;  %3397 = vmatpush3.bf16.xpose.msra.mxu1 %v6020_v39  ;;  %3493 = vmatpush3.bf16.xpose.msra.mxu0 %v6020_v39  ;;  %v1989_v28 = vmul.f32 %v6044_v20, %v1951_v61  ;;  %v1990_v30 = vmul.f32 %v6044_v20, %v1952_v51 }
 0x24b   : > { %7259 = vst [vmem:[#allocation90_spill] sm:$0xff] %v6030_v45  ;;  %v3758_v18 = vpop.eup %3757  ;;  %v1505_v12 = vmul.f32 %v3754_v8, %v7260_v0  ;;  %v1460_v58 = vadd.f32 1e-05, %v1428_v37  ;;  %v7261_v48 = vand.u32 4294901760, %v5839_v1  ;;  %v7262_v62 = vand.u32 4294901760, %v5830_v56  ;;  %v7268_v37 = vld [vmem:[#allocation46_spill] sm:$0xff] }
 0x24c   : > { %v1459_v63 = vadd.f32 1e-05, %v1427_v4  ;;  %v3760_v5 = vpop.eup %3759  ;;  %v1506_v9 = vmul.f32 %v3756_v16, %v7264_v25  ;;  %v1936_v53 = vmul.f32 %v3758_v18, %v7265_v31  ;;  %v1822_v43 = vpop.xlane.xlu1 %1821  ;;  %v7266_v51 = vand.u32 4294901760, %v5849_v49  ;;  %v7297_v45 = vld [vmem:[#allocation65_spill] sm:$0xff] }
 0x24d   : > { %v6053_v23 = vpack.c.bf16 %v7262_v62, %v7261_v48  ;;  %v1820_v61 = vpop.xlane.xlu0 %1819  ;;  %v1935_v4 = vmul.f32 %v3760_v5, %v7268_v37  ;;  %v1858_v0 = vmul.f32 0.0078125, %v1822_v43  ;;  %v6067_v48 = vld [vmem:[%s6620_s8] ss:$0 sm:$0xff]  ;;  %3769 = vrsqrt.f32 %v1460_v58 }
 0x24e   : > { %v6060_v39 = vsub.f32 %v5849_v49, %v7266_v51  ;;  %v1857_v19 = vmul.f32 0.0078125, %v1820_v61  ;;  %v1597_v16 = vadd.f32 %v6067_v48, %v1559_v22  ;;  %v1598_v18 = vadd.f32 %v6067_v48, %v1560_v41  ;;  %v6074_v62 = vld [vmem:[%s6622_s10] ss:$0 sm:$0xff]  ;;  %v7269_v22 = vld [vmem:[#allocation47_spill] sm:$0xff] }
 0x24f   : > { %7263 = vst [vmem:[#allocation20_spill] sm:$0xff] %v6053_v23  ;;  %v2027_v25 = vadd.f32 %v6074_v62, %v1989_v28  ;;  %v2028_v43 = vadd.f32 %v6074_v62, %v1990_v30  ;;  %v3762_v5 = vpop.eup %3761  ;;  %3771 = vrsqrt.f32 %v1459_v63  ;;  %v1890_v31 = vadd.f32 1e-05, %v1858_v0  ;;  %v7270_v28 = vld [vmem:[#allocation48_spill] sm:$0xff]  ;;  %v7277_v23 = vld [vmem:[#allocation54_spill] sm:$0xff] }
 0x250   : > { %7267 = vst [vmem:[#allocation19_spill] sm:$0xff] %v6060_v39  ;;  %v1889_v61 = vadd.f32 1e-05, %v1857_v19  ;;  %v1543_v51 = vmul.f32 %v6035_v57, %v1505_v12  ;;  %v3764_v37 = vpop.eup %3763  ;;  %v1092_v58 = vmul.f32 %v3762_v5, %v7269_v22  ;;  %v1360_v8 = vpop.xlane.xlu1 %1359  ;;  %v1544_v44 = vmul.f32 %v6035_v57, %v1506_v9  ;;  %v6088_v9 = vld [vmem:[%s6617_s5] ss:$0 sm:$0xff] }
 0x251   : > { %v1358_v41 = vpop.xlane.xlu0 %1357  ;;  %v1973_v10 = vmul.f32 %v6044_v20, %v1935_v4  ;;  %v1974_v15 = vmul.f32 %v6044_v20, %v1936_v53  ;;  %v1091_v14 = vmul.f32 %v3764_v37, %v7270_v28  ;;  %3773 = vrsqrt.f32 %v1890_v31 }
 0x252   : > { %v1412_v30 = vmul.f32 0.0078125, %v1360_v8  ;;  %v1411_v63 = vmul.f32 0.0078125, %v1358_v41  ;;  %3775 = vrsqrt.f32 %v1889_v61  ;;  %v1130_v19 = vmul.f32 %v5800_v24, %v1092_v58  ;;  %v7271_v8 = vld [vmem:[#allocation49_spill] sm:$0xff] }
 0x253   : > { %v2059_v12 = vmul.f32 %v2027_v25, %v1597_v16  ;;  %v2060_v0 = vmul.f32 %v2028_v43, %v1598_v18  ;;  %v3766_v2 = vpop.eup %3765  ;;  %v1129_v53 = vmul.f32 %v6088_v9, %v1091_v14  ;;  %v1581_v4 = vadd.f32 %v6067_v48, %v1543_v51  ;;  %v7272_v25 = vld [vmem:[#allocation50_spill] sm:$0xff] }
 0x254   : > { %v1444_v5 = vadd.f32 1e-05, %v1412_v30  ;;  %v1443_v22 = vadd.f32 1e-05, %v1411_v63  ;;  %v3768_v31 = vpop.eup %3767  ;;  %v1076_v37 = vmul.f32 %v3766_v2, %v7271_v8  ;;  %v1790_v61 = vpop.xlane.xlu1 %1789  ;;  %v1168_v24 = vadd.f32 %v5811_v34, %v1130_v19  ;;  %v6101_v14 = vld [vmem:[%s6618_s6] ss:$0 sm:$0xff] }
 0x255   : > { %v1788_v41 = vpop.xlane.xlu0 %1787  ;;  %v1582_v16 = vadd.f32 %v6067_v48, %v1544_v44  ;;  %v2011_v18 = vadd.f32 %v6074_v62, %v1973_v10  ;;  %v1075_v43 = vmul.f32 %v3768_v31, %v7272_v25  ;;  %v1842_v58 = vmul.f32 0.0078125, %v1790_v61 }
 0x256   : > { %v1841_v28 = vmul.f32 0.0078125, %v1788_v41  ;;  %v2012_v30 = vadd.f32 %v6074_v62, %v1974_v15  ;;  %3777 = vrsqrt.f32 %v1443_v22  ;;  %v1167_v2 = vadd.f32 %v6101_v14, %v1129_v53 }
 0x257   : > { %v2092_v51 = vmul.f32 %v2060_v0, %v1168_v24  ;;  %v1114_v34 = vmul.f32 %v6088_v9, %v1076_v37  ;;  %3779 = vrsqrt.f32 %v1444_v5  ;;  %v1874_v44 = vadd.f32 1e-05, %v1842_v58  ;;  %v3770_v19 = vpop.eup %3769  ;;  %v7273_v58 = vld [vmem:[#allocation51_spill] sm:$0xff] }
 0x258   : > { %v1873_v10 = vadd.f32 1e-05, %v1841_v28  ;;  %v1113_v63 = vmul.f32 %v6088_v9, %v1075_v43  ;;  %v962_v31 = vpop.xlane.xlu1 %961  ;;  %v2091_v15 = vmul.f32 %v2059_v12, %v1167_v2  ;;  %v2043_v41 = vmul.f32 %v2011_v18, %v1581_v4 }
 0x259   : > { %v960_v8 = vpop.xlane.xlu0 %959  ;;  %v2187_v22 = vand.u32 4294901760, %v2092_v51  ;;  %v1152_v61 = vadd.f32 %v6101_v14, %v1114_v34  ;;  %v3772_v25 = vpop.eup %3771  ;;  %3781 = vrsqrt.f32 %v1874_v44  ;;  %v998_v60 = vmul.f32 0.0078125, %v962_v31  ;;  %v7274_v34 = vld [vmem:[#allocation52_spill] sm:$0xff] }
 0x25a   : > { %v997_v53 = vmul.f32 0.0078125, %v960_v8  ;;  %v2044_v0 = vmul.f32 %v2012_v30, %v1582_v16  ;;  %3783 = vrsqrt.f32 %v1873_v10  ;;  %v2184_v37 = vand.u32 4294901760, %v2091_v15 }
 0x25b   : > { %v6107_v5 = vsub.f32 %v2092_v51, %v2187_v22  ;;  %v1151_v24 = vadd.f32 %v6101_v14, %v1113_v63  ;;  %v3774_v43 = vpop.eup %3773  ;;  %v1524_v28 = vmul.f32 %v3770_v19, %v7273_v58  ;;  %v1030_v56 = vadd.f32 1e-05, %v998_v60  ;;  %v7276_v51 = vld [vmem:[#allocation53_spill] sm:$0xff] }
 0x25c   : > { %v1029_v12 = vadd.f32 1e-05, %v997_v53  ;;  %v2076_v2 = vmul.f32 %v2044_v0, %v1152_v61  ;;  %v3776_v1 = vpop.eup %3775  ;;  %v1523_v4 = vmul.f32 %v3772_v25, %v7274_v34  ;;  %v930_v18 = vpop.xlane.xlu1 %929  ;;  %v6112_v44 = vpack.c.bf16 %v2187_v22, %v2184_v37 }
 0x25d   : > { %v6114_v31 = vsub.f32 %v2091_v15, %v2184_v37  ;;  %v928_v16 = vpop.xlane.xlu0 %927  ;;  %v2075_v30 = vmul.f32 %v2043_v41, %v1151_v24  ;;  %v1954_v10 = vmul.f32 %v3774_v43, %v7276_v51  ;;  %3785 = vrsqrt.f32 %v1030_v56  ;;  %v7286_v15 = vld [vmem:[#allocation57_spill] sm:$0xff] }
 0x25e   : > { %7275 = vst [vmem:[#allocation21_spill] sm:$0xff] %v6112_v44  ;;  %v982_v63 = vmul.f32 0.0078125, %v930_v18  ;;  %v981_v8 = vmul.f32 0.0078125, %v928_v16  ;;  %v1953_v19 = vmul.f32 %v3776_v1, %v7277_v23  ;;  %3787 = vrsqrt.f32 %v1029_v12  ;;  %3399 = vmatprep.subr.bf16.mxu1 %v6112_v44  ;;  %3495 = vmatprep.subr.bf16.mxu0 %v6112_v44 }
 0x25f   : > { %v2136_v60 = vand.u32 4294901760, %v2075_v30  ;;  %v2139_v61 = vand.u32 4294901760, %v2076_v2  ;;  %v7278_v41 = vand.u32 4294901760, %v5851_v17  ;;  %v1561_v18 = vmul.f32 %v6035_v57, %v1523_v4 }
 0x260   : > { %v1014_v22 = vadd.f32 1e-05, %v982_v63  ;;  %v1013_v25 = vadd.f32 1e-05, %v981_v8  ;;  %v3778_v56 = vpop.eup %3777  ;;  %v1396_v0 = vpop.xlane.xlu1 %1395  ;;  %v1562_v16 = vmul.f32 %v6035_v57, %v1524_v28  ;;  %v7281_v63 = vld [vmem:[#allocation56_spill] sm:$0xff] }
 0x261   : > { %v6124_v53 = vsub.f32 %v5851_v17, %v7278_v41  ;;  %v6126_v37 = vpack.c.bf16 %v2139_v61, %v2136_v60  ;;  %v6128_v1 = vsub.f32 %v2075_v30, %v2136_v60  ;;  %v6130_v23 = vsub.f32 %v2076_v2, %v2139_v61  ;;  %v1394_v24 = vpop.xlane.xlu0 %1393  ;;  %v3780_v58 = vpop.eup %3779 }
 0x262   : > { %3789 = vrsqrt.f32 %v1014_v22  ;;  %v1430_v12 = vmul.f32 0.0078125, %v1396_v0  ;;  %v1429_v34 = vmul.f32 0.0078125, %v1394_v24  ;;  %v1991_v30 = vmul.f32 %v6044_v20, %v1953_v19  ;;  %v7285_v0 = vld [vmem:[#allocation55_spill] sm:$0xff] }
 0x263   : > { %7279 = vst [vmem:[#allocation22_spill] sm:$0xff] %v6124_v53  ;;  %7280 = vst [vmem:[#allocation23_spill] sm:$0xff] %v6126_v37  ;;  %3791 = vrsqrt.f32 %v1013_v25  ;;  %3401 = vmatpush3.bf16.xpose.msra.mxu1 %v6126_v37  ;;  %3497 = vmatpush3.bf16.xpose.msra.mxu0 %v6126_v37  ;;  %v1992_v2 = vmul.f32 %v6044_v20, %v1954_v10  ;;  %v3782_v51 = vpop.eup %3781  ;;  %v1507_v8 = vmul.f32 %v3778_v56, %v7281_v63  ;;  %v7291_v53 = vld [vmem:[#allocation61_spill] sm:$0xff] }
 0x264   : > { %v1462_v60 = vadd.f32 1e-05, %v1430_v12  ;;  %v1461_v61 = vadd.f32 1e-05, %v1429_v34  ;;  %v7282_v22 = vand.u32 4294901760, %v5849_v49  ;;  %v7283_v4 = vmov %v7278_v41  ;;  %v3784_v41 = vpop.eup %3783  ;;  %v1826_v43 = vpop.xlane.xlu1 %1825  ;;  %v7288_v12 = vld [vmem:[#allocation58_spill] sm:$0xff] }
 0x265   : > { %v1508_v24 = vmul.f32 %v3780_v58, %v7285_v0  ;;  %v1938_v28 = vmul.f32 %v3782_v51, %v7286_v15  ;;  %v1824_v19 = vpop.xlane.xlu0 %1823  ;;  %v7287_v37 = vand.u32 4294901760, %v5893_v55  ;;  %v1937_v34 = vmul.f32 %v3784_v41, %v7288_v12  ;;  %v7289_v49 = vld [vmem:[#allocation59_spill] sm:$0xff] }
 0x266   : > { %v6144_v25 = vpack.c.bf16 %v7283_v4, %v7282_v22  ;;  %v1860_v63 = vmul.f32 0.0078125, %v1826_v43  ;;  %v1859_v44 = vmul.f32 0.0078125, %v1824_v19  ;;  %v1599_v22 = vadd.f32 %v6067_v48, %v1561_v18 }
 0x267   : > { %v6152_v56 = vsub.f32 %v5893_v55, %v7287_v37  ;;  %3793 = vrsqrt.f32 %v1461_v61  ;;  %v1600_v58 = vadd.f32 %v6067_v48, %v1562_v16  ;;  %v2029_v15 = vadd.f32 %v6074_v62, %v1991_v30  ;;  %v3786_v4 = vpop.eup %3785  ;;  %v7290_v30 = vld [vmem:[#allocation60_spill] sm:$0xff] }
 0x268   : > { %7284 = vst [vmem:[#allocation24_spill] sm:$0xff] %v6144_v25  ;;  %v2030_v51 = vadd.f32 %v6074_v62, %v1992_v2  ;;  %3795 = vrsqrt.f32 %v1462_v60  ;;  %v1892_v0 = vadd.f32 1e-05, %v1860_v63  ;;  %v1891_v10 = vadd.f32 1e-05, %v1859_v44  ;;  %v3788_v17 = vpop.eup %3787  ;;  %v1364_v43 = vpop.xlane.xlu1 %1363 }
 0x269   : > { %v1545_v37 = vmul.f32 %v6035_v57, %v1507_v8  ;;  %v1094_v41 = vmul.f32 %v3786_v4, %v7289_v49  ;;  %v1362_v19 = vpop.xlane.xlu0 %1361  ;;  %v1546_v18 = vmul.f32 %v6035_v57, %v1508_v24  ;;  %v1975_v61 = vmul.f32 %v6044_v20, %v1937_v34 }
 0x26a   : > { %v1976_v16 = vmul.f32 %v6044_v20, %v1938_v28  ;;  %v1093_v12 = vmul.f32 %v3788_v17, %v7290_v30  ;;  %3797 = vrsqrt.f32 %v1892_v0  ;;  %v1414_v2 = vmul.f32 0.0078125, %v1364_v43 }
 0x26b   : > { %v1413_v60 = vmul.f32 0.0078125, %v1362_v19  ;;  %3799 = vrsqrt.f32 %v1891_v10  ;;  %v1132_v44 = vmul.f32 %v6088_v9, %v1094_v41  ;;  %v2061_v8 = vmul.f32 %v2029_v15, %v1599_v22  ;;  %v7292_v22 = vld [vmem:[#allocation62_spill] sm:$0xff] }
 0x26c   : > { %v2062_v63 = vmul.f32 %v2030_v51, %v1600_v58  ;;  %v3790_v25 = vpop.eup %3789  ;;  %v1446_v49 = vadd.f32 1e-05, %v1414_v2  ;;  %v1131_v55 = vmul.f32 %v6088_v9, %v1093_v12  ;;  %v1583_v24 = vadd.f32 %v6067_v48, %v1545_v37  ;;  %v1794_v39 = vpop.xlane.xlu1 %1793 }
 0x26d   : > { %v1445_v4 = vadd.f32 1e-05, %v1413_v60  ;;  %v3792_v34 = vpop.eup %3791  ;;  %v1078_v28 = vmul.f32 %v3790_v25, %v7291_v53  ;;  %v1792_v17 = vpop.xlane.xlu0 %1791  ;;  %v1170_v0 = vadd.f32 %v6101_v14, %v1132_v44  ;;  %v2013_v10 = vadd.f32 %v6074_v62, %v1975_v61 }
 0x26e   : > { %v2014_v41 = vadd.f32 %v6074_v62, %v1976_v16  ;;  %v1077_v58 = vmul.f32 %v3792_v34, %v7292_v22  ;;  %3801 = vrsqrt.f32 %v1446_v49  ;;  %v1844_v15 = vmul.f32 0.0078125, %v1794_v39  ;;  %v7293_v22 = vld [vmem:[#allocation64_spill] sm:$0xff] }
 0x26f   : > { %v1843_v51 = vmul.f32 0.0078125, %v1792_v17  ;;  %3803 = vrsqrt.f32 %v1445_v4  ;;  %v1169_v43 = vadd.f32 %v6101_v14, %v1131_v55  ;;  %v2094_v37 = vmul.f32 %v2062_v63, %v1170_v0 }
 0x270   : > { %v1116_v19 = vmul.f32 %v6088_v9, %v1078_v28  ;;  %v1876_v53 = vadd.f32 1e-05, %v1844_v15  ;;  %v1115_v30 = vmul.f32 %v6088_v9, %v1077_v58  ;;  %v1584_v12 = vadd.f32 %v6067_v48, %v1546_v18  ;;  %v966_v2 = vpop.xlane.xlu1 %965 }
 0x271   : > { %v1875_v25 = vadd.f32 1e-05, %v1843_v51  ;;  %v3794_v61 = vpop.eup %3793  ;;  %v964_v16 = vpop.xlane.xlu0 %963  ;;  %v2093_v60 = vmul.f32 %v2061_v8, %v1169_v43  ;;  %v2193_v44 = vand.u32 4294901760, %v2094_v37  ;;  %v2045_v49 = vmul.f32 %v2013_v10, %v1583_v24 }
 0x272   : > { %v1154_v39 = vadd.f32 %v6101_v14, %v1116_v19  ;;  %v3796_v4 = vpop.eup %3795  ;;  %3805 = vrsqrt.f32 %v1876_v53  ;;  %v1000_v55 = vmul.f32 0.0078125, %v966_v2  ;;  %v999_v63 = vmul.f32 0.0078125, %v964_v16  ;;  %v7294_v19 = vld [vmem:[#allocation63_spill] sm:$0xff] }
 0x273   : > { %v2046_v34 = vmul.f32 %v2014_v41, %v1584_v12  ;;  %3807 = vrsqrt.f32 %v1875_v25  ;;  %v2190_v28 = vand.u32 4294901760, %v2093_v60  ;;  %v6178_v17 = vsub.f32 %v2094_v37, %v2193_v44  ;;  %v7296_v37 = vld [vmem:[#allocation66_spill] sm:$0xff] }
 0x274   : > { %v1153_v0 = vadd.f32 %v6101_v14, %v1115_v30  ;;  %v3798_v18 = vpop.eup %3797  ;;  %v1525_v58 = vmul.f32 %v3794_v61, %v7293_v22  ;;  %v1032_v15 = vadd.f32 1e-05, %v1000_v55  ;;  %v1031_v8 = vadd.f32 1e-05, %v999_v63  ;;  %v934_v10 = vpop.xlane.xlu1 %933 }
 0x275   : > { %v2078_v51 = vmul.f32 %v2046_v34, %v1154_v39  ;;  %v3800_v43 = vpop.eup %3799  ;;  %v1526_v24 = vmul.f32 %v3796_v4, %v7294_v19  ;;  %v6183_v53 = vpack.c.bf16 %v2193_v44, %v2190_v28  ;;  %v6185_v2 = vsub.f32 %v2093_v60, %v2190_v28  ;;  %v932_v41 = vpop.xlane.xlu0 %931  ;;  %v7298_v28 = vld [vmem:[#allocation67_spill] sm:$0xff] }
 0x276   : > { %v2077_v25 = vmul.f32 %v2045_v49, %v1153_v0  ;;  %v1955_v12 = vmul.f32 %v3800_v43, %v7296_v37  ;;  %3809 = vrsqrt.f32 %v1032_v15  ;;  %v984_v30 = vmul.f32 0.0078125, %v934_v10  ;;  %v7300_v43 = vld [vmem:[#allocation68_spill] sm:$0xff] }
 0x277   : > { %7295 = vst [vmem:[#allocation25_spill] sm:$0xff] %v6183_v53  ;;  %v983_v16 = vmul.f32 0.0078125, %v932_v41  ;;  %v1956_v61 = vmul.f32 %v3798_v18, %v7297_v45  ;;  %3811 = vrsqrt.f32 %v1031_v8  ;;  %3403 = vmatprep.subr.bf16.mxu1 %v6183_v53  ;;  %3499 = vmatprep.subr.bf16.mxu0 %v6183_v53  ;;  %v2145_v4 = vand.u32 4294901760, %v2078_v51 }
 0x278   : > { %v2142_v39 = vand.u32 4294901760, %v2077_v25  ;;  %v3802_v44 = vpop.eup %3801  ;;  %v1016_v55 = vadd.f32 1e-05, %v984_v30  ;;  %v1563_v63 = vmul.f32 %v6035_v57, %v1525_v58  ;;  %v1993_v49 = vmul.f32 %v6044_v20, %v1955_v12  ;;  %v1400_v22 = vpop.xlane.xlu1 %1399 }
 0x279   : > { %v1015_v60 = vadd.f32 1e-05, %v983_v16  ;;  %v3804_v34 = vpop.eup %3803  ;;  %v1510_v0 = vmul.f32 %v3802_v44, %v7298_v28  ;;  %v6198_v18 = vsub.f32 %v2078_v51, %v2145_v4  ;;  %v1398_v8 = vpop.xlane.xlu0 %1397  ;;  %v1432_v10 = vmul.f32 0.0078125, %v1400_v22 }
 0x27a   : > { %v6194_v15 = vpack.c.bf16 %v2145_v4, %v2142_v39  ;;  %v6196_v45 = vsub.f32 %v2077_v25, %v2142_v39  ;;  %v1509_v19 = vmul.f32 %v3804_v34, %v7300_v43  ;;  %3813 = vrsqrt.f32 %v1016_v55 }
 0x27b   : > { %v1431_v41 = vmul.f32 0.0078125, %v1398_v8  ;;  %3815 = vrsqrt.f32 %v1015_v60  ;;  %v1564_v58 = vmul.f32 %v6035_v57, %v1526_v24  ;;  %v1994_v37 = vmul.f32 %v6044_v20, %v1956_v61 }
 0x27c   : > { %7299 = vst [vmem:[#allocation26_spill] sm:$0xff] %v6194_v15  ;;  %3405 = vmatpush3.bf16.xpose.msra.mxu1 %v6194_v15  ;;  %3501 = vmatpush3.bf16.xpose.msra.mxu0 %v6194_v15  ;;  %v2031_v25 = vadd.f32 %v6074_v62, %v1993_v49  ;;  %v3806_v12 = vpop.eup %3805  ;;  %v1464_v51 = vadd.f32 1e-05, %v1432_v10  ;;  %v1601_v16 = vadd.f32 %v6067_v48, %v1563_v63  ;;  %v1830_v55 = vpop.xlane.xlu1 %1829 }
 0x27d   : > { %v1463_v30 = vadd.f32 1e-05, %v1431_v41  ;;  %v3808_v4 = vpop.eup %3807  ;;  %v1940_v44 = vmul.f32 %v3806_v12, %v5608_v26  ;;  %v1828_v60 = vpop.xlane.xlu0 %1827  ;;  %v2032_v34 = vadd.f32 %v6074_v62, %v1994_v37  ;;  %v1547_v24 = vmul.f32 %v6035_v57, %v1509_v19 }
 0x27e   : > { %v1548_v61 = vmul.f32 %v6035_v57, %v1510_v0  ;;  %v1939_v49 = vmul.f32 %v3808_v4, %v5625_v50  ;;  %3817 = vrsqrt.f32 %v1464_v51  ;;  %v1862_v28 = vmul.f32 0.0078125, %v1830_v55 }
 0x27f   : > { %v1861_v22 = vmul.f32 0.0078125, %v1828_v60  ;;  %3819 = vrsqrt.f32 %v1463_v30  ;;  %v1602_v63 = vadd.f32 %v6067_v48, %v1564_v58  ;;  %v2063_v8 = vmul.f32 %v2031_v25, %v1601_v16  ;;  %v7301_v25 = vld [vmem:[#allocation69_spill] sm:$0xff] }
 0x280   : > { %v3810_v26 = vpop.eup %3809  ;;  %v1894_v10 = vadd.f32 1e-05, %v1862_v28  ;;  %v1977_v37 = vmul.f32 %v6044_v20, %v1939_v49  ;;  %v1978_v19 = vmul.f32 %v6044_v20, %v1940_v44  ;;  %v1368_v50 = vpop.xlane.xlu1 %1367  ;;  %v1585_v30 = vadd.f32 %v6067_v48, %v1547_v24 }
 0x281   : > { %v1893_v41 = vadd.f32 1e-05, %v1861_v22  ;;  %v3812_v12 = vpop.eup %3811  ;;  %v1096_v0 = vmul.f32 %v3810_v26, %v5629_v11  ;;  %v1366_v51 = vpop.xlane.xlu0 %1365  ;;  %v2064_v4 = vmul.f32 %v2032_v34, %v1602_v63  ;;  %v1586_v58 = vadd.f32 %v6067_v48, %v1548_v61  ;;  %v7302_v63 = vld [vmem:[#allocation70_spill] sm:$0xff] }
 0x282   : > { %v1095_v16 = vmul.f32 %v3812_v12, %v7301_v25  ;;  %3821 = vrsqrt.f32 %v1894_v10  ;;  %v1416_v55 = vmul.f32 0.0078125, %v1368_v50  ;;  %v1415_v60 = vmul.f32 0.0078125, %v1366_v51 }
 0x283   : > { %3823 = vrsqrt.f32 %v1893_v41  ;;  %v1134_v49 = vmul.f32 %v6088_v9, %v1096_v0  ;;  %v2015_v44 = vadd.f32 %v6074_v62, %v1977_v37  ;;  %v2016_v28 = vadd.f32 %v6074_v62, %v1978_v19 }
 0x284   : > { %v3814_v11 = vpop.eup %3813  ;;  %v1448_v22 = vadd.f32 1e-05, %v1416_v55  ;;  %v1447_v26 = vadd.f32 1e-05, %v1415_v60  ;;  %v1133_v34 = vmul.f32 %v6088_v9, %v1095_v16  ;;  %v6887_v24 = vand.u32 4294901760, %v5947_v46  ;;  %v1798_v10 = vpop.xlane.xlu1 %1797 }
 0x285   : > { %v3816_v61 = vpop.eup %3815  ;;  %v1080_v12 = vmul.f32 %v3814_v11, %v7302_v63  ;;  %v1796_v50 = vpop.xlane.xlu0 %1795  ;;  %v1172_v41 = vadd.f32 %v6101_v14, %v1134_v49  ;;  %v2047_v51 = vmul.f32 %v2015_v44, %v1585_v30  ;;  %v2048_v0 = vmul.f32 %v2016_v28, %v1586_v58 }
 0x286   : > { %v1079_v37 = vmul.f32 %v3816_v61, %v5643_v52  ;;  %3825 = vrsqrt.f32 %v1448_v22  ;;  %v1846_v19 = vmul.f32 0.0078125, %v1798_v10  ;;  %v1845_v25 = vmul.f32 0.0078125, %v1796_v50 }
 0x287   : > { %3827 = vrsqrt.f32 %v1447_v26  ;;  %v1171_v55 = vadd.f32 %v6101_v14, %v1133_v34  ;;  %v2096_v16 = vmul.f32 %v2064_v4, %v1172_v41  ;;  %v1118_v60 = vmul.f32 %v6088_v9, %v1080_v12  ;;  %v7303_v26 = vld [vmem:[#allocation71_spill] sm:$0xff] }
 0x288   : > { %v3818_v43 = vpop.eup %3817  ;;  %v1878_v39 = vadd.f32 1e-05, %v1846_v19  ;;  %v1877_v11 = vadd.f32 1e-05, %v1845_v25  ;;  %v1117_v63 = vmul.f32 %v6088_v9, %v1079_v37  ;;  %v6235_v30 = vsub.f32 %v5947_v46, %v6887_v24  ;;  %v970_v49 = vpop.xlane.xlu1 %969 }
 0x289   : > { %v3820_v52 = vpop.eup %3819  ;;  %v1528_v58 = vmul.f32 %v3818_v43, %v5657_v6  ;;  %v968_v44 = vpop.xlane.xlu0 %967  ;;  %v2095_v28 = vmul.f32 %v2063_v8, %v1171_v55  ;;  %v2199_v22 = vand.u32 4294901760, %v2096_v16  ;;  %v1156_v4 = vadd.f32 %v6101_v14, %v1118_v60  ;;  %v7304_v55 = vld [vmem:[#allocation72_spill] sm:$0xff] }
 0x28a   : > { %v1527_v34 = vmul.f32 %v3820_v52, %v7303_v26  ;;  %3829 = vrsqrt.f32 %v1878_v39  ;;  %v1002_v61 = vmul.f32 0.0078125, %v970_v49  ;;  %v1001_v12 = vmul.f32 0.0078125, %v968_v44 }
 0x28b   : > { %3831 = vrsqrt.f32 %v1877_v11  ;;  %v2196_v10 = vand.u32 4294901760, %v2095_v28  ;;  %v6240_v50 = vsub.f32 %v2096_v16, %v2199_v22  ;;  %v1155_v41 = vadd.f32 %v6101_v14, %v1117_v63  ;;  %v7306_v16 = vld [vmem:[#allocation73_spill] sm:$0xff] }
 0x28c   : > { %v3822_v37 = vpop.eup %3821  ;;  %v1034_v19 = vadd.f32 1e-05, %v1002_v61  ;;  %v1033_v6 = vadd.f32 1e-05, %v1001_v12  ;;  %v2080_v43 = vmul.f32 %v2048_v0, %v1156_v4  ;;  %v1565_v8 = vmul.f32 %v6035_v57, %v1527_v34  ;;  %v938_v24 = vpop.xlane.xlu1 %937 }
 0x28d   : > { %v3824_v25 = vpop.eup %3823  ;;  %v1958_v60 = vmul.f32 %v3822_v37, %v7304_v55  ;;  %v6245_v52 = vpack.c.bf16 %v2199_v22, %v2196_v10  ;;  %v6247_v39 = vsub.f32 %v2095_v28, %v2196_v10  ;;  %v936_v11 = vpop.xlane.xlu0 %935  ;;  %v2079_v49 = vmul.f32 %v2047_v51, %v1155_v41  ;;  %v7307_v41 = vld [vmem:[#allocation74_spill] sm:$0xff] }
 0x28e   : > { %v1957_v44 = vmul.f32 %v3824_v25, %v7306_v16  ;;  %3833 = vrsqrt.f32 %v1034_v19  ;;  %v986_v63 = vmul.f32 0.0078125, %v938_v24  ;;  %v985_v26 = vmul.f32 0.0078125, %v936_v11  ;;  %v7309_v25 = vld [vmem:[#allocation75_spill] sm:$0xff] }
 0x28f   : > { %7305 = vst [vmem:[#allocation27_spill] sm:$0xff] %v6245_v52  ;;  %3835 = vrsqrt.f32 %v1033_v6  ;;  %3407 = vmatprep.subr.bf16.mxu1 %v6245_v52  ;;  %3503 = vmatprep.subr.bf16.mxu0 %v6245_v52  ;;  %v2148_v0 = vand.u32 4294901760, %v2079_v49  ;;  %v2151_v4 = vand.u32 4294901760, %v2080_v43  ;;  %v1566_v34 = vmul.f32 %v6035_v57, %v1528_v58  ;;  %v7322_v52 = vld [vmem:[#allocation22_spill] sm:$0xff] }
 0x290   : > { %v3826_v22 = vpop.eup %3825  ;;  %v1018_v61 = vadd.f32 1e-05, %v986_v63  ;;  %v1017_v28 = vadd.f32 1e-05, %v985_v26  ;;  %v1603_v12 = vadd.f32 %v6067_v48, %v1565_v8  ;;  %v1995_v51 = vmul.f32 %v6044_v20, %v1957_v44 }
 0x291   : > { %v3828_v10 = vpop.eup %3827  ;;  %v1512_v24 = vmul.f32 %v3826_v22, %v7307_v41  ;;  %v6256_v37 = vpack.c.bf16 %v2151_v4, %v2148_v0  ;;  %v6258_v19 = vsub.f32 %v2079_v49, %v2148_v0  ;;  %v6260_v6 = vsub.f32 %v2080_v43, %v2151_v4 }
 0x292   : > { %v1511_v55 = vmul.f32 %v3828_v10, %v7309_v25  ;;  %3837 = vrsqrt.f32 %v1018_v61  ;;  %v1604_v58 = vadd.f32 %v6067_v48, %v1566_v34  ;;  %v1996_v11 = vmul.f32 %v6044_v20, %v1958_v60 }
 0x293   : > { %7308 = vst [vmem:[#allocation28_spill] sm:$0xff] %v6256_v37  ;;  %3839 = vrsqrt.f32 %v1017_v28  ;;  %3409 = vmatpush3.bf16.xpose.msra.mxu1 %v6256_v37  ;;  %3505 = vmatpush3.bf16.xpose.msra.mxu0 %v6256_v37  ;;  %v2033_v8 = vadd.f32 %v6074_v62, %v1995_v51  ;;  %v1550_v16 = vmul.f32 %v6035_v57, %v1512_v24  ;;  %v2359_v49 = vand.u32 4294901760, %v6235_v30 }
 0x294   : > { %v3830_v43 = vpop.eup %3829  ;;  %v2034_v44 = vadd.f32 %v6074_v62, %v1996_v11  ;;  %v1549_v63 = vmul.f32 %v6035_v57, %v1511_v55  ;;  %v2364_v26 = vand.u32 4294901760, %v5940_v36  ;;  %v2245_v60 = vand.u32 4294901760, %v5965_v29 }
 0x295   : > { %v3832_v0 = vpop.eup %3831  ;;  %v1942_v4 = vmul.f32 %v3830_v43, %v5710_v35  ;;  %v2065_v34 = vmul.f32 %v2033_v8, %v1603_v12  ;;  %v1588_v22 = vadd.f32 %v6067_v48, %v1550_v16  ;;  %v2252_v61 = vand.u32 4294901760, %v5967_v40 }
 0x296   : > { %v1941_v28 = vmul.f32 %v3832_v0, %v5715_v54  ;;  %v2066_v30 = vmul.f32 %v2034_v44, %v1604_v58  ;;  %v1587_v51 = vadd.f32 %v6067_v48, %v1549_v63  ;;  %v2365_v10 = vsub.f32 %v5940_v36, %v2364_v26 }
 0x297   : > { %v1980_v57 = vmul.f32 %v6044_v20, %v1942_v4  ;;  %v7310_v41 = vand.u32 4294901760, %v5947_v46  ;;  %v2246_v35 = vsub.f32 %v5965_v29, %v2245_v60  ;;  %v2253_v12 = vsub.f32 %v5967_v40, %v2252_v61 }
 0x298   : > { %v3834_v25 = vpop.eup %3833  ;;  %v1979_v55 = vmul.f32 %v6044_v20, %v1941_v28  ;;  %v2366_v11 = vand.u32 4294901760, %v2365_v10  ;;  %v6288_v54 = vpack.c.bf16 %v2252_v61, %v2245_v60  ;;  %v2371_v48 = vand.u32 4294901760, %v6013_v32 }
 0x299   : > { %v6283_v24 = vpack.c.bf16 %v2364_v26, %v7310_v41  ;;  %v3836_v58 = vpop.eup %3835  ;;  %v1098_v8 = vmul.f32 %v3834_v25, %v5719_v47  ;;  %v2018_v16 = vadd.f32 %v6074_v62, %v1980_v57  ;;  %v2247_v43 = vand.u32 4294901760, %v2246_v35 }
 0x29a   : > { %v2254_v44 = vand.u32 4294901760, %v2253_v12  ;;  %v1097_v63 = vmul.f32 %v3836_v58, %v5734_v3  ;;  %v2017_v26 = vadd.f32 %v6074_v62, %v1979_v55  ;;  %v6295_v0 = vpack.c.bf16 %v2366_v11, %v2359_v49 }
 0x29b   : > { %v2372_v20 = vsub.f32 %v6013_v32, %v2371_v48  ;;  %v1136_v60 = vmul.f32 %v6088_v9, %v1098_v8  ;;  %v2050_v4 = vmul.f32 %v2018_v16, %v1588_v22  ;;  %v2378_v28 = vand.u32 4294901760, %v6006_v27 }
 0x29c   : > { %v6299_v61 = vpack.c.bf16 %v2254_v44, %v2247_v43  ;;  %v3838_v47 = vpop.eup %3837  ;;  %v1135_v10 = vmul.f32 %v6088_v9, %v1097_v63  ;;  %v2049_v57 = vmul.f32 %v2017_v26, %v1587_v51  ;;  %v2259_v3 = vand.u32 4294901760, %v6022_v13 }
 0x29d   : > { %v2373_v41 = vand.u32 4294901760, %v2372_v20  ;;  %v3840_v35 = vpop.eup %3839  ;;  %v1082_v62 = vmul.f32 %v3838_v47, %v5747_v33  ;;  %v1174_v49 = vadd.f32 %v6101_v14, %v1136_v60  ;;  %v2379_v12 = vsub.f32 %v6006_v27, %v2378_v28 }
 0x29e   : > { %v6307_v25 = vpack.c.bf16 %v2378_v28, %v2371_v48  ;;  %v1081_v22 = vmul.f32 %v3840_v35, %v5751_v59  ;;  %v1173_v55 = vadd.f32 %v6101_v14, %v1135_v10  ;;  %v2260_v11 = vsub.f32 %v6022_v13, %v2259_v3 }
 0x29f   : > { %v2266_v51 = vand.u32 4294901760, %v6024_v42  ;;  %v6313_v58 = vmul.f32 %v2066_v30, %v1174_v49  ;;  %v1120_v8 = vmul.f32 %v6088_v9, %v1082_v62  ;;  %v2380_v16 = vand.u32 4294901760, %v2379_v12 }
 0x2a0   : > { %v2385_v33 = vand.u32 4294901760, %v6114_v31  ;;  %v6317_v43 = vmul.f32 %v2065_v34, %v1173_v55  ;;  %v1119_v48 = vmul.f32 %v6088_v9, %v1081_v22  ;;  %v2261_v44 = vand.u32 4294901760, %v2260_v11 }
 0x2a1   : > { %v2267_v59 = vsub.f32 %v6024_v42, %v2266_v51  ;;  %v6891_v63 = vand.u32 4294901760, %v6313_v58  ;;  %v1158_v26 = vadd.f32 %v6101_v14, %v1120_v8  ;;  %v6323_v20 = vpack.c.bf16 %v2380_v16, %v2373_v41 }
 0x2a2   : > { %v6325_v30 = vpack.c.bf16 %v2266_v51, %v2259_v3  ;;  %v6890_v60 = vand.u32 4294901760, %v6317_v43  ;;  %v1157_v28 = vadd.f32 %v6101_v14, %v1119_v48  ;;  %v2386_v34 = vsub.f32 %v6114_v31, %v2385_v33 }
 0x2a3   : > { %v2268_v47 = vand.u32 4294901760, %v2267_v59  ;;  %v6330_v10 = vmul.f32 %v2050_v4, %v1158_v26  ;;  %v7311_v9 = vand.u32 4294901760, %v5886_v7  ;;  %v2392_v62 = vand.u32 4294901760, %v6107_v5 }
 0x2a4   : > { %v2273_v41 = vand.u32 4294901760, %v6128_v1  ;;  %v6343_v3 = vpack.c.bf16 %v6891_v63, %v6890_v60  ;;  %v6345_v14 = vmul.f32 %v2049_v57, %v1157_v28  ;;  %v2345_v4 = vand.u32 4294901760, %v6152_v56  ;;  %v7315_v60 = vld [vmem:[#allocation90_spill] sm:$0xff] }
 0x2a5   : > { %v6335_v35 = vsub.f32 %v5886_v7, %v7311_v9  ;;  %v6348_v49 = vpack.c.bf16 %v2268_v47, %v2261_v44  ;;  %v6888_v12 = vand.u32 4294901760, %v6330_v10  ;;  %v2387_v22 = vand.u32 4294901760, %v2386_v34 }
 0x2a6   : > { %7312 = vst [vmem:[#allocation29_spill] sm:$0xff] %v6343_v3  ;;  %v2393_v55 = vsub.f32 %v6107_v5, %v2392_v62  ;;  %v6352_v11 = vpack.c.bf16 %v2392_v62, %v2385_v33  ;;  %3411 = vmatprep.subr.bf16.mxu1 %v6343_v3  ;;  %3507 = vmatprep.subr.bf16.mxu0 %v6343_v3  ;;  %v6889_v51 = vand.u32 4294901760, %v6345_v14  ;;  %v2280_v8 = vand.u32 4294901760, %v6130_v23 }
 0x2a7   : > { %v2274_v57 = vsub.f32 %v6128_v1, %v2273_v41  ;;  %v2399_v56 = vand.u32 4294901760, %v6185_v2  ;;  %v2352_v16 = vand.u32 4294901760, %v6335_v35  ;;  %v2406_v44 = vand.u32 4294901760, %v6178_v17 }
 0x2a8   : > { %v2394_v48 = vand.u32 4294901760, %v2393_v55  ;;  %v2287_v33 = vand.u32 4294901760, %v6196_v45  ;;  %v6367_v59 = vpack.c.bf16 %v6888_v12, %v6889_v51  ;;  %v2238_v26 = vand.u32 4294901760, %v5903_v21 }
 0x2a9   : > { %v2275_v28 = vand.u32 4294901760, %v2274_v57  ;;  %v2281_v47 = vsub.f32 %v6130_v23, %v2280_v8  ;;  %v6373_v9 = vpack.c.bf16 %v2280_v8, %v2273_v41  ;;  %v2400_v35 = vsub.f32 %v6185_v2, %v2399_v56 }
 0x2aa   : > { %7313 = vst [vmem:[#allocation30_spill] sm:$0xff] %v6367_v59  ;;  %v6371_v34 = vpack.c.bf16 %v2394_v48, %v2387_v22  ;;  %v2407_v62 = vsub.f32 %v6178_v17, %v2406_v44  ;;  %3413 = vmatpush3.bf16.xpose.msra.mxu1 %v6367_v59  ;;  %3509 = vmatpush3.bf16.xpose.msra.mxu0 %v6367_v59  ;;  %v2294_v57 = vand.u32 4294901760, %v6198_v18  ;;  %v7316_v22 = vld [vmem:[#allocation20_spill] sm:$0xff]  ;;  %v2413_v48 = vand.u32 4294901760, %v6247_v39 }
 0x2ab   : > { %v2282_v55 = vand.u32 4294901760, %v2281_v47  ;;  %v6379_v12 = vpack.c.bf16 %v2406_v44, %v2399_v56  ;;  %v2288_v51 = vsub.f32 %v6196_v45, %v2287_v33  ;;  %3415 = vmatprep.subr.bf16.mxu1 %v7315_v60  ;;  %3511 = vmatprep.subr.bf16.mxu0 %v7316_v22  ;;  %v2401_v41 = vand.u32 4294901760, %v2400_v35  ;;  %v7320_v35 = vld [vmem:[#allocation19_spill] sm:$0xff] }
 0x2ac   : > { %v2408_v8 = vand.u32 4294901760, %v2407_v62  ;;  %v2420_v63 = vand.u32 4294901760, %v6240_v50  ;;  %v2295_v56 = vsub.f32 %v6198_v18, %v2294_v57  ;;  %v6390_v44 = vpack.c.bf16 %v2294_v57, %v2287_v33 }
 0x2ad   : > { %7314 = vst [vmem:[#allocation32_spill] sm:$0xff] %v6379_v12  ;;  %v6387_v3 = vpack.c.bf16 %v2282_v55, %v2275_v28  ;;  %v2289_v59 = vand.u32 4294901760, %v2288_v51  ;;  %v2414_v37 = vsub.f32 %v6247_v39, %v2413_v48  ;;  %v7321_v62 = vand.u32 4294901760, %v7320_v35 }
 0x2ae   : > { %7317 = vst [vmem:[#allocation31_spill] sm:$0xff] %v6390_v44  ;;  %v6392_v47 = vpack.c.bf16 %v2408_v8, %v2401_v41  ;;  %v2421_v60 = vsub.f32 %v6240_v50, %v2420_v63  ;;  %v6396_v22 = vpack.c.bf16 %v2420_v63, %v2413_v48  ;;  %v7323_v15 = vand.u32 4294901760, %v7322_v52 }
 0x2af   : > { %v2296_v28 = vand.u32 4294901760, %v2295_v56  ;;  %v2301_v51 = vand.u32 4294901760, %v6258_v19  ;;  %v2308_v55 = vand.u32 4294901760, %v6260_v6  ;;  %v7324_v33 = vand.u32 4294901760, %v5901_v38 }
 0x2b0   : > { %7318 = vst [vmem:[#allocation33_spill] sm:$0xff] %v6392_v47  ;;  %7319 = vst [vmem:[#allocation34_spill] sm:$0xff] %v6396_v22  ;;  %v3416_v53 = vpack.c.bf16 %v7323_v15, %v7321_v62  ;;  %v2239_v41 = vsub.f32 %v5903_v21, %v2238_v26  ;;  %v2415_v8 = vand.u32 4294901760, %v2414_v37  ;;  %v2422_v44 = vand.u32 4294901760, %v2421_v60  ;;  %v7327_v22 = vld [vmem:[#allocation83_spill] sm:$0xff]  ;;  %v7330_v37 = vld [vmem:[#allocation24_spill] sm:$0xff] }
 0x2b1   : > { %v2232_v57 = vsub.f32 %v5901_v38, %v7324_v33  ;;  %v3436_v63 = vpack.c.bf16 %v2296_v28, %v2289_v59  ;;  %v2302_v48 = vsub.f32 %v6258_v19, %v2301_v51  ;;  %v2309_v35 = vsub.f32 %v6260_v6, %v2308_v55 }
 0x2b2   : > { %v6410_v52 = vpack.c.bf16 %v2308_v55, %v2301_v51  ;;  %v7325_v15 = vmov 2.2351742e-08   ;;  %v7326_v56 = vmov 9.417534e-06   ;;  %v3418_v62 = vpack.c.bf16 %v2352_v16, %v2345_v4 }
 0x2b3   : > { %3211 = vmatmul.mubr.f32.vlgmr.msra.gmra.mrb[0].mxu1 %v7325_v15  ;;  %3313 = vmatmul.mubr.f32.vlgmr.msra.gmra.mrb[0].mxu0 %v7326_v56  ;;  %v7328_v12 = vand.u32 4294901760, %v7327_v22  ;;  %v7329_v33 = vand.u32 4294901760, %v5886_v7  ;;  %v3438_v21 = vpack.c.bf16 %v2422_v44, %v2415_v8  ;;  %v2303_v59 = vand.u32 4294901760, %v2302_v48 }
 0x2b4   : > { %3417 = vmatpush3.bf16.xpose.msra.mxu1 %v3416_v53  ;;  %3513 = vmatpush3.bf16.xpose.msra.mxu0 %v7330_v37  ;;  %v2310_v60 = vand.u32 4294901760, %v2309_v35  ;;  %v2233_v28 = vand.u32 4294901760, %v2232_v57  ;;  %v2240_v51 = vand.u32 4294901760, %v2239_v41  ;;  %v7331_v55 = vand.u32 4294901760, %v6313_v58 }
 0x2b5   : > { %v3514_v47 = vpack.c.bf16 %v7329_v33, %v7328_v12  ;;  %3419 = vmatprep.subr.bf16.mxu1 %v3418_v62  ;;  %v7332_v16 = vand.u32 4294901760, %v6317_v43  ;;  %v7333_v53 = vand.u32 4294901760, %v6345_v14  ;;  %v4016_v41 = vmov 0.088378906  }
 0x2b6   : > { %v6422_v15 = vsub.f32 %v6313_v58, %v7331_v55  ;;  %v3440_v4 = vpack.c.bf16 %v2310_v60, %v2303_v59  ;;  %3244 = vmatprep.mubr.f32.mxu1 %v4016_v41  ;;  %3346 = vmatprep.mubr.f32.mxu0 %v4016_v41  ;;  %v7335_v58 = vand.u32 4294901760, %v5901_v38  ;;  %v3458_v48 = vpack.c.bf16 %v6006_v27, %v6013_v32  ;;  %v7356_v27 = vld [vmem:[#allocation26_spill] sm:$0xff]  ;;  %v7357_v32 = vld [vmem:[#allocation27_spill] sm:$0xff] }
 0x2b7   : > { %3515 = vmatprep.subr.bf16.mxu0 %v3514_v47  ;;  %v6427_v12 = vsub.f32 %v6317_v43, %v7332_v16  ;;  %v6432_v44 = vsub.f32 %v6345_v14, %v7333_v53  ;;  %v7334_v47 = vand.u32 4294901760, %v6330_v10  ;;  %v3454_v43 = vpack.c.bf16 %v5940_v36, %v5947_v46  ;;  %v7352_v36 = vld [vmem:[#allocation89_spill] sm:$0xff] }
 0x2b8   : > { %v3516_v8 = vpack.c.bf16 %v2238_v26, %v7335_v58  ;;  %v3456_v14 = vpack.c.bf16 %v5967_v40, %v5965_v29  ;;  %v3420_v35 = vpack.c.bf16 %v2240_v51, %v2233_v28  ;;  %v3462_v56 = vpack.c.bf16 %v6107_v5, %v6114_v31  ;;  %v7353_v46 = vld [vmem:[#allocation21_spill] sm:$0xff]  ;;  %v7354_v29 = vld [vmem:[#allocation23_spill] sm:$0xff]  ;;  %v7360_v5 = vld [vmem:[#allocation30_spill] sm:$0xff] }
 0x2b9   : > { %v6437_v57 = vsub.f32 %v6330_v10, %v7334_v47  ;;  %v3460_v10 = vpack.c.bf16 %v6024_v42, %v6022_v13  ;;  %v3464_v62 = vpack.c.bf16 %v6130_v23, %v6128_v1  ;;  %v3466_v26 = vpack.c.bf16 %v6178_v17, %v6185_v2  ;;  %v7355_v40 = vld [vmem:[#allocation25_spill] sm:$0xff]  ;;  %v7358_v13 = vld [vmem:[#allocation28_spill] sm:$0xff]  ;;  %v2099_v17 = vld [vmem:[%s544_s28] sm:$0x3] }
 0x2ba   : > { %v3468_v33 = vpack.c.bf16 %v6198_v18, %v6196_v45  ;;  %v3470_v37 = vpack.c.bf16 %v6240_v50, %v6247_v39  ;;  %v3472_v59 = vpack.c.bf16 %v6260_v6, %v6258_v19  ;;  %v3474_v60 = vpack.c.bf16 %v6422_v15, %v6427_v12  ;;  %v7359_v42 = vld [vmem:[#allocation29_spill] sm:$0xff]  ;;  %v2953_v18 = vld [vmem:[%s549_s26] sm:$0x3] }
 0x2bb   : > { %v3476_v28 = vpack.c.bf16 %v6437_v57, %v6432_v44  ;;  %v2101_v31 = vlaneseq }
 0x2bc   : > { %3421 = vmatpush3.bf16.xpose.msra.mxu1 %v3420_v35  ;;  %3517 = vmatpush3.bf16.xpose.msra.mxu0 %v3516_v8  ;;  %v7340_v8 = vld [vmem:[#allocation78_spill] sm:$0xff]  ;;  %v7341_v35 = vld [vmem:[#allocation76_spill] sm:$0xff] }
 0x2bd   : > { %3423 = vmatprep.subr.bf16.mxu1 %v6295_v0  ;;  %3519 = vmatprep.subr.bf16.mxu0 %v6283_v24  ;;  %v7336_v24 = vld [vmem:[#allocation33_spill] sm:$0xff]  ;;  %v7337_v0 = vld [vmem:[#allocation32_spill] sm:$0xff]  ;;  %v2102_v1 = vshrl.u32 %v2101_v31, 7  ;;  %vm2995_vm0 = vcmp.lt.s32.totalorder %v2101_v31, 256 }
 0x2bf   : > { %v2103_v23 = vsub.s32 0, %v2102_v1  ;;  %v2107_v2 = vsub.s32 1, %v2102_v1 }
 0x2c1   : > { %v2104_v45 = vrot.slane %v2099_v17, %v2103_v23  ;;  %v2108_v50 = vrot.slane %v2099_v17, %v2107_v2 }
 0x2c4   : > { %3425 = vmatpush3.bf16.xpose.msra.mxu1 %v6299_v61  ;;  %3521 = vmatpush3.bf16.xpose.msra.mxu0 %v6288_v54  ;;  %v2427_v54 = vand.u32 4294901760, %v6427_v12  ;;  %v2434_v61 = vand.u32 4294901760, %v6422_v15 }
 0x2c5   : > { %3427 = vmatprep.subr.bf16.mxu1 %v6323_v20  ;;  %3523 = vmatprep.subr.bf16.mxu0 %v6307_v25 }
 0x2c6   : > { %v2428_v25 = vsub.f32 %v6427_v12, %v2427_v54  ;;  %v2435_v20 = vsub.f32 %v6422_v15, %v2434_v61  ;;  %v3538_v53 = vpack.c.bf16 %v2434_v61, %v2427_v54  ;;  %v7346_v61 = vld [vmem:[#allocation82_spill] sm:$0xff]  ;;  %v2958_v15 = vrot.slane %v2953_v18, %v2103_v23 }
 0x2cc   : > { %3429 = vmatpush3.bf16.xpose.msra.mxu1 %v6348_v49  ;;  %3525 = vmatpush3.bf16.xpose.msra.mxu0 %v6325_v30  ;;  %v7338_v30 = vld [vmem:[#allocation31_spill] sm:$0xff]  ;;  %v7339_v49 = vld [vmem:[#allocation34_spill] sm:$0xff] }
 0x2cd   : > { %3431 = vmatprep.subr.bf16.mxu1 %v6371_v34  ;;  %3527 = vmatprep.subr.bf16.mxu0 %v6352_v11  ;;  %v2322_v11 = vand.u32 4294901760, %v6437_v57  ;;  %v2429_v34 = vand.u32 4294901760, %v2428_v25  ;;  %v7343_v25 = vld [vmem:[#allocation80_spill] sm:$0xff] }
 0x2cf   : > { %v2323_v55 = vsub.f32 %v6437_v57, %v2322_v11 }
 0x2d4   : > { %3433 = vmatpush3.bf16.xpose.msra.mxu1 %v6387_v3  ;;  %3529 = vmatpush3.bf16.xpose.msra.mxu0 %v6373_v9  ;;  %v2315_v3 = vand.u32 4294901760, %v6432_v44  ;;  %v2436_v9 = vand.u32 4294901760, %v2435_v20  ;;  %v7344_v20 = vld [vmem:[#allocation81_spill] sm:$0xff] }
 0x2d5   : > { %3435 = vmatprep.subr.bf16.mxu1 %v7336_v24  ;;  %3531 = vmatprep.subr.bf16.mxu0 %v7337_v0  ;;  %v3446_v24 = vpack.c.bf16 %v7341_v35, %v7340_v8  ;;  %v7342_v0 = vld [vmem:[#allocation77_spill] sm:$0xff]  ;;  %v3448_v54 = vpack.c.bf16 %v7344_v20, %v7343_v25 }
 0x2d6   : > { %v2316_v51 = vsub.f32 %v6432_v44, %v2315_v3  ;;  %v3442_v16 = vpack.c.bf16 %v2436_v9, %v2429_v34  ;;  %v3540_v58 = vpack.c.bf16 %v2322_v11, %v2315_v3  ;;  %v7348_v11 = vld [vmem:[#allocation84_spill] sm:$0xff] }
 0x2dc   : > { %3437 = vmatpush3.bf16.xpose.msra.mxu1 %v3436_v63  ;;  %3533 = vmatpush3.bf16.xpose.msra.mxu0 %v7338_v30  ;;  %v2324_v63 = vand.u32 4294901760, %v2323_v55  ;;  %v4017_v30 = vmov 9.439886e-06  }
 0x2dd   : > { %3439 = vmatprep.subr.bf16.mxu1 %v3438_v21  ;;  %3535 = vmatprep.subr.bf16.mxu0 %v7339_v49  ;;  %v2317_v21 = vand.u32 4294901760, %v2316_v51  ;;  %v7347_v49 = vld [vmem:[#allocation85_spill] sm:$0xff] }
 0x2de   : > { %v3452_v3 = vpack.c.bf16 %v7347_v49, %v5901_v38  ;;  %v7351_v38 = vld [vmem:[#allocation88_spill] sm:$0xff] }
 0x2df   : > { %v3444_v47 = vpack.c.bf16 %v2324_v63, %v2317_v21 }
 0x2e4   : > { %3441 = vmatpush3.bf16.xpose.msra.mxu1 %v3440_v4  ;;  %3537 = vmatpush3.bf16.xpose.msra.mxu0 %v6410_v52  ;;  %v3450_v52 = vpack.c.bf16 %v5886_v7, %v7327_v22  ;;  %v7345_v4 = vld [vmem:[#allocation79_spill] sm:$0xff]  ;;  %v7349_v7 = vld [vmem:[#allocation86_spill] sm:$0xff] }
 0x2e5   : > { %3443 = vmatprep.subr.bf16.mxu1 %v3442_v16  ;;  %3539 = vmatprep.subr.bf16.mxu0 %v3538_v53  ;;  %v7350_v22 = vld [vmem:[#allocation87_spill] sm:$0xff] }
 0x2ec   : > { %3445 = vmatpush3.bf16.xpose.msra.mxu1 %v3444_v47  ;;  %3541 = vmatpush3.bf16.xpose.msra.mxu0 %v3540_v58 }
 0x2ed   : > { %3447 = vmatprep.subr.bf16.mxu1 %v3446_v24  ;;  %3543 = vmatprep.subr.bf16.mxu0 %v7342_v0 }
 0x2f3   : > { %3245 = vmatmul.mubr.f32.vlgmr.msra.gmra.mrb[0].mxu1 %v4016_v41  ;;  %3347 = vmatmul.mubr.f32.vlgmr.msra.gmra.mrb[0].mxu0 %v4016_v41 }
 0x2f4   : > { %3449 = vmatpush3.bf16.xpose.msra.mxu1 %v3448_v54  ;;  %3545 = vmatpush3.bf16.xpose.msra.mxu0 %v7345_v4 }
 0x2f5   : > { %3451 = vmatprep.subr.bf16.mxu1 %v3450_v52  ;;  %3547 = vmatprep.subr.bf16.mxu0 %v7346_v61 }
 0x2f6   : > { %3278 = vmatprep.mubr.f32.mxu1 %v4017_v30  ;;  %3380 = vmatprep.mubr.f32.mxu0 %v4016_v41 }
 0x2fc   : > { %3453 = vmatpush3.bf16.xpose.msra.mxu1 %v3452_v3  ;;  %3549 = vmatpush3.bf16.xpose.msra.mxu0 %v7348_v11 }
 0x2fd   : > { %3455 = vmatprep.subr.bf16.mxu1 %v3454_v43  ;;  %3551 = vmatprep.subr.bf16.mxu0 %v7349_v7 }
 0x304   : > { %3457 = vmatpush3.bf16.xpose.msra.mxu1 %v3456_v14  ;;  %3553 = vmatpush3.bf16.xpose.msra.mxu0 %v7350_v22  ;;  %v2968_v14 = vstv %s2967_s1 }
 0x305   : > { %3459 = vmatprep.subr.bf16.mxu1 %v3458_v48  ;;  %3555 = vmatprep.subr.bf16.mxu0 %v7351_v38 }
 0x30c   : > { %3461 = vmatpush3.bf16.xpose.msra.mxu1 %v3460_v10  ;;  %3557 = vmatpush3.bf16.xpose.msra.mxu0 %v7352_v36  ;;  %v4018_v10 = vmov 1966171168  }
 0x30d   : > { %3463 = vmatprep.subr.bf16.mxu1 %v3462_v56  ;;  %3559 = vmatprep.subr.bf16.mxu0 %v7353_v46  ;;  %v2979_v56 = vunpack.c.l.s4 %v4018_v10 }
 0x314   : > { %3465 = vmatpush3.bf16.xpose.msra.mxu1 %v3464_v62  ;;  %3561 = vmatpush3.bf16.xpose.msra.mxu0 %v7354_v29 }
 0x315   : > { %3467 = vmatprep.subr.bf16.mxu1 %v3466_v26  ;;  %3563 = vmatprep.subr.bf16.mxu0 %v7355_v40 }
 0x31c   : > { %3469 = vmatpush3.bf16.xpose.msra.mxu1 %v3468_v33  ;;  %3565 = vmatpush3.bf16.xpose.msra.mxu0 %v7356_v27 }
 0x31d   : > { %3471 = vmatprep.subr.bf16.mxu1 %v3470_v37  ;;  %3567 = vmatprep.subr.bf16.mxu0 %v7357_v32 }
 0x324   : > { %3473 = vmatpush3.bf16.xpose.msra.mxu1 %v3472_v59  ;;  %3569 = vmatpush3.bf16.xpose.msra.mxu0 %v7358_v13  ;;  %v2980_v59 = vunpack.c.0.s8 %v2979_v56 }
 0x325   : > { %3475 = vmatprep.subr.bf16.mxu1 %v3474_v60  ;;  %3571 = vmatprep.subr.bf16.mxu0 %v7359_v42 }
 0x326   : > { %v2983_v51 = vsub.s32 %v2980_v59, %v2102_v1 }
 0x32c   : > { %3477 = vmatpush3.bf16.xpose.msra.mxu1 %v3476_v28  ;;  %3573 = vmatpush3.bf16.xpose.msra.mxu0 %v7360_v5 }
 0x333   : > { %3279 = vmatmul.mubr.f32.vlgmr.msra.gmra.mrb[0].mxu1 %v4017_v30  ;;  %3381 = vmatmul.mubr.f32.vlgmr.msra.gmra.mrb[0].mxu0 %v4016_v41  ;;  %v2962_v41 = vrot.slane %v2953_v18, %v2107_v2 }
 0x406   : > { %v2575_v39 = vpop.f32.mrb[0].mxu1  ;;  %v2948_v19 = vpop.f32.mrb[0].mxu0 }
 0x407   : > { %v3574_v6 = vadd.f32 %v2575_v39, %v2104_v45  ;;  %v2577_v12 = vpop.f32.mrb[1].mxu1  ;;  %v2950_v44 = vpop.f32.mrb[1].mxu0 }
 0x408   : > { %v3576_v57 = vadd.f32 %v2577_v12, %v2108_v50 }
 0x409   : > { %v3575_v43 = vadd.f32 %v3574_v6, %v2948_v19 }
 0x40a   : > { %v3577_v48 = vadd.f32 %v3576_v57, %v2950_v44 }
 0x40b   : > { %v2965_v62 = vadd.f32 %v3575_v43, %v2958_v15 }
 0x40c   : > { %v2966_v26 = vadd.f32 %v3577_v48, %v2962_v41 }
 0x40d   : > { %v2969_v33 = vadd.f32 %v2968_v14, %v2965_v62 }
 0x40e   : > { %v2970_v37 = vadd.f32 %v2968_v14, %v2966_v26 }
 0x40f   : > { %v2971_v60 = vmax.f32 %v2969_v33, -0.1 }
 0x410   : > { %v2972_v28 = vmax.f32 %v2970_v37, -0.1 }
 0x411   : > { %v2973_v34 = vmin.f32 %v2971_v60, 1.1 }
 0x412   : > { %v2974_v9 = vmin.f32 %v2972_v28, 1.1 }
 0x414   : > { %v2977_v55 = vcombine.low %v2973_v34, %v2974_v9 }
 0x416   : > { %v2984_v16 = vrot.slane %v2977_v55, %v2983_v51 }
 0x418   : > { %v2991_v53 = vrot.slane %v2984_v16, %v2983_v51 }
 0x41a   : > { %2997 = vst.msk [vmem:[%s537_s15] sm:$0x3] %vm2995_vm0, %v2991_v53 }
 0x41b   : > { %3950 = shalt.err (!%p3947_p11)
}
 0x41c   : > { %s3951_s16 = scalar_lea.hbm %s6568_s22, 32  ;;  %s3955_s12 = scalar_lea.hbm %s7362_s30, 64 }
 0x41d   : > { %p3952_p4 = scmp.ne.s32.totalorder %s6568_s22, %s3951_s16  ;;  %p3956_p2 = scmp.lt.u32.totalorder %s6568_s22, %s7362_s30 }
 0x41e   : > { %p3957_p1 = scmp.lt.u32.totalorder %s3955_s12, %s3951_s16  ;;  %p3959_p7 = scmp.lt.u32.totalorder %s3951_s16, %s6568_s22 }
 0x41f   : > { %p3953_p3 = pnand %p3952_p4, %p7363_p6 }
 0x420   : > { %p3958_p13 = por %p3957_p1, %p3956_p2 }
 0x421   : > { %p3954_p5 = pneg %p3953_p3 }
 0x422   : > { %p3960_p9 = por %p3959_p7, %p3958_p13 }
 0x424   : > { %p3961_p12 = pnand %p3960_p9, %p3954_p5 }
 0x426   : > { %3964 = shalt.err (!%p3961_p12)
}
 0x427   : > { %3592 = dma.vmem_to_hbm [thread:$0]  (%p7363_p6), %s6570_s14, 32, %s6568_s22, %s2999_s29  }
 0x428 PF: > { %s7364_s17 = sld [smem:[#allocation13_spill]]  ;;  %s7365_s27 = sld [smem:[#allocation18_spill]] }
 0x429   : > { %s7366_s15 = sld [smem:[#allocation14_spill]] }
 0x42e   : > { %s3025_s23 = sand.u32 1, %s7364_s17   ;;  %p7367_p0 = scmp.ne.s32.totalorder %s7365_s27, 0 }
 0x42f   : > { %p7368_p8 = scmp.ge.s32.totalorder %s7366_s15, 2  ;;  %s3026_s13 = scalar_lea.sflag [#allocation5], %s3025_s23 }
 0x431   : > { %p3605_p10 = pnand %p7368_p8, %p7367_p0 }
 0x433   : > { %3990 = dma.done.wait (!%p3605_p10), %s3026_s13, 32  }
 0x434   : > { %3992 = vsyncadd (!%p3605_p10), %s3026_s13, 4294967264  ;;  %s7369_s26 = sld [smem:[#allocation15_spill]]  ;;  %s7370_s18 = sld [smem:[#allocation16_spill]] }
 0x435   : > { %s7371_s23 = smov %s3999_s24  ;;  %s7372_s24 = smov %s4003_s25 }
 0x43a   : > { %p29_p11 = scmp.ge.s32.totalorder %s7369_s26, 4   ;;  %s7373_s25 = smov %s7370_s18 }
 0x43c   :  { %31 = sbr.rel (!%p29_p11) target bundleno = 12 (0xc), region = 143 }
 0x443   :  { %3031 = vsyncpa [#allocation4], 1 }
 0x444   :  { %3033 = vsyncpa [#allocation4 + $0x1], 1 }
 0x445   :  { %3034 = vsyncpa [#allocation7], 1 }
 0x446   :  { %3036 = vsyncpa [#allocation7 + $0x1], 1 }
 0x447   :  { %3037 = vsyncpa [#allocation5], 1 }
 0x448   :  { %3039 = vsyncpa [#allocation5 + $0x1], 1 }

</bundles_post_ra>
